<compile_context>
chip_gen: v7x
topology: tpu7x:2x2x1
jax: 0.10.0
libtpu: 0.0.40
codegen_flags: <defaults>
</compile_context>

<pallas_src>
import functools

import jax
import jax.numpy as jnp
from jax import lax
from jax.experimental import pallas as pl
from jax.experimental.pallas import tpu as pltpu

EPS = 1e-5


# -------------------------------------------------------------------------
# Fused kernel: time-MLP + LN1 + FiLM + ReLU + 3x3x3 conv (im2col, 1 dot)
#               + LN2 + ReLU + 1x1 conv + 1x1 identity conv + add.
# Whole batch in one step; layout = (batch*channel rows, padded flat spatial lanes).
# -------------------------------------------------------------------------
def _fused_resblock_kernel(t_ref, wss_ref, bvec_ref, spat_ref, x_ref,
                           w1_ref, w2_ref, ws_ref,
                           o_ref, slab_ref,
                           *, S, B, Cin, Cout, P2, PF, MARGIN):
    S3 = S * S * S
    inv_n = 1.0 / float(S3)
    BC = B * Cin          # stacked (batch, in-channel) rows
    BO = B * Cout         # stacked (batch, out-channel) rows

    # spatial params: one (8, WH) slab; rows = [mask, ln1_w, ln1_b, ln2_w, ln2_b, 0,0,0]
    mask = spat_ref[0:1, :]                              # (1, WH): 1 on interior voxels
    ln1w = spat_ref[1:2, :]
    ln1b = spat_ref[2:3, :]
    ln2w = spat_ref[3:4, MARGIN:MARGIN + PF]             # (1, PF), lane-aligned slice
    ln2b = spat_ref[4:5, MARGIN:MARGIN + PF]
    maskc = spat_ref[0:1, MARGIN:MARGIN + PF]            # interior mask on PF width

    bv = bvec_ref[...]                                   # (NR, 3) packed bias columns

    # ---- time-embedding MLP: SiLU -> Linear, one row-reduction for scale & shift -----
    t = t_ref[...]                                       # (2*BC, T)
    st = t * jax.nn.sigmoid(t)                           # SiLU
    ss = jnp.sum(st * wss_ref[...], axis=1, keepdims=True) + bv[0:2 * BC, 0:1]
    scale = ss[0:BC, :]                                  # (BC, 1)
    shift = ss[BC:2 * BC, :]                             # (BC, 1)

    # ---- LayerNorm over spatial (per (b,c) row) + FiLM + ReLU on haloed width --------
    x = x_ref[...]                                       # (BC, WH); halo & tail are 0
    mean = jnp.sum(x * mask, axis=1, keepdims=True) * inv_n
    cen = x - mean
    var = jnp.sum(cen * cen * mask, axis=1, keepdims=True) * inv_n
    xn = cen * lax.rsqrt(var + EPS)
    xn = xn * ln1w + ln1b                                # per-voxel affine
    xn = xn * (scale + 1.0) + shift                      # per-(batch,channel) FiLM
    h = jnp.maximum(xn, 0.0) * mask                      # zero halo -> conv zero pad

    # ---- 3x3x3 conv as ONE im2col matmul ----------------------------------------------
    # slab rows [tap*BC:(tap+1)*BC] <- tap-shifted slice of h (8-sublane-aligned stores,
    # taken straight from the vreg-resident `h`; center tap is the lane-aligned slice).
    tap = 0
    for kd in range(3):
        for kh in range(3):
            for kw in range(3):
                off = (kd - 1) * P2 * P2 + (kh - 1) * P2 + (kw - 1)
                start = MARGIN + off
                slab_ref[tap * BC:(tap + 1) * BC, :] = h[:, start:start + PF]
                tap += 1
    y1 = jnp.dot(w1_ref[...], slab_ref[...],
                 preferred_element_type=jnp.float32)     # (BO, PF)
    y1 = y1 + bv[0:BO, 1:2]                              # conv1 bias per (b, cout)

    # ---- LayerNorm over spatial (per (b,cout) row) + ReLU (mask junk out of stats) ---
    mean2 = jnp.sum(y1 * maskc, axis=1, keepdims=True) * inv_n
    cen2 = y1 - mean2
    var2 = jnp.sum(cen2 * cen2 * maskc, axis=1, keepdims=True) * inv_n
    yn = cen2 * lax.rsqrt(var2 + EPS)
    yn = yn * ln2w + ln2b
    h2 = jnp.maximum(yn, 0.0)                            # (BO, PF)

    # ---- 1x1 conv + 1x1 identity conv (block-diag weights), pre-summed biases --------
    x_c = x[:, MARGIN:MARGIN + PF]                       # (BC, PF), lane-aligned
    out = (jnp.dot(w2_ref[...], h2, preferred_element_type=jnp.float32)
           + jnp.dot(ws_ref[...], x_c, preferred_element_type=jnp.float32)
           + bv[0:BO, 2:3])
    o_ref[...] = out.astype(o_ref.dtype)


# -------------------------------------------------------------------------
# Wrapper: layout plumbing (pad / flatten / halo / crop) + one pallas_call
# -------------------------------------------------------------------------
def residual_block(x_ncdhw, time_emb, params):
    B, Cin = x_ncdhw.shape[0], x_ncdhw.shape[1]
    S = x_ncdhw.shape[2]
    Cout = params["w1"].shape[-1]
    T = time_emb.shape[1]
    f32 = jnp.float32

    P2 = S + 2
    PRAW = P2 * P2 * P2                                     # zero-padded flat volume
    PF = ((PRAW + 127) // 128) * 128                        # round to full lanes
    MARGIN = ((P2 * P2 + P2 + 1 + 127) // 128) * 128        # >= max tap offset
    WH = MARGIN + PF + MARGIN                               # haloed lane width
    BC, BO = B * Cin, B * Cout
    NR = max(2 * BC, BO)

    # activations: channels-first, spatially zero-padded, flattened, haloed, row-stacked
    xp = jnp.pad(x_ncdhw.astype(f32), ((0, 0), (0, 0), (1, 1), (1, 1), (1, 1)))
    xp = xp.reshape(BC, PRAW)
    x_in = jnp.pad(xp, ((0, 0), (MARGIN, WH - MARGIN - PRAW)))        # (BC, WH)

    def haloed(p):                                          # (S,S,S) -> (WH,)
        q = jnp.pad(p.astype(f32), ((1, 1), (1, 1), (1, 1))).reshape(PRAW)
        return jnp.pad(q, (MARGIN, WH - MARGIN - PRAW))

    spat = jnp.stack([
        haloed(jnp.ones((S, S, S), f32)),                   # interior-voxel mask
        haloed(params["ln1_w"]), haloed(params["ln1_b"]),
        haloed(params["ln2_w"]), haloed(params["ln2_b"]),
        jnp.zeros((WH,), f32), jnp.zeros((WH,), f32), jnp.zeros((WH,), f32)], axis=0)

    # time-MLP operands: scale rows then shift rows, batch-tiled
    t_rep = jnp.repeat(time_emb.astype(f32), Cin, axis=0)               # (BC, T)
    t_ss = jnp.concatenate([t_rep, t_rep], axis=0)                      # (2*BC, T)
    wsc = params["mlp_w"][:, :Cin].T                                    # (Cin, T)
    wsh = params["mlp_w"][:, Cin:].T
    w_ss = jnp.concatenate([jnp.tile(wsc, (B, 1)), jnp.tile(wsh, (B, 1))], axis=0)

    # per-row bias vectors packed into one (NR, 3) array
    col_ss = jnp.concatenate([jnp.tile(params["mlp_b"][:Cin], B),
                              jnp.tile(params["mlp_b"][Cin:], B)])       # (2*BC,)
    col_b1 = jnp.tile(params["b1"], B)                                   # (BO,)
    col_bo = jnp.tile(params["b2"] + params["bs"], B)                    # (BO,)
    pad_to = lambda v: jnp.pad(v.astype(f32), (0, NR - v.shape[0]))
    bvec = jnp.stack([pad_to(col_ss), pad_to(col_b1), pad_to(col_bo)], axis=1)

    # block-diagonal (over batch) weights: each conv becomes a single MXU dot
    eyeB = jnp.eye(B, dtype=f32)
    w1r = params["w1"].reshape(27, Cin, Cout)                            # [tap, ci, co]
    w1blk = (eyeB[:, None, None, :, None] *
             jnp.transpose(w1r, (2, 0, 1))[None, :, :, None, :]          # [co, tap, ci]
             ).reshape(BO, 27 * BC)
    w2blk = (eyeB[:, None, :, None] *
             params["w2"].T[None, :, None, :]).reshape(BO, BO)
    wsblk = (eyeB[:, None, :, None] *
             params["ws"].T[None, :, None, :]).reshape(BO, BC)

    kernel = functools.partial(_fused_resblock_kernel, S=S, B=B, Cin=Cin, Cout=Cout,
                               P2=P2, PF=PF, MARGIN=MARGIN)
    full = lambda i: (0, 0)

    out_flat = pl.pallas_call(
        kernel,
        out_shape=jax.ShapeDtypeStruct((BO, PF), f32),
        grid=(1,),                                           # whole batch in one step
        in_specs=[
            pl.BlockSpec((2 * BC, T), full),                 # time emb (tiled rows)
            pl.BlockSpec((2 * BC, T), full),                 # scale/shift MLP weights
            pl.BlockSpec((NR, 3), full),                     # packed bias columns
            pl.BlockSpec((8, WH), full),                     # spatial params slab
            pl.BlockSpec((BC, WH), full),                    # x (haloed, batch-stacked)
            pl.BlockSpec((BO, 27 * BC), full),               # conv1 block-diag weights
            pl.BlockSpec((BO, BO), full),                    # conv2 block-diag weights
            pl.BlockSpec((BO, BC), full),                    # identity block-diag weights
        ],
        out_specs=pl.BlockSpec((BO, PF), full),
        scratch_shapes=[pltpu.VMEM((27 * BC, PF), jnp.float32)],   # im2col slab
        compiler_params=pltpu.CompilerParams(
            dimension_semantics=("arbitrary",)),
    )(t_ss, w_ss, bvec, spat, x_in, w1blk, w2blk, wsblk)

    # crop the zero-padding halo back out -> NCDHW, no transpose needed
    out = out_flat.reshape(B, Cout, PF)[:, :, :PRAW].reshape(B, Cout, P2, P2, P2)
    return out[:, :, 1:S + 1, 1:S + 1, 1:S + 1]


# -------------------------------------------------------------------------
# Pure-JAX reference (for correctness check)
# -------------------------------------------------------------------------
def reference(x, t, params):
    Cin = x.shape[1]
    h = t * jax.nn.sigmoid(t)
    ss = h @ params["mlp_w"] + params["mlp_b"]
    scale, shift = ss[:, :Cin], ss[:, Cin:]

    mean = x.mean(axis=(2, 3, 4), keepdims=True)
    var = ((x - mean) ** 2).mean(axis=(2, 3, 4), keepdims=True)
    xn = (x - mean) / jnp.sqrt(var + EPS)
    xn = xn * params["ln1_w"][None, None] + params["ln1_b"][None, None]
    xn = xn * (scale[:, :, None, None, None] + 1.0) + shift[:, :, None, None, None]
    xn = jnp.maximum(xn, 0.0)
    y1 = lax.conv_general_dilated(
        xn, params["w1"], window_strides=(1, 1, 1), padding="SAME",
        dimension_numbers=("NCDHW", "DHWIO", "NCDHW"))
    y1 = y1 + params["b1"][None, :, None, None, None]

    mean = y1.mean(axis=(2, 3, 4), keepdims=True)
    var = ((y1 - mean) ** 2).mean(axis=(2, 3, 4), keepdims=True)
    yn = (y1 - mean) / jnp.sqrt(var + EPS)
    yn = yn * params["ln2_w"][None, None] + params["ln2_b"][None, None]
    yn = jnp.maximum(yn, 0.0)
    h2 = jnp.einsum("bcdhw,co->bodhw", yn, params["w2"]) \
        + params["b2"][None, :, None, None, None]
    ident = jnp.einsum("bcdhw,co->bodhw", x, params["ws"]) \
        + params["bs"][None, :, None, None, None]
    return h2 + ident


if __name__ == "__main__":
    B, Cin, Cout, S, T = 2, 4, 8, 8, 16   # planes_in=4, planes_out=8, input_size=8

    key = jax.random.PRNGKey(0)
    ks = jax.random.split(key, 14)
    params = {
        "mlp_w": 0.1 * jax.random.normal(ks[0], (T, 2 * Cin), jnp.float32),
        "mlp_b": 0.1 * jax.random.normal(ks[1], (2 * Cin,), jnp.float32),
        "ln1_w": 1.0 + 0.1 * jax.random.normal(ks[2], (S, S, S), jnp.float32),
        "ln1_b": 0.1 * jax.random.normal(ks[3], (S, S, S), jnp.float32),
        "w1": 0.1 * jax.random.normal(ks[4], (3, 3, 3, Cin, Cout), jnp.float32),
        "b1": 0.1 * jax.random.normal(ks[5], (Cout,), jnp.float32),
        "ln2_w": 1.0 + 0.1 * jax.random.normal(ks[6], (S, S, S), jnp.float32),
        "ln2_b": 0.1 * jax.random.normal(ks[7], (S, S, S), jnp.float32),
        "w2": 0.1 * jax.random.normal(ks[8], (Cout, Cout), jnp.float32),
        "b2": 0.1 * jax.random.normal(ks[9], (Cout,), jnp.float32),
        "ws": 0.1 * jax.random.normal(ks[10], (Cin, Cout), jnp.float32),
        "bs": 0.1 * jax.random.normal(ks[11], (Cout,), jnp.float32),
    }

    x = jax.random.normal(ks[12], (B, Cin, S, S, S), jnp.float32)    # NCDHW
    t_emb = jax.random.normal(ks[13], (B, T), jnp.float32)

    out = jax.jit(residual_block)(x, t_emb, params)
    out = jax.block_until_ready(out)

    assert out.shape == (B, Cout, S, S, S), out.shape
    ref = reference(x, t_emb, params)
    max_err = float(jnp.max(jnp.abs(out - ref)))
    assert max_err < 2e-3, f"max abs err {max_err}"

    print("KERNEL_OK")
</pallas_src>

<mosaic_0001>
module attributes {stable_mosaic.version = 11 : i64} {
  func.func @_fused_resblock_kernel(%arg0: i32, %arg1: memref<16x16xf32, #tpu.memory_space<vmem>>, %arg2: memref<16x16xf32, #tpu.memory_space<vmem>>, %arg3: memref<16x3xf32, #tpu.memory_space<vmem>>, %arg4: memref<8x1280xf32, #tpu.memory_space<vmem>>, %arg5: memref<8x1280xf32, #tpu.memory_space<vmem>>, %arg6: memref<16x216xf32, #tpu.memory_space<vmem>>, %arg7: memref<16x16xf32, #tpu.memory_space<vmem>>, %arg8: memref<16x8xf32, #tpu.memory_space<vmem>>, %arg9: memref<16x1024xf32, #tpu.memory_space<vmem>>, %arg10: memref<216x1024xf32, #tpu.memory_space<vmem>>) attributes {dimension_semantics = [#tpu.dimension_semantics<arbitrary>], iteration_bounds = array<i64: 1>, scalar_prefetch = 0 : i64, scratch_operands = 1 : i64, tpu.core_type = #tpu.core_type<tc>, window_params = [{pipeline_mode = #tpu.pipeline_mode<synchronous>, transform_indices = @transform_0, window_bounds = array<i64: 16, 16>}, {pipeline_mode = #tpu.pipeline_mode<synchronous>, transform_indices = @transform_1, window_bounds = array<i64: 16, 16>}, {pipeline_mode = #tpu.pipeline_mode<synchronous>, transform_indices = @transform_2, window_bounds = array<i64: 16, 3>}, {pipeline_mode = #tpu.pipeline_mode<synchronous>, transform_indices = @transform_3, window_bounds = array<i64: 8, 1280>}, {pipeline_mode = #tpu.pipeline_mode<synchronous>, transform_indices = @transform_4, window_bounds = array<i64: 8, 1280>}, {pipeline_mode = #tpu.pipeline_mode<synchronous>, transform_indices = @transform_5, window_bounds = array<i64: 16, 216>}, {pipeline_mode = #tpu.pipeline_mode<synchronous>, transform_indices = @transform_6, window_bounds = array<i64: 16, 16>}, {pipeline_mode = #tpu.pipeline_mode<synchronous>, transform_indices = @transform_7, window_bounds = array<i64: 16, 8>}, {pipeline_mode = #tpu.pipeline_mode<synchronous>, transform_indices = @transform_8, window_bounds = array<i64: 16, 1024>}]} {
    %c0 = arith.constant 0 : index
    %c0_0 = arith.constant 0 : index
    %0 = vector.load %arg4[%c0, %c0_0] : memref<8x1280xf32, #tpu.memory_space<vmem>>, vector<1x1280xf32>
    %c1 = arith.constant 1 : index
    %c0_1 = arith.constant 0 : index
    %1 = vector.load %arg4[%c1, %c0_1] : memref<8x1280xf32, #tpu.memory_space<vmem>>, vector<1x1280xf32>
    %c2 = arith.constant 2 : index
    %c0_2 = arith.constant 0 : index
    %2 = vector.load %arg4[%c2, %c0_2] : memref<8x1280xf32, #tpu.memory_space<vmem>>, vector<1x1280xf32>
    %c3 = arith.constant 3 : index
    %c128 = arith.constant 128 : index
    %3 = vector.load %arg4[%c3, %c128] : memref<8x1280xf32, #tpu.memory_space<vmem>>, vector<1x1024xf32>
    %c4 = arith.constant 4 : index
    %c128_3 = arith.constant 128 : index
    %4 = vector.load %arg4[%c4, %c128_3] : memref<8x1280xf32, #tpu.memory_space<vmem>>, vector<1x1024xf32>
    %c0_4 = arith.constant 0 : index
    %c128_5 = arith.constant 128 : index
    %5 = vector.load %arg4[%c0_4, %c128_5] : memref<8x1280xf32, #tpu.memory_space<vmem>>, vector<1x1024xf32>
    %c0_6 = arith.constant 0 : index
    %c0_7 = arith.constant 0 : index
    %6 = vector.load %arg3[%c0_6, %c0_7] : memref<16x3xf32, #tpu.memory_space<vmem>>, vector<16x3xf32>
    %c0_8 = arith.constant 0 : index
    %c0_9 = arith.constant 0 : index
    %7 = vector.load %arg1[%c0_8, %c0_9] : memref<16x16xf32, #tpu.memory_space<vmem>>, vector<16x16xf32>
    %8 = arith.negf %7 : vector<16x16xf32>
    %9 = math.exp %8 : vector<16x16xf32>
    %cst = arith.constant 1.000000e+00 : f32
    %10 = vector.broadcast %cst : f32 to vector<16x16xf32>
    %11 = arith.addf %10, %9 : vector<16x16xf32>
    %12 = arith.divf %10, %11 : vector<16x16xf32>
    %13 = arith.mulf %7, %12 : vector<16x16xf32>
    %c0_10 = arith.constant 0 : index
    %c0_11 = arith.constant 0 : index
    %14 = vector.load %arg2[%c0_10, %c0_11] : memref<16x16xf32, #tpu.memory_space<vmem>>, vector<16x16xf32>
    %15 = arith.mulf %13, %14 : vector<16x16xf32>
    %cst_12 = arith.constant dense<0.000000e+00> : vector<16xf32>
    %16 = vector.multi_reduction <add>, %15, %cst_12 [1] : vector<16x16xf32> to vector<16xf32>
    %17 = vector.shape_cast %16 : vector<16xf32> to vector<16x1xf32>
    %18 = vector.extract_strided_slice %6 {offsets = [0, 0], sizes = [16, 1], strides = [1, 1]} : vector<16x3xf32> to vector<16x1xf32>
    %19 = arith.addf %17, %18 : vector<16x1xf32>
    %20 = vector.extract_strided_slice %19 {offsets = [0, 0], sizes = [8, 1], strides = [1, 1]} : vector<16x1xf32> to vector<8x1xf32>
    %21 = vector.extract_strided_slice %19 {offsets = [8, 0], sizes = [8, 1], strides = [1, 1]} : vector<16x1xf32> to vector<8x1xf32>
    %c0_13 = arith.constant 0 : index
    %c0_14 = arith.constant 0 : index
    %22 = vector.load %arg5[%c0_13, %c0_14] : memref<8x1280xf32, #tpu.memory_space<vmem>>, vector<8x1280xf32>
    %23 = vector.broadcast %0 : vector<1x1280xf32> to vector<8x1280xf32>
    %24 = arith.mulf %22, %23 : vector<8x1280xf32>
    %cst_15 = arith.constant dense<0.000000e+00> : vector<8xf32>
    %25 = vector.multi_reduction <add>, %24, %cst_15 [1] : vector<8x1280xf32> to vector<8xf32>
    %26 = vector.shape_cast %25 : vector<8xf32> to vector<8x1xf32>
    %cst_16 = arith.constant 0.001953125 : f32
    %27 = vector.broadcast %cst_16 : f32 to vector<8x1xf32>
    %28 = arith.mulf %26, %27 : vector<8x1xf32>
    %29 = vector.broadcast %28 : vector<8x1xf32> to vector<8x1280xf32>
    %30 = arith.subf %22, %29 : vector<8x1280xf32>
    %31 = arith.mulf %30, %30 : vector<8x1280xf32>
    %32 = vector.broadcast %0 : vector<1x1280xf32> to vector<8x1280xf32>
    %33 = arith.mulf %31, %32 : vector<8x1280xf32>
    %cst_17 = arith.constant dense<0.000000e+00> : vector<8xf32>
    %34 = vector.multi_reduction <add>, %33, %cst_17 [1] : vector<8x1280xf32> to vector<8xf32>
    %35 = vector.shape_cast %34 : vector<8xf32> to vector<8x1xf32>
    %cst_18 = arith.constant 0.001953125 : f32
    %36 = vector.broadcast %cst_18 : f32 to vector<8x1xf32>
    %37 = arith.mulf %35, %36 : vector<8x1xf32>
    %cst_19 = arith.constant 9.99999974E-6 : f32
    %38 = vector.broadcast %cst_19 : f32 to vector<8x1xf32>
    %39 = arith.addf %37, %38 : vector<8x1xf32>
    %40 = math.rsqrt %39 : vector<8x1xf32>
    %41 = vector.broadcast %40 : vector<8x1xf32> to vector<8x1280xf32>
    %42 = arith.mulf %30, %41 : vector<8x1280xf32>
    %43 = vector.broadcast %1 : vector<1x1280xf32> to vector<8x1280xf32>
    %44 = arith.mulf %42, %43 : vector<8x1280xf32>
    %45 = vector.broadcast %2 : vector<1x1280xf32> to vector<8x1280xf32>
    %46 = arith.addf %44, %45 : vector<8x1280xf32>
    %cst_20 = arith.constant 1.000000e+00 : f32
    %47 = vector.broadcast %cst_20 : f32 to vector<8x1xf32>
    %48 = arith.addf %20, %47 : vector<8x1xf32>
    %49 = vector.broadcast %48 : vector<8x1xf32> to vector<8x1280xf32>
    %50 = arith.mulf %46, %49 : vector<8x1280xf32>
    %51 = vector.broadcast %21 : vector<8x1xf32> to vector<8x1280xf32>
    %52 = arith.addf %50, %51 : vector<8x1280xf32>
    %cst_21 = arith.constant 0.000000e+00 : f32
    %53 = vector.broadcast %cst_21 : f32 to vector<8x1280xf32>
    %54 = arith.maximumf %52, %53 : vector<8x1280xf32>
    %55 = vector.broadcast %0 : vector<1x1280xf32> to vector<8x1280xf32>
    %56 = arith.mulf %54, %55 : vector<8x1280xf32>
    %57 = vector.extract_strided_slice %56 {offsets = [0, 17], sizes = [8, 1024], strides = [1, 1]} : vector<8x1280xf32> to vector<8x1024xf32>
    %c0_22 = arith.constant 0 : index
    %c0_23 = arith.constant 0 : index
    %58 = vector.load %arg10[%c0_22, %c0_23] : memref<216x1024xf32, #tpu.memory_space<vmem>>, vector<8x1024xf32>
    tpu.vector_store %arg10[%c0_22, %c0_23], %57 {strides = array<i32>} : memref<216x1024xf32, #tpu.memory_space<vmem>>, vector<8x1024xf32>,
    %59 = vector.extract_strided_slice %56 {offsets = [0, 18], sizes = [8, 1024], strides = [1, 1]} : vector<8x1280xf32> to vector<8x1024xf32>
    %c8 = arith.constant 8 : index
    %c0_24 = arith.constant 0 : index
    %60 = vector.load %arg10[%c8, %c0_24] : memref<216x1024xf32, #tpu.memory_space<vmem>>, vector<8x1024xf32>
    tpu.vector_store %arg10[%c8, %c0_24], %59 {strides = array<i32>} : memref<216x1024xf32, #tpu.memory_space<vmem>>, vector<8x1024xf32>,
    %61 = vector.extract_strided_slice %56 {offsets = [0, 19], sizes = [8, 1024], strides = [1, 1]} : vector<8x1280xf32> to vector<8x1024xf32>
    %c16 = arith.constant 16 : index
    %c0_25 = arith.constant 0 : index
    %62 = vector.load %arg10[%c16, %c0_25] : memref<216x1024xf32, #tpu.memory_space<vmem>>, vector<8x1024xf32>
    tpu.vector_store %arg10[%c16, %c0_25], %61 {strides = array<i32>} : memref<216x1024xf32, #tpu.memory_space<vmem>>, vector<8x1024xf32>,
    %63 = vector.extract_strided_slice %56 {offsets = [0, 27], sizes = [8, 1024], strides = [1, 1]} : vector<8x1280xf32> to vector<8x1024xf32>
    %c24 = arith.constant 24 : index
    %c0_26 = arith.constant 0 : index
    %64 = vector.load %arg10[%c24, %c0_26] : memref<216x1024xf32, #tpu.memory_space<vmem>>, vector<8x1024xf32>
    tpu.vector_store %arg10[%c24, %c0_26], %63 {strides = array<i32>} : memref<216x1024xf32, #tpu.memory_space<vmem>>, vector<8x1024xf32>,
    %65 = vector.extract_strided_slice %56 {offsets = [0, 28], sizes = [8, 1024], strides = [1, 1]} : vector<8x1280xf32> to vector<8x1024xf32>
    %c32 = arith.constant 32 : index
    %c0_27 = arith.constant 0 : index
    %66 = vector.load %arg10[%c32, %c0_27] : memref<216x1024xf32, #tpu.memory_space<vmem>>, vector<8x1024xf32>
    tpu.vector_store %arg10[%c32, %c0_27], %65 {strides = array<i32>} : memref<216x1024xf32, #tpu.memory_space<vmem>>, vector<8x1024xf32>,
    %67 = vector.extract_strided_slice %56 {offsets = [0, 29], sizes = [8, 1024], strides = [1, 1]} : vector<8x1280xf32> to vector<8x1024xf32>
    %c40 = arith.constant 40 : index
    %c0_28 = arith.constant 0 : index
    %68 = vector.load %arg10[%c40, %c0_28] : memref<216x1024xf32, #tpu.memory_space<vmem>>, vector<8x1024xf32>
    tpu.vector_store %arg10[%c40, %c0_28], %67 {strides = array<i32>} : memref<216x1024xf32, #tpu.memory_space<vmem>>, vector<8x1024xf32>,
    %69 = vector.extract_strided_slice %56 {offsets = [0, 37], sizes = [8, 1024], strides = [1, 1]} : vector<8x1280xf32> to vector<8x1024xf32>
    %c48 = arith.constant 48 : index
    %c0_29 = arith.constant 0 : index
    %70 = vector.load %arg10[%c48, %c0_29] : memref<216x1024xf32, #tpu.memory_space<vmem>>, vector<8x1024xf32>
    tpu.vector_store %arg10[%c48, %c0_29], %69 {strides = array<i32>} : memref<216x1024xf32, #tpu.memory_space<vmem>>, vector<8x1024xf32>,
    %71 = vector.extract_strided_slice %56 {offsets = [0, 38], sizes = [8, 1024], strides = [1, 1]} : vector<8x1280xf32> to vector<8x1024xf32>
    %c56 = arith.constant 56 : index
    %c0_30 = arith.constant 0 : index
    %72 = vector.load %arg10[%c56, %c0_30] : memref<216x1024xf32, #tpu.memory_space<vmem>>, vector<8x1024xf32>
    tpu.vector_store %arg10[%c56, %c0_30], %71 {strides = array<i32>} : memref<216x1024xf32, #tpu.memory_space<vmem>>, vector<8x1024xf32>,
    %73 = vector.extract_strided_slice %56 {offsets = [0, 39], sizes = [8, 1024], strides = [1, 1]} : vector<8x1280xf32> to vector<8x1024xf32>
    %c64 = arith.constant 64 : index
    %c0_31 = arith.constant 0 : index
    %74 = vector.load %arg10[%c64, %c0_31] : memref<216x1024xf32, #tpu.memory_space<vmem>>, vector<8x1024xf32>
    tpu.vector_store %arg10[%c64, %c0_31], %73 {strides = array<i32>} : memref<216x1024xf32, #tpu.memory_space<vmem>>, vector<8x1024xf32>,
    %75 = vector.extract_strided_slice %56 {offsets = [0, 117], sizes = [8, 1024], strides = [1, 1]} : vector<8x1280xf32> to vector<8x1024xf32>
    %c72 = arith.constant 72 : index
    %c0_32 = arith.constant 0 : index
    %76 = vector.load %arg10[%c72, %c0_32] : memref<216x1024xf32, #tpu.memory_space<vmem>>, vector<8x1024xf32>
    tpu.vector_store %arg10[%c72, %c0_32], %75 {strides = array<i32>} : memref<216x1024xf32, #tpu.memory_space<vmem>>, vector<8x1024xf32>,
    %77 = vector.extract_strided_slice %56 {offsets = [0, 118], sizes = [8, 1024], strides = [1, 1]} : vector<8x1280xf32> to vector<8x1024xf32>
    %c80 = arith.constant 80 : index
    %c0_33 = arith.constant 0 : index
    %78 = vector.load %arg10[%c80, %c0_33] : memref<216x1024xf32, #tpu.memory_space<vmem>>, vector<8x1024xf32>
    tpu.vector_store %arg10[%c80, %c0_33], %77 {strides = array<i32>} : memref<216x1024xf32, #tpu.memory_space<vmem>>, vector<8x1024xf32>,
    %79 = vector.extract_strided_slice %56 {offsets = [0, 119], sizes = [8, 1024], strides = [1, 1]} : vector<8x1280xf32> to vector<8x1024xf32>
    %c88 = arith.constant 88 : index
    %c0_34 = arith.constant 0 : index
    %80 = vector.load %arg10[%c88, %c0_34] : memref<216x1024xf32, #tpu.memory_space<vmem>>, vector<8x1024xf32>
    tpu.vector_store %arg10[%c88, %c0_34], %79 {strides = array<i32>} : memref<216x1024xf32, #tpu.memory_space<vmem>>, vector<8x1024xf32>,
    %81 = vector.extract_strided_slice %56 {offsets = [0, 127], sizes = [8, 1024], strides = [1, 1]} : vector<8x1280xf32> to vector<8x1024xf32>
    %c96 = arith.constant 96 : index
    %c0_35 = arith.constant 0 : index
    %82 = vector.load %arg10[%c96, %c0_35] : memref<216x1024xf32, #tpu.memory_space<vmem>>, vector<8x1024xf32>
    tpu.vector_store %arg10[%c96, %c0_35], %81 {strides = array<i32>} : memref<216x1024xf32, #tpu.memory_space<vmem>>, vector<8x1024xf32>,
    %83 = vector.extract_strided_slice %56 {offsets = [0, 128], sizes = [8, 1024], strides = [1, 1]} : vector<8x1280xf32> to vector<8x1024xf32>
    %c104 = arith.constant 104 : index
    %c0_36 = arith.constant 0 : index
    %84 = vector.load %arg10[%c104, %c0_36] : memref<216x1024xf32, #tpu.memory_space<vmem>>, vector<8x1024xf32>
    tpu.vector_store %arg10[%c104, %c0_36], %83 {strides = array<i32>} : memref<216x1024xf32, #tpu.memory_space<vmem>>, vector<8x1024xf32>,
    %85 = vector.extract_strided_slice %56 {offsets = [0, 129], sizes = [8, 1024], strides = [1, 1]} : vector<8x1280xf32> to vector<8x1024xf32>
    %c112 = arith.constant 112 : index
    %c0_37 = arith.constant 0 : index
    %86 = vector.load %arg10[%c112, %c0_37] : memref<216x1024xf32, #tpu.memory_space<vmem>>, vector<8x1024xf32>
    tpu.vector_store %arg10[%c112, %c0_37], %85 {strides = array<i32>} : memref<216x1024xf32, #tpu.memory_space<vmem>>, vector<8x1024xf32>,
    %87 = vector.extract_strided_slice %56 {offsets = [0, 137], sizes = [8, 1024], strides = [1, 1]} : vector<8x1280xf32> to vector<8x1024xf32>
    %c120 = arith.constant 120 : index
    %c0_38 = arith.constant 0 : index
    %88 = vector.load %arg10[%c120, %c0_38] : memref<216x1024xf32, #tpu.memory_space<vmem>>, vector<8x1024xf32>
    tpu.vector_store %arg10[%c120, %c0_38], %87 {strides = array<i32>} : memref<216x1024xf32, #tpu.memory_space<vmem>>, vector<8x1024xf32>,
    %89 = vector.extract_strided_slice %56 {offsets = [0, 138], sizes = [8, 1024], strides = [1, 1]} : vector<8x1280xf32> to vector<8x1024xf32>
    %c128_39 = arith.constant 128 : index
    %c0_40 = arith.constant 0 : index
    %90 = vector.load %arg10[%c128_39, %c0_40] : memref<216x1024xf32, #tpu.memory_space<vmem>>, vector<8x1024xf32>
    tpu.vector_store %arg10[%c128_39, %c0_40], %89 {strides = array<i32>} : memref<216x1024xf32, #tpu.memory_space<vmem>>, vector<8x1024xf32>,
    %91 = vector.extract_strided_slice %56 {offsets = [0, 139], sizes = [8, 1024], strides = [1, 1]} : vector<8x1280xf32> to vector<8x1024xf32>
    %c136 = arith.constant 136 : index
    %c0_41 = arith.constant 0 : index
    %92 = vector.load %arg10[%c136, %c0_41] : memref<216x1024xf32, #tpu.memory_space<vmem>>, vector<8x1024xf32>
    tpu.vector_store %arg10[%c136, %c0_41], %91 {strides = array<i32>} : memref<216x1024xf32, #tpu.memory_space<vmem>>, vector<8x1024xf32>,
    %93 = vector.extract_strided_slice %56 {offsets = [0, 217], sizes = [8, 1024], strides = [1, 1]} : vector<8x1280xf32> to vector<8x1024xf32>
    %c144 = arith.constant 144 : index
    %c0_42 = arith.constant 0 : index
    %94 = vector.load %arg10[%c144, %c0_42] : memref<216x1024xf32, #tpu.memory_space<vmem>>, vector<8x1024xf32>
    tpu.vector_store %arg10[%c144, %c0_42], %93 {strides = array<i32>} : memref<216x1024xf32, #tpu.memory_space<vmem>>, vector<8x1024xf32>,
    %95 = vector.extract_strided_slice %56 {offsets = [0, 218], sizes = [8, 1024], strides = [1, 1]} : vector<8x1280xf32> to vector<8x1024xf32>
    %c152 = arith.constant 152 : index
    %c0_43 = arith.constant 0 : index
    %96 = vector.load %arg10[%c152, %c0_43] : memref<216x1024xf32, #tpu.memory_space<vmem>>, vector<8x1024xf32>
    tpu.vector_store %arg10[%c152, %c0_43], %95 {strides = array<i32>} : memref<216x1024xf32, #tpu.memory_space<vmem>>, vector<8x1024xf32>,
    %97 = vector.extract_strided_slice %56 {offsets = [0, 219], sizes = [8, 1024], strides = [1, 1]} : vector<8x1280xf32> to vector<8x1024xf32>
    %c160 = arith.constant 160 : index
    %c0_44 = arith.constant 0 : index
    %98 = vector.load %arg10[%c160, %c0_44] : memref<216x1024xf32, #tpu.memory_space<vmem>>, vector<8x1024xf32>
    tpu.vector_store %arg10[%c160, %c0_44], %97 {strides = array<i32>} : memref<216x1024xf32, #tpu.memory_space<vmem>>, vector<8x1024xf32>,
    %99 = vector.extract_strided_slice %56 {offsets = [0, 227], sizes = [8, 1024], strides = [1, 1]} : vector<8x1280xf32> to vector<8x1024xf32>
    %c168 = arith.constant 168 : index
    %c0_45 = arith.constant 0 : index
    %100 = vector.load %arg10[%c168, %c0_45] : memref<216x1024xf32, #tpu.memory_space<vmem>>, vector<8x1024xf32>
    tpu.vector_store %arg10[%c168, %c0_45], %99 {strides = array<i32>} : memref<216x1024xf32, #tpu.memory_space<vmem>>, vector<8x1024xf32>,
    %101 = vector.extract_strided_slice %56 {offsets = [0, 228], sizes = [8, 1024], strides = [1, 1]} : vector<8x1280xf32> to vector<8x1024xf32>
    %c176 = arith.constant 176 : index
    %c0_46 = arith.constant 0 : index
    %102 = vector.load %arg10[%c176, %c0_46] : memref<216x1024xf32, #tpu.memory_space<vmem>>, vector<8x1024xf32>
    tpu.vector_store %arg10[%c176, %c0_46], %101 {strides = array<i32>} : memref<216x1024xf32, #tpu.memory_space<vmem>>, vector<8x1024xf32>,
    %103 = vector.extract_strided_slice %56 {offsets = [0, 229], sizes = [8, 1024], strides = [1, 1]} : vector<8x1280xf32> to vector<8x1024xf32>
    %c184 = arith.constant 184 : index
    %c0_47 = arith.constant 0 : index
    %104 = vector.load %arg10[%c184, %c0_47] : memref<216x1024xf32, #tpu.memory_space<vmem>>, vector<8x1024xf32>
    tpu.vector_store %arg10[%c184, %c0_47], %103 {strides = array<i32>} : memref<216x1024xf32, #tpu.memory_space<vmem>>, vector<8x1024xf32>,
    %105 = vector.extract_strided_slice %56 {offsets = [0, 237], sizes = [8, 1024], strides = [1, 1]} : vector<8x1280xf32> to vector<8x1024xf32>
    %c192 = arith.constant 192 : index
    %c0_48 = arith.constant 0 : index
    %106 = vector.load %arg10[%c192, %c0_48] : memref<216x1024xf32, #tpu.memory_space<vmem>>, vector<8x1024xf32>
    tpu.vector_store %arg10[%c192, %c0_48], %105 {strides = array<i32>} : memref<216x1024xf32, #tpu.memory_space<vmem>>, vector<8x1024xf32>,
    %107 = vector.extract_strided_slice %56 {offsets = [0, 238], sizes = [8, 1024], strides = [1, 1]} : vector<8x1280xf32> to vector<8x1024xf32>
    %c200 = arith.constant 200 : index
    %c0_49 = arith.constant 0 : index
    %108 = vector.load %arg10[%c200, %c0_49] : memref<216x1024xf32, #tpu.memory_space<vmem>>, vector<8x1024xf32>
    tpu.vector_store %arg10[%c200, %c0_49], %107 {strides = array<i32>} : memref<216x1024xf32, #tpu.memory_space<vmem>>, vector<8x1024xf32>,
    %109 = vector.extract_strided_slice %56 {offsets = [0, 239], sizes = [8, 1024], strides = [1, 1]} : vector<8x1280xf32> to vector<8x1024xf32>
    %c208 = arith.constant 208 : index
    %c0_50 = arith.constant 0 : index
    %110 = vector.load %arg10[%c208, %c0_50] : memref<216x1024xf32, #tpu.memory_space<vmem>>, vector<8x1024xf32>
    tpu.vector_store %arg10[%c208, %c0_50], %109 {strides = array<i32>} : memref<216x1024xf32, #tpu.memory_space<vmem>>, vector<8x1024xf32>,
    %c0_51 = arith.constant 0 : index
    %c0_52 = arith.constant 0 : index
    %111 = vector.load %arg6[%c0_51, %c0_52] : memref<16x216xf32, #tpu.memory_space<vmem>>, vector<16x216xf32>
    %c0_53 = arith.constant 0 : index
    %c0_54 = arith.constant 0 : index
    %112 = vector.load %arg10[%c0_53, %c0_54] : memref<216x1024xf32, #tpu.memory_space<vmem>>, vector<216x1024xf32>
    %cst_55 = arith.constant dense<0.000000e+00> : vector<16x1024xf32>
    %113 = tpu.matmul %111, %112, %cst_55 {dimension_numbers = #tpu.dot_dimension_numbers<[1], [0], [0], [1], [0, 0, 1, 1], [], []>} : vector<16x216xf32>, vector<216x1024xf32>, vector<16x1024xf32> -> vector<16x1024xf32>
    %114 = vector.extract_strided_slice %6 {offsets = [0, 1], sizes = [16, 1], strides = [1, 1]} : vector<16x3xf32> to vector<16x1xf32>
    %115 = vector.broadcast %114 : vector<16x1xf32> to vector<16x1024xf32>
    %116 = arith.addf %113, %115 : vector<16x1024xf32>
    %117 = vector.broadcast %5 : vector<1x1024xf32> to vector<16x1024xf32>
    %118 = arith.mulf %116, %117 : vector<16x1024xf32>
    %cst_56 = arith.constant dense<0.000000e+00> : vector<16xf32>
    %119 = vector.multi_reduction <add>, %118, %cst_56 [1] : vector<16x1024xf32> to vector<16xf32>
    %120 = vector.shape_cast %119 : vector<16xf32> to vector<16x1xf32>
    %cst_57 = arith.constant 0.001953125 : f32
    %121 = vector.broadcast %cst_57 : f32 to vector<16x1xf32>
    %122 = arith.mulf %120, %121 : vector<16x1xf32>
    %123 = vector.broadcast %122 : vector<16x1xf32> to vector<16x1024xf32>
    %124 = arith.subf %116, %123 : vector<16x1024xf32>
    %125 = arith.mulf %124, %124 : vector<16x1024xf32>
    %126 = vector.broadcast %5 : vector<1x1024xf32> to vector<16x1024xf32>
    %127 = arith.mulf %125, %126 : vector<16x1024xf32>
    %cst_58 = arith.constant dense<0.000000e+00> : vector<16xf32>
    %128 = vector.multi_reduction <add>, %127, %cst_58 [1] : vector<16x1024xf32> to vector<16xf32>
    %129 = vector.shape_cast %128 : vector<16xf32> to vector<16x1xf32>
    %cst_59 = arith.constant 0.001953125 : f32
    %130 = vector.broadcast %cst_59 : f32 to vector<16x1xf32>
    %131 = arith.mulf %129, %130 : vector<16x1xf32>
    %cst_60 = arith.constant 9.99999974E-6 : f32
    %132 = vector.broadcast %cst_60 : f32 to vector<16x1xf32>
    %133 = arith.addf %131, %132 : vector<16x1xf32>
    %134 = math.rsqrt %133 : vector<16x1xf32>
    %135 = vector.broadcast %134 : vector<16x1xf32> to vector<16x1024xf32>
    %136 = arith.mulf %124, %135 : vector<16x1024xf32>
    %137 = vector.broadcast %3 : vector<1x1024xf32> to vector<16x1024xf32>
    %138 = arith.mulf %136, %137 : vector<16x1024xf32>
    %139 = vector.broadcast %4 : vector<1x1024xf32> to vector<16x1024xf32>
    %140 = arith.addf %138, %139 : vector<16x1024xf32>
    %cst_61 = arith.constant 0.000000e+00 : f32
    %141 = vector.broadcast %cst_61 : f32 to vector<16x1024xf32>
    %142 = arith.maximumf %140, %141 : vector<16x1024xf32>
    %143 = vector.extract_strided_slice %22 {offsets = [0, 128], sizes = [8, 1024], strides = [1, 1]} : vector<8x1280xf32> to vector<8x1024xf32>
    %c0_62 = arith.constant 0 : index
    %c0_63 = arith.constant 0 : index
    %144 = vector.load %arg7[%c0_62, %c0_63] : memref<16x16xf32, #tpu.memory_space<vmem>>, vector<16x16xf32>
    %cst_64 = arith.constant dense<0.000000e+00> : vector<16x1024xf32>
    %145 = tpu.matmul %144, %142, %cst_64 {dimension_numbers = #tpu.dot_dimension_numbers<[1], [0], [0], [1], [0, 0, 1, 1], [], []>} : vector<16x16xf32>, vector<16x1024xf32>, vector<16x1024xf32> -> vector<16x1024xf32>
    %c0_65 = arith.constant 0 : index
    %c0_66 = arith.constant 0 : index
    %146 = vector.load %arg8[%c0_65, %c0_66] : memref<16x8xf32, #tpu.memory_space<vmem>>, vector<16x8xf32>
    %cst_67 = arith.constant dense<0.000000e+00> : vector<16x1024xf32>
    %147 = tpu.matmul %146, %143, %cst_67 {dimension_numbers = #tpu.dot_dimension_numbers<[1], [0], [0], [1], [0, 0, 1, 1], [], []>} : vector<16x8xf32>, vector<8x1024xf32>, vector<16x1024xf32> -> vector<16x1024xf32>
    %148 = arith.addf %145, %147 : vector<16x1024xf32>
    %149 = vector.extract_strided_slice %6 {offsets = [0, 2], sizes = [16, 1], strides = [1, 1]} : vector<16x3xf32> to vector<16x1xf32>
    %150 = vector.broadcast %149 : vector<16x1xf32> to vector<16x1024xf32>
    %151 = arith.addf %148, %150 : vector<16x1024xf32>
    %c0_68 = arith.constant 0 : index
    %c0_69 = arith.constant 0 : index
    %152 = vector.load %arg9[%c0_68, %c0_69] : memref<16x1024xf32, #tpu.memory_space<vmem>>, vector<16x1024xf32>
    tpu.vector_store %arg9[%c0_68, %c0_69], %151 {strides = array<i32>} : memref<16x1024xf32, #tpu.memory_space<vmem>>, vector<16x1024xf32>,
    return
  }
  func.func @transform_0(%arg0: i32) -> (i32, i32) {
    %c0_i32 = arith.constant 0 : i32
    %c0_i32_0 = arith.constant 0 : i32
    %c0_i32_1 = arith.constant 0 : i32
    return %c0_i32, %c0_i32_0 : i32, i32
  }
  func.func @transform_1(%arg0: i32) -> (i32, i32) {
    %c0_i32 = arith.constant 0 : i32
    %c0_i32_0 = arith.constant 0 : i32
    %c0_i32_1 = arith.constant 0 : i32
    return %c0_i32, %c0_i32_0 : i32, i32
  }
  func.func @transform_2(%arg0: i32) -> (i32, i32) {
    %c0_i32 = arith.constant 0 : i32
    %c0_i32_0 = arith.constant 0 : i32
    %c0_i32_1 = arith.constant 0 : i32
    return %c0_i32, %c0_i32_0 : i32, i32
  }
  func.func @transform_3(%arg0: i32) -> (i32, i32) {
    %c0_i32 = arith.constant 0 : i32
    %c0_i32_0 = arith.constant 0 : i32
    %c0_i32_1 = arith.constant 0 : i32
    return %c0_i32, %c0_i32_0 : i32, i32
  }
  func.func @transform_4(%arg0: i32) -> (i32, i32) {
    %c0_i32 = arith.constant 0 : i32
    %c0_i32_0 = arith.constant 0 : i32
    %c0_i32_1 = arith.constant 0 : i32
    return %c0_i32, %c0_i32_0 : i32, i32
  }
  func.func @transform_5(%arg0: i32) -> (i32, i32) {
    %c0_i32 = arith.constant 0 : i32
    %c0_i32_0 = arith.constant 0 : i32
    %c0_i32_1 = arith.constant 0 : i32
    return %c0_i32, %c0_i32_0 : i32, i32
  }
  func.func @transform_6(%arg0: i32) -> (i32, i32) {
    %c0_i32 = arith.constant 0 : i32
    %c0_i32_0 = arith.constant 0 : i32
    %c0_i32_1 = arith.constant 0 : i32
    return %c0_i32, %c0_i32_0 : i32, i32
  }
  func.func @transform_7(%arg0: i32) -> (i32, i32) {
    %c0_i32 = arith.constant 0 : i32
    %c0_i32_0 = arith.constant 0 : i32
    %c0_i32_1 = arith.constant 0 : i32
    return %c0_i32, %c0_i32_0 : i32, i32
  }
  func.func @transform_8(%arg0: i32) -> (i32, i32) {
    %c0_i32 = arith.constant 0 : i32
    %c0_i32_0 = arith.constant 0 : i32
    %c0_i32_1 = arith.constant 0 : i32
    return %c0_i32, %c0_i32_0 : i32, i32
  }
}

</mosaic_0001>

<bundles_post_ra>
// kernel: tile.58
= control target key start
LH: loop header
LB: loop body
LE: loop exit
PB: predicated region body
PF: predicated region fallthrough
CT: control target
= control target key end

     0   :  { %s22_s0 = inlined_call_operand.vmem [shape: f32[8], index: 0, kind: input, shape index: {}]   ;;  %s23_s1 = inlined_call_operand.vmem [shape: f32[2,8], index: 1, kind: output, shape index: {}]  }
   0x1   :  { %v4_v0 = vld [vmem:[%s22_s0] ss:$0 sm:$0xff] }
   0x2   :  { %5 = vst [vmem:[%s23_s1] sm:$0x3] %v4_v0 }

// kernel: tile.53
= control target key start
LH: loop header
LB: loop body
LE: loop exit
PB: predicated region body
PF: predicated region fallthrough
CT: control target
= control target key end

     0   :  { %2 = vsyncpa [#allocation1], 0  ;;  %s44_s6 = smov [#allocation0]   ;;  %s70_s0 = inlined_call_operand.hbm [shape: f32[8], index: 0, kind: input, shape index: {}]   ;;  %s71_s1 = inlined_call_operand.vmem [shape: f32[2,8], index: 1, kind: output, shape index: {}]  }
   0x1   :  { %s9_s7 = sshll.u32 %s44_s6, 4  ;;  %s20_s10 = scalar_lea.hbm %s70_s0, 16  ;;  %s10_s7 = int_to_ptr.vmem [resolvable:$true] %s9_s7 }
   0x2   :  { %p21_p0 = scmp.ne.s32.totalorder %s70_s0, %s20_s10  ;;  %p24_p1 = scmp.lt.u32.totalorder %s20_s10, %s70_s0 }
   0x4   :  { %p26_p2 = pnand %p24_p1, %p21_p0 }
   0x6   :  { %29 = shalt.err (!%p26_p2)
}
   0x7   :  { %s30_s15 = scalar_lea.vmem %s10_s7, 16  ;;  %s34_s16 = scalar_lea.vmem %s10_s7, 32 }
   0x8   :  { %p31_p3 = scmp.ne.s32.totalorder %s10_s7, %s30_s15  ;;  %p35_p4 = scmp.lt.s32.totalorder %s10_s7, %s10_s7 }
   0x9   :  { %p36_p5 = scmp.lt.s32.totalorder %s34_s16, %s30_s15 }
   0xb   :  { %p37_p6 = por %p36_p5, %p35_p4 }
   0xd   :  { %p38_p7 = pnand %p37_p6, %p31_p3 }
   0xf   :  { %41 = shalt.err (!%p38_p7)
}
  0x10   :  { %12 = dma.hbm_to_vmem [thread:$0]  %s70_s0, 16, %s10_s7, [#allocation1]  }
  0x11   :  { %42 = dma.done.wait [#allocation1], 16  }
  0x12   :  { %43 = vsyncadd [#allocation1], 4294967280  ;;  %v16_v0 = vld [vmem:[#allocation0] ss:$0 sm:$0xff] }
  0x13   :  { %17 = vst [vmem:[%s71_s1] sm:$0x3] %v16_v0 }
  0x14   :  { %18 = vsyncpa [#allocation1], 1 }

// kernel: tile.43
= control target key start
LH: loop header
LB: loop body
LE: loop exit
PB: predicated region body
PF: predicated region fallthrough
CT: control target
= control target key end

     0   :  { %s22_s0 = inlined_call_operand.vmem [shape: f32[4], index: 0, kind: input, shape index: {}]   ;;  %s23_s1 = inlined_call_operand.vmem [shape: f32[2,4], index: 1, kind: output, shape index: {}]  }
   0x1   :  { %v4_v0 = vld [vmem:[%s22_s0] ss:$0 sm:$0xff] }
   0x2   :  { %5 = vst [vmem:[%s23_s1] sm:$0x3] %v4_v0 }

// kernel: tile.44
= control target key start
LH: loop header
LB: loop body
LE: loop exit
PB: predicated region body
PF: predicated region fallthrough
CT: control target
= control target key end

     0   :  { %vm7_vm0 = vcmask 31744   ;;  %vm13_vm1 = vcmask 64544   ;;  %s39_s0 = inlined_call_operand.vmem [shape: f32[2,4], index: 0, kind: input, shape index: {}]   ;;  %s40_s1 = inlined_call_operand.vmem [shape: f32[8], index: 1, kind: output, shape index: {}]  }
   0x1   :  { %v4_v0 = vld [vmem:[%s39_s0] sm:$0x3]  ;;  %s22_s0 = smov 4  }
   0x2   :  { %5 = vst [vmem:[#allocation1] sm:$0x3] %v4_v0 }
   0x9   :  { %v10_v1 = vld [vmem:[#allocation1 + $0x1] sm:$0x1]   ;;  %v6_v2 = vld [vmem:[#allocation1] sm:$0x1]  }
   0xa   :  { %11 = vrot.lane.b32.xlu0 %v10_v1, %s22_s0  ;;  %8 = vst.msk [vmem:[#allocation0] sm:$0x1] %vm7_vm0, %v6_v2  }
  0x7c   :  { %v12_v3 = vpop.permute.xlu0 %11  }
  0x7d   :  { %14 = vst.msk [vmem:[#allocation0] sm:$0x1] %vm13_vm1, %v12_v3  }
  0x84   :  { %v18_v4 = vld [vmem:[#allocation0] sm:$0x1] }
  0x85   :  { %20 = vst [vmem:[%s40_s1] sm:$0x1] %v18_v4 }

// kernel: residual_block.1
= control target key start
LH: loop header
LB: loop body
LE: loop exit
PB: predicated region body
PF: predicated region fallthrough
CT: control target
= control target key end

     0   :  { %v101_v0 = vlaneseq  ;;  %vm5599_vm0 = vcmask 130048   ;;  %s3897_s26 = smov 101   ;;  %s3898_s27 = smov 111   ;;  %vm429_vm1 = vcmask 908288   ;;  %vm472_vm2 = vcmask 900096   ;;  %s5561_s3 = inlined_call_operand.vmem [shape: f32[8,1280], index: 3, kind: input, shape index: {}]   ;;  %s5562_s4 = inlined_call_operand.vmem [shape: f32[8,1280], index: 4, kind: input, shape index: {}]   ;;  %s5563_s0 = inlined_call_operand.vmem [shape: f32[16,16], index: 0, kind: input, shape index: {}]   ;;  %s5564_s1 = inlined_call_operand.vmem [shape: f32[16,16], index: 1, kind: input, shape index: {}]   ;;  %s5565_s2 = inlined_call_operand.vmem [shape: f32[16,3], index: 2, kind: input, shape index: {}]   ;;  %s5566_s5 = inlined_call_operand.vmem [shape: f32[16,216], index: 5, kind: input, shape index: {}]   ;;  %s5567_s7 = inlined_call_operand.vmem [shape: f32[16,8], index: 7, kind: input, shape index: {}]   ;;  %s5568_s6 = inlined_call_operand.vmem [shape: f32[16,16], index: 6, kind: input, shape index: {}]   ;;  %s5569_s8 = inlined_call_operand.vmem [shape: f32[16,1024], index: 8, kind: output, shape index: {}]  }
   0x1   :  { %v29_v1 = vld [vmem:[%s5561_s3] ss:$8 sm:$0xf]  ;;  %s3899_s28 = smov 110   ;;  %s3900_s29 = smov 99   ;;  %vm558_vm3 = vcmask 826368  }
   0x2   :  { %v30_v2 = vld [vmem:[%s5561_s3] ss:$8 sm:$0xf0]  ;;  %v102_v4 = vshrl.u32 %v101_v0, 7  ;;  %s3901_s30 = smov 90   ;;  %s3902_s9 = smov 109  }
   0x3   :  { %v31_v3 = vor.u32 %v30_v2, %v29_v1  ;;  %v3986_v8 = vld [vmem:[%s5562_s4] sm:$0xff]  ;;  %v3995_v11 = vld [vmem:[%s5562_s4 + $0x8] sm:$0xff]  ;;  %v4000_v12 = vld [vmem:[%s5562_s4 + $0x10] sm:$0xff]  ;;  %s3903_s10 = smov 11   ;;  %s3904_s11 = smov 100   ;;  %vm515_vm4 = vcmask 891904  }
   0x4   :  { %v3977_v5 = vsub.s32 0, %v102_v4  ;;  %v3979_v6 = vsub.s32 1, %v102_v4  ;;  %v3981_v7 = vsub.s32 2, %v102_v4  ;;  %v3988_v9 = vsub.s32 3, %v102_v4  ;;  %v4019_v18 = vld [vmem:[%s5562_s4 + $0x18] sm:$0xff]  ;;  %v61_v20 = vld [vmem:[%s5563_s0 + $0x8] sm:$0xff] }
   0x5   :  { %v3990_v10 = vsub.s32 4, %v102_v4  ;;  %v4011_v16 = vsub.s32 5, %v102_v4  ;;  %v60_v21 = vld [vmem:[%s5563_s0] sm:$0xff]  ;;  %v4032_v23 = vsub.s32 6, %v102_v4  ;;  %v4046_v28 = vsub.s32 7, %v102_v4  ;;  %v4053_v33 = vld [vmem:[%s5562_s4 + $0x28] sm:$0xff] }
   0x6   :  { %5633 = vst [vmem:[#allocation3_spill] sm:$0xff] %v3977_v5  ;;  %5634 = vst [vmem:[#allocation4_spill] sm:$0xff] %v3979_v6  ;;  %v4003_v13 = vrot.slane %v31_v3, %v3977_v5  ;;  %v4006_v14 = vrot.slane %v31_v3, %v3979_v6  ;;  %v4009_v15 = vrot.slane %v31_v3, %v3981_v7  ;;  %v4041_v26 = vld [vmem:[%s5562_s4 + $0x20] sm:$0xff]  ;;  %v3069_v31 = vmul.f32 -1.442695, %v61_v20  ;;  %v4066_v38 = vld [vmem:[%s5562_s4 + $0x30] sm:$0xff] }
   0x7   :  { %5635 = vst [vmem:[#allocation5_spill] sm:$0xff] %v3981_v7  ;;  %5636 = vst [vmem:[#allocation6_spill] sm:$0xff] %v3988_v9  ;;  %v4014_v17 = vrot.slane %v31_v3, %v3988_v9  ;;  %v4030_v22 = vrot.slane %v31_v3, %v3990_v10  ;;  %v4044_v27 = vrot.slane %v31_v3, %v4011_v16  ;;  %v3068_v32 = vmul.f32 -1.442695, %v60_v21  ;;  %v4076_v42 = vld [vmem:[%s5562_s4 + $0x38] sm:$0xff]  ;;  %v4086_v46 = vld [vmem:[%s5562_s4 + $0x40] sm:$0xff] }
   0x8   :  { %5637 = vst [vmem:[#allocation7_spill] sm:$0xff] %v3990_v10  ;;  %5638 = vst [vmem:[#allocation8_spill] sm:$0xff] %v4011_v16  ;;  %v151_v19 = vmul.f32 %v4003_v13, %v3986_v8  ;;  %v152_v24 = vmul.f32 %v4006_v14, %v3995_v11  ;;  %v153_v25 = vmul.f32 %v4009_v15, %v4000_v12  ;;  %3870 = vpow2.f32 %v3069_v31  ;;  %v3055_v37 = vld [vmem:[%s5561_s3 + $0x40] ss:$8 sm:$0x3]  ;;  %s3905_s12 = smov 9  }
   0x9   :  { %5639 = vst [vmem:[#allocation9_spill] sm:$0xff] %v4032_v23  ;;  %5640 = vst [vmem:[#allocation10_spill] sm:$0xff] %v4046_v28  ;;  %v154_v29 = vmul.f32 %v4014_v17, %v4019_v18  ;;  %v4056_v34 = vrot.slane %v31_v3, %v4032_v23  ;;  %v155_v35 = vmul.f32 %v4030_v22, %v4041_v26  ;;  %3872 = vpow2.f32 %v3068_v32  ;;  %v4096_v50 = vld [vmem:[%s5562_s4 + $0x48] sm:$0xff]  ;;  %v76_v1 = vld [vmem:[%s5564_s1] sm:$0xff]  ;;  %s3906_s13 = smov 91   ;;  %s3907_s14 = smov 1  }
   0xa   :  { %v161_v30 = vadd.f32 %v152_v24, %v151_v19  ;;  %v4069_v39 = vrot.slane %v31_v3, %v4046_v28  ;;  %v156_v40 = vmul.f32 %v4044_v27, %v4053_v33  ;;  %v4079_v43 = vrot.slane %v3055_v37, %v3977_v5  ;;  %v77_v62 = vld [vmem:[%s5564_s1 + $0x8] sm:$0xff]  ;;  %s3908_s15 = smov 89   ;;  %s3909_s1 = smov 127  }
   0xb   :  { %v157_v44 = vmul.f32 %v4056_v34, %v4066_v38  ;;  %v4089_v47 = vrot.slane %v3055_v37, %v3979_v6  ;;  %s3910_s16 = smov 10   ;;  %s3911_s17 = smov 118   ;;  %vm644_vm5 = vcmask 809984   ;;  %vm601_vm6 = vcmask 818176  }
   0xc   :  { %v162_v36 = vadd.f32 %v161_v30, %v153_v25  ;;  %v158_v48 = vmul.f32 %v4069_v39, %v4076_v42  ;;  %v159_v51 = vmul.f32 %v4079_v43, %v4086_v46  ;;  %v3896_v25 = vmov 0   ;;  %s5576_s18 = smov 39   ;;  %s3913_s19 = smov 119  }
   0xd   :  { %v160_v54 = vmul.f32 %v4089_v47, %v4096_v50  ;;  %3364 = vset.pattern.permute.xlu1 %v3896_v25  ;;  %3365 = vset.pattern.permute.xlu0 %v3896_v25  ;;  %s5574_s20 = smov 37   ;;  %s3915_s21 = smov 117   ;;  %vm1768_vm7 = vcmask 719872   ;;  %vm730_vm8 = vcmask 736256   ;;  %vm687_vm9 = vcmask 744448  }
   0xe   :  { %v163_v41 = vadd.f32 %v162_v36, %v154_v29  ;;  %v59_v36 = vld [vmem:[%s5565_s2 + $0x8] sm:$0xff]  ;;  %s5572_s22 = smov 28   ;;  %s3917_s24 = smov 38   ;;  %vm816_vm10 = vcmask 89088   ;;  %vm773_vm11 = vcmask 728064   ;;  %vm5600_vm12 = vcmask 72704  }
   0xf   :  { %s5570_s23 = smov 19   ;;  %s3919_s25 = smov 29   ;;  %vm859_vm13 = vcmask 80896   ;;  %vm5605_vm14 = vcmask 7168   ;;  %vm5627_vm15 = vcmask 965632  }
  0x10   :  { %v164_v45 = vadd.f32 %v163_v41, %v155_v35  ;;  %s3920_s0 = smov 17  }
  0x12   :  { %v165_v49 = vadd.f32 %v164_v45, %v156_v40  ;;  %v3871_v53 = vpop.eup %3870 }
  0x13   :  { %v3873_v56 = vpop.eup %3872  ;;  %v69_v57 = vadd.f32 1.0, %v3871_v53 }
  0x14   :  { %v166_v52 = vadd.f32 %v165_v49, %v157_v44  ;;  %v68_v59 = vadd.f32 1.0, %v3873_v56 }
  0x15   :  { %3874 = vrcp.f32 %v69_v57 }
  0x16   :  { %v167_v55 = vadd.f32 %v166_v52, %v158_v48  ;;  %3876 = vrcp.f32 %v68_v59 }
  0x18   :  { %v168_v58 = vadd.f32 %v167_v55, %v159_v51 }
  0x1a   :  { %v169_v60 = vadd.f32 %v168_v58, %v160_v54 }
  0x1c   :  { %170 = vadd.xlane.f32.xlu0 %v169_v60 }
  0x1f   :  { %v3875_v61 = vpop.eup %3874 }
  0x20   :  { %v3877_v63 = vpop.eup %3876  ;;  %v75_v0 = vmul.f32 %v3875_v61, %v61_v20 }
  0x21   :  { %v74_v2 = vmul.f32 %v3877_v63, %v60_v21 }
  0x22   :  { %v79_v3 = vmul.f32 %v77_v62, %v75_v0 }
  0x23   :  { %v78_v4 = vmul.f32 %v76_v1, %v74_v2 }
  0x24   :  { %v84_v19 = vsel %vm5599_vm0, %v79_v3, 0.0 }
  0x25   :  { %85 = vadd.xlane.f32.xlu1 %v84_v19  ;;  %v81_v24 = vsel %vm5599_vm0, %v78_v4, 0.0  ;;  %vm5614_vm0 = vcmask 1039360  }
  0x26   :  { %82 = vadd.xlane.f32.xlu0 %v81_v24 }
  0xa9   :  { %v171_v29 = vpop.xlane.xlu0 %170 }
  0xaa   :  { %v172_v30 = vmul.f32 0.001953125, %v171_v29 }
  0xac   :  { %v4111_v20 = vsub.f32 %v3986_v8, %v172_v30  ;;  %v4114_v31 = vsub.f32 %v3995_v11, %v172_v30  ;;  %v4117_v21 = vsub.f32 %v4000_v12, %v172_v30  ;;  %v58_v8 = vld [vmem:[%s5565_s2] sm:$0xff]  ;;  %v4130_v11 = vsub.f32 %v4019_v18, %v172_v30 }
  0xad   :  { %v177_v51 = vsub.f32 %v4041_v26, %v172_v30  ;;  %v178_v54 = vsub.f32 %v4053_v33, %v172_v30  ;;  %v179_v58 = vsub.f32 %v4066_v38, %v172_v30  ;;  %v180_v26 = vsub.f32 %v4076_v42, %v172_v30 }
  0xae   :  { %v183_v32 = vmul.f32 %v4111_v20, %v4111_v20  ;;  %v184_v35 = vmul.f32 %v4114_v31, %v4114_v31  ;;  %v185_v40 = vmul.f32 %v4117_v21, %v4117_v21  ;;  %v186_v52 = vmul.f32 %v4130_v11, %v4130_v11 }
  0xaf   :  { %v187_v55 = vmul.f32 %v177_v51, %v177_v51  ;;  %v188_v59 = vmul.f32 %v178_v54, %v178_v54  ;;  %v189_v62 = vmul.f32 %v179_v58, %v179_v58  ;;  %v4147_v1 = vsub.f32 %v4086_v46, %v172_v30 }
  0xb0   :  { %v193_v41 = vmul.f32 %v183_v32, %v4003_v13  ;;  %v194_v44 = vmul.f32 %v184_v35, %v4006_v14  ;;  %v195_v18 = vmul.f32 %v185_v40, %v4009_v15  ;;  %v196_v56 = vmul.f32 %v186_v52, %v4014_v17  ;;  %v3059_v40 = vld [vmem:[%s5561_s3 + $0x2] ss:$8 sm:$0xf] }
  0xb1   :  { %v197_v60 = vmul.f32 %v187_v55, %v4030_v22  ;;  %v198_v63 = vmul.f32 %v188_v59, %v4044_v27  ;;  %v190_v33 = vmul.f32 %v180_v26, %v180_v26  ;;  %v199_v2 = vmul.f32 %v189_v62, %v4056_v34 }
  0xb2   :  { %v86_v37 = vpop.xlane.xlu1 %85  ;;  %v203_v53 = vadd.f32 %v194_v44, %v193_v41  ;;  %v4151_v4 = vsub.f32 %v4096_v50, %v172_v30  ;;  %v191_v38 = vmul.f32 %v4147_v1, %v4147_v1  ;;  %v3060_v41 = vld [vmem:[%s5561_s3 + $0x2] ss:$8 sm:$0xf0] }
  0xb3   :  { %v88_v12 = vadd.f32 %v86_v37, %v59_v36  ;;  %v83_v45 = vpop.xlane.xlu0 %82  ;;  %v200_v19 = vmul.f32 %v190_v33, %v4069_v39  ;;  %v3056_v37 = vld [vmem:[%s5561_s3 + $0x1] ss:$8 sm:$0xf] }
  0xb4   :  { %v87_v48 = vadd.f32 %v83_v45, %v58_v8  ;;  %v204_v57 = vadd.f32 %v203_v53, %v195_v18  ;;  %v192_v24 = vmul.f32 %v4151_v4, %v4151_v4  ;;  %v201_v25 = vmul.f32 %v191_v38, %v4079_v43 }
  0xb5   :  { %369 = vperm.xlu1 %3364, %v88_v12   ;;  %v3057_v12 = vld [vmem:[%s5561_s3 + $0x1] ss:$8 sm:$0xf0]  ;;  %v43_v45 = vor.u32 %v3060_v41, %v3059_v40 }
  0xb6   :  { %v351_v49 = vadd.f32 1.0, %v87_v48  ;;  %v205_v61 = vadd.f32 %v204_v57, %v196_v56  ;;  %v202_v29 = vmul.f32 %v192_v24, %v4089_v47  ;;  %v37_v44 = vor.u32 %v3057_v12, %v3056_v37 }
  0xb7   :  { %v294_v59 = vrot.slane %v43_v45, %v3977_v5  ;;  %v302_v62 = vrot.slane %v43_v45, %v3981_v7  ;;  %v314_v33 = vrot.slane %v43_v45, %v4011_v16 }
  0xb8   :  { %354 = vperm.xlu0 %3365, %v351_v49   ;;  %v206_v0 = vadd.f32 %v205_v61, %v197_v60  ;;  %v232_v48 = vrot.slane %v37_v44, %v3977_v5  ;;  %v236_v49 = vrot.slane %v37_v44, %v3979_v6  ;;  %v240_v52 = vrot.slane %v37_v44, %v3981_v7 }
  0xb9   :  { %v244_v18 = vrot.slane %v37_v44, %v3988_v9  ;;  %v248_v53 = vrot.slane %v37_v44, %v3990_v10  ;;  %v252_v55 = vrot.slane %v37_v44, %v4011_v16  ;;  %v256_v56 = vrot.slane %v37_v44, %v4032_v23 }
  0xba   :  { %v207_v3 = vadd.f32 %v206_v0, %v198_v63  ;;  %v260_v57 = vrot.slane %v37_v44, %v4046_v28  ;;  %v298_v60 = vrot.slane %v43_v45, %v3979_v6  ;;  %v306_v63 = vrot.slane %v43_v45, %v3988_v9 }
  0xbb   :  { %v310_v0 = vrot.slane %v43_v45, %v3990_v10 }
  0xbc   :  { %v208_v42 = vadd.f32 %v207_v3, %v199_v2 }
  0xbe   :  { %v209_v46 = vadd.f32 %v208_v42, %v200_v19 }
  0xc0   :  { %v210_v32 = vadd.f32 %v209_v46, %v201_v25 }
  0xc2   :  { %v211_v35 = vadd.f32 %v210_v32, %v202_v29 }
  0xd9   :  { %212 = vadd.xlane.f32.xlu1 %v211_v35 }
 0x134   :  { %v4160_v36 = vpop.permute.xlu1 %369 }
 0x137   :  { %v4204_v37 = vpop.permute.xlu0 %354 }
 0x166   :  { %v213_v50 = vpop.xlane.xlu1 %212 }
 0x167   :  { %v214_v30 = vmul.f32 0.001953125, %v213_v50 }
 0x169   :  { %v215_v8 = vadd.f32 1e-05, %v214_v30 }
 0x16b   :  { %3878 = vrsqrt.f32 %v215_v8 }
 0x175   :  { %v4184_v61 = vpop.eup %3878 }
 0x176   :  { %v217_v2 = vmul.f32 %v4184_v61, %v4111_v20  ;;  %v218_v3 = vmul.f32 %v4184_v61, %v4114_v31  ;;  %v219_v38 = vmul.f32 %v4184_v61, %v4117_v21  ;;  %v220_v19 = vmul.f32 %v4184_v61, %v4130_v11 }
 0x177   :  { %v221_v42 = vmul.f32 %v4184_v61, %v177_v51  ;;  %v222_v24 = vmul.f32 %v4184_v61, %v178_v54  ;;  %v223_v25 = vmul.f32 %v4184_v61, %v179_v58  ;;  %v224_v46 = vmul.f32 %v4184_v61, %v180_v26 }
 0x178   :  { %v279_v29 = vmul.f32 %v232_v48, %v217_v2  ;;  %v280_v32 = vmul.f32 %v236_v49, %v218_v3  ;;  %v318_v20 = vrot.slane %v43_v45, %v4032_v23  ;;  %v322_v31 = vrot.slane %v43_v45, %v4046_v28 }
 0x179   :  { %v281_v35 = vmul.f32 %v240_v52, %v219_v38  ;;  %v282_v50 = vmul.f32 %v244_v18, %v220_v19  ;;  %v283_v21 = vmul.f32 %v248_v53, %v221_v42  ;;  %v284_v30 = vmul.f32 %v252_v55, %v222_v24 }
 0x17a   :  { %v285_v8 = vmul.f32 %v256_v56, %v223_v25  ;;  %v286_v11 = vmul.f32 %v260_v57, %v224_v46  ;;  %v341_v51 = vadd.f32 %v294_v59, %v279_v29  ;;  %v342_v54 = vadd.f32 %v298_v60, %v280_v32 }
 0x17b   :  { %v343_v12 = vadd.f32 %v302_v62, %v281_v35  ;;  %v344_v58 = vadd.f32 %v306_v63, %v282_v50  ;;  %v345_v40 = vadd.f32 %v310_v0, %v283_v21  ;;  %v346_v26 = vadd.f32 %v314_v33, %v284_v30  ;;  %v4354_v21 = vld [vmem:[%s5561_s3 + $0x41] ss:$8 sm:$0x3] }
 0x17c   :  { %v4206_v41 = vadd.f32 %v318_v20, %v285_v8  ;;  %v4208_v44 = vadd.f32 %v322_v31, %v286_v11  ;;  %v357_v45 = vmul.f32 %v4204_v37, %v341_v51  ;;  %v358_v48 = vmul.f32 %v4204_v37, %v342_v54 }
 0x17d   :  { %v359_v49 = vmul.f32 %v4204_v37, %v343_v12  ;;  %v360_v52 = vmul.f32 %v4204_v37, %v344_v58  ;;  %v361_v18 = vmul.f32 %v4204_v37, %v345_v40  ;;  %v362_v53 = vmul.f32 %v4204_v37, %v346_v26 }
 0x17e   :  { %v372_v55 = vadd.f32 %v4160_v36, %v357_v45  ;;  %v373_v56 = vadd.f32 %v4160_v36, %v358_v48  ;;  %v364_v11 = vmul.f32 %v4204_v37, %v4208_v44  ;;  %v225_v12 = vmul.f32 %v4184_v61, %v4147_v1 }
 0x17f   :  { %v374_v57 = vadd.f32 %v4160_v36, %v359_v49  ;;  %v375_v59 = vadd.f32 %v4160_v36, %v360_v52  ;;  %v376_v60 = vadd.f32 %v4160_v36, %v361_v18  ;;  %v377_v62 = vadd.f32 %v4160_v36, %v362_v53 }
 0x180   :  { %v383_v63 = vmax.f32 %v373_v56, 0.0  ;;  %v382_v0 = vmax.f32 %v372_v55, 0.0  ;;  %v264_v58 = vrot.slane %v4354_v21, %v3977_v5  ;;  %v379_v45 = vadd.f32 %v4160_v36, %v364_v11 }
 0x181   :  { %v384_v33 = vmax.f32 %v374_v57, 0.0  ;;  %v385_v2 = vmax.f32 %v375_v59, 0.0  ;;  %v386_v19 = vmax.f32 %v376_v60, 0.0  ;;  %v387_v42 = vmax.f32 %v377_v62, 0.0 }
 0x182   :  { %v4223_v3 = vmul.f32 %v383_v63, %v4006_v14  ;;  %v392_v24 = vmul.f32 %v382_v0, %v4003_v13  ;;  %v287_v18 = vmul.f32 %v264_v58, %v225_v12  ;;  %v389_v56 = vmax.f32 %v379_v45, 0.0 }
 0x183   :  { %v4226_v38 = vmul.f32 %v384_v33, %v4009_v15  ;;  %v4230_v25 = vmul.f32 %v385_v2, %v4014_v17  ;;  %v4241_v14 = vmul.f32 %v386_v19, %v4030_v22  ;;  %v4244_v13 = vmul.f32 %v387_v42, %v4044_v27 }
 0x184   :  { %v363_v22 = vmul.f32 %v4204_v37, %v4206_v41  ;;  %v4373_v41 = vld [vmem:[%s5561_s3 + $0x42] ss:$8 sm:$0x3]  ;;  %v4401_v33 = vmul.f32 %v389_v56, %v4069_v39 }
 0x185   :  { %v4234_v46 = vpack.i.bf16 %v4226_v38, %v4223_v3  ;;  %v3411_v15 = vpack.i.bf16 %v4230_v25, %v392_v24  ;;  %v3421_v17 = vpack.i.bf16 %v4244_v13, %v4241_v14  ;;  %v4293_v32 = vpack.i.bf16 %v4230_v25, %v4226_v38 }
 0x186   :  { %v378_v27 = vadd.f32 %v4160_v36, %v363_v22  ;;  %v4303_v31 = vpack.i.bf16 %v4241_v14, %v4223_v3  ;;  %v326_v53 = vrot.slane %v4373_v41, %v3977_v5 }
 0x187   :  { %3402 = vrot.lane.b32.xlu0 %v4234_v46, %s3897_s26  ;;  %3367 = vrot.lane.b32.xlu1 %v4234_v46, %s3898_s27 }
 0x188   :  { %v388_v29 = vmax.f32 %v378_v27, 0.0  ;;  %v349_v60 = vadd.f32 %v326_v53, %v287_v18 }
 0x18a   :  { %v4299_v20 = vmul.f32 %v388_v29, %v4056_v34  ;;  %v365_v24 = vmul.f32 %v4204_v37, %v349_v60 }
 0x18b   :  { %3372 = vrot.lane.b32.xlu1 %v4234_v46, %s3899_s28  ;;  %3412 = vrot.lane.b32.xlu0 %v3411_v15, %s3897_s26 }
 0x18c   :  { %v3581_v35 = vpack.i.bf16 %v4299_v20, %v4244_v13  ;;  %v4420_v29 = vpack.i.bf16 %v4401_v33, %v4299_v20 }
 0x18f   :  { %3422 = vrot.lane.b32.xlu0 %v3421_v17, %s3897_s26  ;;  %3377 = vrot.lane.b32.xlu1 %v3411_v15, %s3898_s27 }
 0x193   :  { %3432 = vrot.lane.b32.xlu0 %v4234_v46, %s3900_s29  ;;  %3382 = vrot.lane.b32.xlu1 %v3411_v15, %s3899_s28 }
 0x197   :  { %3442 = vrot.lane.b32.xlu0 %v3411_v15, %s3900_s29  ;;  %3387 = vrot.lane.b32.xlu1 %v3421_v17, %s3898_s27 }
 0x19b   :  { %3452 = vrot.lane.b32.xlu0 %v3421_v17, %s3900_s29  ;;  %3392 = vrot.lane.b32.xlu1 %v3421_v17, %s3899_s28 }
 0x19f   :  { %3462 = vrot.lane.b32.xlu0 %v4234_v46, %s3901_s30  ;;  %3397 = vrot.lane.b32.xlu1 %v4234_v46, %s3902_s9 }
 0x1a3   :  { %3472 = vrot.lane.b32.xlu0 %v3411_v15, %s3901_s30  ;;  %3407 = vrot.lane.b32.xlu1 %v3411_v15, %s3902_s9 }
 0x1a7   :  { %3482 = vrot.lane.b32.xlu0 %v3421_v17, %s3901_s30  ;;  %3417 = vrot.lane.b32.xlu1 %v3421_v17, %s3902_s9 }
 0x1ab   :  { %3492 = vrot.lane.b32.xlu0 %v4234_v46, %s3903_s10  ;;  %3427 = vrot.lane.b32.xlu1 %v4234_v46, %s3904_s11 }
 0x1af   :  { %3502 = vrot.lane.b32.xlu0 %v3411_v15, %s3903_s10  ;;  %3437 = vrot.lane.b32.xlu1 %v3411_v15, %s3904_s11 }
 0x1b3   :  { %3512 = vrot.lane.b32.xlu0 %v3421_v17, %s3903_s10  ;;  %3447 = vrot.lane.b32.xlu1 %v3421_v17, %s3904_s11 }
 0x1b7   :  { %3522 = vrot.lane.b32.xlu0 %v4234_v46, %s3905_s12  ;;  %3457 = vrot.lane.b32.xlu1 %v4234_v46, %s3906_s13 }
 0x1bb   :  { %3532 = vrot.lane.b32.xlu0 %v3411_v15, %s3905_s12  ;;  %3467 = vrot.lane.b32.xlu1 %v3411_v15, %s3906_s13 }
 0x1bf   :  { %3542 = vrot.lane.b32.xlu0 %v3421_v17, %s3905_s12  ;;  %3477 = vrot.lane.b32.xlu1 %v3421_v17, %s3906_s13 }
 0x1c3   :  { %3552 = vrot.lane.b32.xlu0 %v3411_v15, %s3907_s14  ;;  %3487 = vrot.lane.b32.xlu1 %v4234_v46, %s3908_s15 }
 0x1c7   :  { %3562 = vrot.lane.b32.xlu0 %v4293_v32, %s3909_s1  ;;  %3497 = vrot.lane.b32.xlu1 %v3411_v15, %s3908_s15 }
 0x1cb   :  { %3572 = vrot.lane.b32.xlu0 %v4303_v31, %s3909_s1  ;;  %3507 = vrot.lane.b32.xlu1 %v3421_v17, %s3908_s15 }
 0x1cf   :  { %3582 = vrot.lane.b32.xlu0 %v3581_v35, %s3909_s1  ;;  %3517 = vrot.lane.b32.xlu1 %v4234_v46, %s3910_s16 }
 0x1d3   :  { %3592 = vrot.lane.b32.xlu0 %v4293_v32, %s3911_s17  ;;  %3527 = vrot.lane.b32.xlu1 %v3411_v15, %s3910_s16 }
 0x1d7   :  { %3602 = vrot.lane.b32.xlu0 %v4303_v31, %s3911_s17  ;;  %3537 = vrot.lane.b32.xlu1 %v3421_v17, %s3910_s16 }
 0x1db   :  { %3612 = vrot.lane.b32.xlu0 %v3581_v35, %s3911_s17  ;;  %3547 = vrot.lane.b32.xlu1 %v4234_v46, %s3907_s14 }
 0x1df   :  { %3622 = vrot.lane.b32.xlu0 %v4293_v32, %s5576_s18  ;;  %3557 = vrot.lane.b32.xlu1 %v3421_v17, %s3907_s14 }
 0x1e3   :  { %3632 = vrot.lane.b32.xlu0 %v4303_v31, %s5576_s18  ;;  %3567 = vrot.lane.b32.xlu1 %v4293_v32, %s3913_s19 }
 0x1e7   :  { %1159 = vrot.lane.b32.xlu0 %v4244_v13, %s5576_s18  ;;  %3577 = vrot.lane.b32.xlu1 %v4303_v31, %s3913_s19 }
 0x1eb   :  { %3642 = vrot.lane.b32.xlu0 %v4293_v32, %s5574_s20  ;;  %3587 = vrot.lane.b32.xlu1 %v3581_v35, %s3913_s19 }
 0x1ef   :  { %3652 = vrot.lane.b32.xlu0 %v4303_v31, %s5574_s20  ;;  %3597 = vrot.lane.b32.xlu1 %v4293_v32, %s3915_s21 }
 0x1f3   :  { %1245 = vrot.lane.b32.xlu0 %v4244_v13, %s5574_s20  ;;  %3607 = vrot.lane.b32.xlu1 %v4303_v31, %s3915_s21 }
 0x1f7   :  { %3662 = vrot.lane.b32.xlu0 %v4293_v32, %s5572_s22  ;;  %3617 = vrot.lane.b32.xlu1 %v3581_v35, %s3915_s21  ;;  %v380_v35 = vadd.f32 %v4160_v36, %v365_v24 }
 0x1f9   :  { %v4347_v34 = vpop.permute.xlu0 %3402  ;;  %v4349_v50 = vpop.permute.xlu1 %3367 }
 0x1fa   :  { %v3370_v30 = vunpack.i.h.bf16 %v4349_v50  ;;  %v3369_v8 = vunpack.i.l.bf16 %v4349_v50  ;;  %v3404_v12 = vunpack.i.l.bf16 %v4347_v34 }
 0x1fb   :  { %3672 = vrot.lane.b32.xlu0 %v4303_v31, %s5572_s22  ;;  %3627 = vrot.lane.b32.xlu1 %v4293_v32, %s3917_s24 }
 0x1fc   :  { %v431_v1 = vsel %vm429_vm1, %v3369_v8, %v3370_v30 }
 0x1fd   :  { %v3373_v51 = vpop.permute.xlu1 %3372  ;;  %v4364_v54 = vpop.permute.xlu0 %3412 }
 0x1fe   :  { %v3375_v40 = vunpack.i.h.bf16 %v3373_v51  ;;  %v3374_v26 = vunpack.i.l.bf16 %v3373_v51  ;;  %v3405_v51 = vunpack.i.h.bf16 %v4347_v34  ;;  %v3414_v60 = vunpack.i.l.bf16 %v4364_v54 }
 0x1ff   :  { %1331 = vrot.lane.b32.xlu0 %v4244_v13, %s5572_s22  ;;  %3637 = vrot.lane.b32.xlu1 %v4303_v31, %s3917_s24  ;;  %s3922_s22 = smov 18  }
 0x200   :  { %v474_v44 = vsel %vm472_vm2, %v3374_v26, %v3375_v40 }
 0x201   :  { %v4384_v48 = vpop.permute.xlu0 %3422  ;;  %v3378_v49 = vpop.permute.xlu1 %3377  ;;  %v3094_v52 = vpack.c.bf16 %v474_v44, %v431_v1 }
 0x202   :  { %v3379_v55 = vunpack.i.l.bf16 %v3378_v49  ;;  %v3380_v39 = vunpack.i.h.bf16 %v3378_v49 }
 0x203   :  { %3095 = vmatprep.subr.bf16.mxu0 %v3094_v52  ;;  %3682 = vrot.lane.b32.xlu0 %v4293_v32, %s5570_s23 }
 0x204   :  { %1202 = vrot.lane.b32.xlu1 %v4244_v13, %s3917_s24  ;;  %v430_v63 = vsel %vm429_vm1, %v3379_v55, %v3369_v8  ;;  %v432_v18 = vsel %vm429_vm1, %v3370_v30, %v3380_v39  ;;  %v560_v30 = vsel %vm558_vm3, %v3404_v12, %v3405_v51 }
 0x205   :  { %v4392_v57 = vpop.permute.xlu0 %3432  ;;  %v3383_v59 = vpop.permute.xlu1 %3382 }
 0x206   :  { %v3384_v62 = vunpack.i.l.bf16 %v3383_v59  ;;  %v3385_v46 = vunpack.i.h.bf16 %v3383_v59 }
 0x207   :  { %3692 = vrot.lane.b32.xlu0 %v4303_v31, %s5570_s23 }
 0x208   :  { %3647 = vrot.lane.b32.xlu1 %v4293_v32, %s3919_s25  ;;  %v473_v0 = vsel %vm472_vm2, %v3384_v62, %v3374_v26  ;;  %v475_v58 = vsel %vm472_vm2, %v3375_v40, %v3385_v46  ;;  %v390_v62 = vmax.f32 %v380_v35, 0.0  ;;  %v559_v35 = vsel %vm558_vm3, %v3414_v60, %v3404_v12 }
 0x209   :  { %v4403_v2 = vpop.permute.xlu0 %3442  ;;  %v4405_v19 = vpop.permute.xlu1 %3387  ;;  %v3096_v42 = vpack.c.bf16 %v473_v0, %v430_v63  ;;  %v3148_v59 = vpack.c.bf16 %v475_v58, %v432_v18  ;;  %v3435_v12 = vunpack.i.h.bf16 %v4392_v57  ;;  %v3434_v60 = vunpack.i.l.bf16 %v4392_v57 }
 0x20a   :  { %v5582_v15 = vunpack.i.h.bf16 %v4405_v19  ;;  %v3389_v17 = vunpack.i.l.bf16 %v4405_v19  ;;  %v4471_v58 = vmul.f32 %v390_v62, %v4079_v43 }
 0x20b   :  { %1417 = vrot.lane.b32.xlu0 %v4244_v13, %s5570_s23  ;;  %3097 = vmatpush1.bf16.msra.mxu0 %v3096_v42  ;;  %s3921_s23 = smov 27  }
 0x20c   :  { %3657 = vrot.lane.b32.xlu1 %v4303_v31, %s3919_s25  ;;  %v4433_v26 = vsel %vm429_vm1, %v3389_v17, %v5582_v15  ;;  %v433_v44 = vsel %vm429_vm1, %v3380_v39, %v3389_v17  ;;  %v3424_v17 = vunpack.i.l.bf16 %v4384_v48 }
 0x20d   :  { %v4414_v22 = vpop.permute.xlu0 %3452  ;;  %v4416_v27 = vpop.permute.xlu1 %3392 }
 0x20e   :  { %v5585_v8 = vunpack.i.h.bf16 %v4416_v27  ;;  %v3394_v11 = vunpack.i.l.bf16 %v4416_v27 }
 0x20f   :  { %3702 = vrot.lane.b32.xlu0 %v4420_v29, %s3898_s27 }
 0x210   :  { %v4438_v1 = vsel %vm472_vm2, %v3394_v11, %v5585_v8  ;;  %1288 = vrot.lane.b32.xlu1 %v4244_v13, %s3919_s25  ;;  %v476_v45 = vsel %vm472_vm2, %v3385_v46, %v3394_v11  ;;  %v5580_v46 = vunpack.i.h.bf16 %v4384_v48 }
 0x211   :  { %v4444_v49 = vpop.permute.xlu0 %3462  ;;  %v3398_v40 = vpop.permute.xlu1 %3397  ;;  %v3146_v52 = vpack.c.bf16 %v476_v45, %v433_v44  ;;  %v3415_v44 = vunpack.i.h.bf16 %v4364_v54 }
 0x212   :  { %v3400_v55 = vunpack.i.h.bf16 %v3398_v40  ;;  %v3399_v56 = vunpack.i.l.bf16 %v3398_v40 }
 0x213   :  { %1497 = vrot.lane.b32.xlu0 %v4226_v38, %s3920_s0  ;;  %3147 = vmatprep.subr.bf16.mxu1 %v3146_v52  ;;  %v562_v43 = vsel %vm558_vm3, %v3415_v44, %v3424_v17 }
 0x214   :  { %3667 = vrot.lane.b32.xlu1 %v4293_v32, %s3921_s23  ;;  %3149 = vmatpush1.bf16.msra.mxu1 %v3148_v59  ;;  %v517_v50 = vsel %vm515_vm4, %v3399_v56, %v3400_v55 }
 0x215   :  { %v4460_v63 = vpop.permute.xlu0 %3472  ;;  %v3408_v0 = vpop.permute.xlu1 %3407  ;;  %v3098_v42 = vpack.c.bf16 %v560_v30, %v517_v50 }
 0x216   :  { %v3409_v24 = vunpack.i.l.bf16 %v3408_v0  ;;  %v3410_v39 = vunpack.i.h.bf16 %v3408_v0 }
 0x217   :  { %1495 = vrot.lane.b32.xlu0 %v4223_v3, %s3920_s0  ;;  %3099 = vmatprep.subr.bf16.mxu0 %v3098_v42 }
 0x218   :  { %3677 = vrot.lane.b32.xlu1 %v4303_v31, %s3921_s23  ;;  %v516_v11 = vsel %vm515_vm4, %v3409_v24, %v3399_v56  ;;  %v4483_v56 = vsel %vm558_vm3, %v3424_v17, %v5580_v46  ;;  %v518_v54 = vsel %vm515_vm4, %v3400_v55, %v3410_v39  ;;  %v561_v55 = vsel %vm558_vm3, %v3405_v51, %v3415_v44 }
 0x219   :  { %v4474_v45 = vpop.permute.xlu0 %3482  ;;  %v4476_v40 = vpop.permute.xlu1 %3417  ;;  %v3100_v52 = vpack.c.bf16 %v559_v35, %v516_v11  ;;  %v3152_v11 = vpack.c.bf16 %v561_v55, %v518_v54  ;;  %v646_v51 = vsel %vm644_vm5, %v3434_v60, %v3435_v12  ;;  %v3454_v54 = vunpack.i.l.bf16 %v4414_v22 }
 0x21a   :  { %v5581_v18 = vunpack.i.h.bf16 %v4476_v40  ;;  %v3419_v59 = vunpack.i.l.bf16 %v4476_v40  ;;  %v3475_v46 = vunpack.i.h.bf16 %v4460_v63 }
 0x21b   :  { %470 = vrot.lane.b32.xlu0 %v4471_v58, %s3899_s28  ;;  %3101 = vmatpush1.bf16.msra.mxu0 %v3100_v52 }
 0x21c   :  { %v4494_v50 = vsel %vm515_vm4, %v3419_v59, %v5581_v18  ;;  %1374 = vrot.lane.b32.xlu1 %v4244_v13, %s3921_s23  ;;  %v519_v30 = vsel %vm515_vm4, %v3410_v39, %v3419_v59  ;;  %v3444_v39 = vunpack.i.l.bf16 %v4403_v2 }
 0x21d   :  { %v4499_v62 = vpop.permute.xlu0 %3492  ;;  %v3428_v0 = vpop.permute.xlu1 %3427  ;;  %v3150_v42 = vpack.c.bf16 %v562_v43, %v519_v30  ;;  %v5578_v43 = vunpack.i.h.bf16 %v4414_v22 }
 0x21e   :  { %v3430_v24 = vunpack.i.h.bf16 %v3428_v0  ;;  %v3429_v17 = vunpack.i.l.bf16 %v3428_v0  ;;  %v645_v0 = vsel %vm644_vm5, %v3444_v39, %v3434_v60  ;;  %v3464_v39 = vunpack.i.l.bf16 %v4444_v49 }
 0x21f   :  { %3717 = vrot.lane.b32.xlu0 %v4420_v29, %s3897_s26  ;;  %3151 = vmatprep.subr.bf16.mxu1 %v3150_v42  ;;  %v3445_v42 = vunpack.i.h.bf16 %v4403_v2 }
 0x220   :  { %3687 = vrot.lane.b32.xlu1 %v4293_v32, %s3922_s22  ;;  %3153 = vmatpush1.bf16.msra.mxu1 %v3152_v11  ;;  %v603_v34 = vsel %vm601_vm6, %v3429_v17, %v3430_v24 }
 0x221   :  { %v4513_v35 = vpop.permute.xlu0 %3502  ;;  %v3438_v44 = vpop.permute.xlu1 %3437  ;;  %v3102_v52 = vpack.c.bf16 %v646_v51, %v603_v34  ;;  %v648_v2 = vsel %vm644_vm5, %v3445_v42, %v3454_v54 }
 0x222   :  { %v3439_v59 = vunpack.i.l.bf16 %v3438_v44  ;;  %v3440_v30 = vunpack.i.h.bf16 %v3438_v44 }
 0x223   :  { %1503 = vrot.lane.b32.xlu0 %v4244_v13, %s3920_s0  ;;  %3103 = vmatprep.subr.bf16.mxu0 %v3102_v52  ;;  %v4533_v52 = vld [vmem:[%s5566_s5 + $0x8] sm:$0xff] }
 0x224   :  { %3697 = vrot.lane.b32.xlu1 %v4303_v31, %s3922_s22  ;;  %v602_v32 = vsel %vm601_vm6, %v3439_v59, %v3429_v17  ;;  %v4538_v31 = vsel %vm644_vm5, %v3454_v54, %v5578_v43  ;;  %v604_v60 = vsel %vm601_vm6, %v3430_v24, %v3440_v30  ;;  %v3465_v17 = vunpack.i.h.bf16 %v4444_v49  ;;  %3070 = vmatprep.mubr.msk.f32.mxu0 %vm1768_vm7, %v4533_v52 }
 0x225   :  { %v4524_v55 = vpop.permute.xlu0 %3512  ;;  %v4526_v11 = vpop.permute.xlu1 %3447  ;;  %v3104_v34 = vpack.c.bf16 %v645_v0, %v602_v32  ;;  %v647_v24 = vsel %vm644_vm5, %v3435_v12, %v3445_v42  ;;  %3072 = vmatprep.mubr.msk.f32.mxu1 %vm1768_vm7, %v4533_v52 }
 0x226   :  { %v5579_v51 = vunpack.i.h.bf16 %v4526_v11  ;;  %v3449_v44 = vunpack.i.l.bf16 %v4526_v11  ;;  %v3156_v57 = vpack.c.bf16 %v647_v24, %v604_v60  ;;  %v732_v42 = vsel %vm730_vm8, %v3464_v39, %v3465_v17 }
 0x227   :  { %556 = vrot.lane.b32.xlu0 %v4471_v58, %s3897_s26  ;;  %3105 = vmatpush1.bf16.msra.mxu0 %v3104_v34  ;;  %v5583_v60 = vunpack.i.h.bf16 %v4474_v45  ;;  %v3484_v24 = vunpack.i.l.bf16 %v4474_v45  ;;  %s5649_s26 = smov 39  }
 0x228   :  { %v4549_v59 = vsel %vm601_vm6, %v3449_v44, %v5579_v51  ;;  %1460 = vrot.lane.b32.xlu1 %v4244_v13, %s3922_s22  ;;  %v605_v32 = vsel %vm601_vm6, %v3440_v30, %v3449_v44  ;;  %v3474_v30 = vunpack.i.l.bf16 %v4460_v63 }
 0x229   :  { %v4554_v0 = vpop.permute.xlu0 %3522  ;;  %v3458_v34 = vpop.permute.xlu1 %3457  ;;  %v3154_v54 = vpack.c.bf16 %v648_v2, %v605_v32  ;;  %v734_v63 = vsel %vm730_vm8, %v3475_v46, %v3484_v24 }
 0x22a   :  { %v3460_v43 = vunpack.i.h.bf16 %v3458_v34  ;;  %v3459_v51 = vunpack.i.l.bf16 %v3458_v34  ;;  %v731_v49 = vsel %vm730_vm8, %v3474_v30, %v3464_v39 }
 0x22b   :  { %3727 = vrot.lane.b32.xlu0 %v4420_v29, %s3900_s29  ;;  %3155 = vmatprep.subr.bf16.mxu1 %v3154_v54 }
 0x22c   :  { %3707 = vrot.lane.b32.xlu1 %v4420_v29, %s3899_s28  ;;  %3157 = vmatpush1.bf16.msra.mxu1 %v3156_v57  ;;  %v689_v12 = vsel %vm687_vm9, %v3459_v51, %v3460_v43  ;;  %s5653_s28 = smov 28  }
 0x22d   :  { %v4570_v44 = vpop.permute.xlu0 %3532  ;;  %v3468_v2 = vpop.permute.xlu1 %3467  ;;  %v3106_v32 = vpack.c.bf16 %v732_v42, %v689_v12 }
 0x22e   :  { %v3469_v34 = vunpack.i.l.bf16 %v3468_v2  ;;  %v3470_v54 = vunpack.i.h.bf16 %v3468_v2  ;;  %v226_v2 = vmul.f32 %v4184_v61, %v4151_v4  ;;  %v3495_v61 = vunpack.i.h.bf16 %v4499_v62 }
 0x22f   :  { %642 = vrot.lane.b32.xlu0 %v4471_v58, %s3900_s29  ;;  %3107 = vmatprep.subr.bf16.mxu0 %v3106_v32  ;;  %v268_v32 = vrot.slane %v4354_v21, %v3979_v6  ;;  %v3494_v21 = vunpack.i.l.bf16 %v4499_v62  ;;  %s5654_s29 = smov 19  }
 0x230   :  { %1499 = vrot.lane.b32.xlu1 %v4230_v25, %s3920_s0  ;;  %v688_v57 = vsel %vm687_vm9, %v3469_v34, %v3459_v51  ;;  %v4594_v51 = vsel %vm730_vm8, %v3484_v24, %v5583_v60  ;;  %v690_v4 = vsel %vm687_vm9, %v3460_v43, %v3470_v54  ;;  %v733_v43 = vsel %vm730_vm8, %v3465_v17, %v3475_v46 }
 0x231   :  { %v4581_v12 = vpop.permute.xlu0 %3542  ;;  %v4583_v42 = vpop.permute.xlu1 %3477  ;;  %v3108_v18 = vpack.c.bf16 %v731_v49, %v688_v57  ;;  %v3160_v60 = vpack.c.bf16 %v733_v43, %v690_v4  ;;  %v818_v46 = vsel %vm816_vm10, %v3494_v21, %v3495_v61  ;;  %v330_v4 = vrot.slane %v4373_v41, %v3979_v6 }
 0x232   :  { %v5584_v53 = vunpack.i.h.bf16 %v4583_v42  ;;  %v3479_v15 = vunpack.i.l.bf16 %v4583_v42  ;;  %v3514_v43 = vunpack.i.l.bf16 %v4524_v55 }
 0x233   :  { %3737 = vrot.lane.b32.xlu0 %v4420_v29, %s3901_s30  ;;  %3109 = vmatpush1.bf16.msra.mxu0 %v3108_v18 }
 0x234   :  { %v4605_v39 = vsel %vm687_vm9, %v3479_v15, %v5584_v53  ;;  %427 = vrot.lane.b32.xlu1 %v4471_v58, %s3898_s27  ;;  %v691_v49 = vsel %vm687_vm9, %v3470_v54, %v3479_v15  ;;  %v3504_v53 = vunpack.i.l.bf16 %v4513_v35  ;;  %s5651_s27 = smov 37  }
 0x235   :  { %v4610_v30 = vpop.permute.xlu0 %3552  ;;  %v3488_v18 = vpop.permute.xlu1 %3487  ;;  %v3158_v34 = vpack.c.bf16 %v734_v63, %v691_v49  ;;  %v288_v49 = vmul.f32 %v268_v32, %v226_v2  ;;  %v3505_v32 = vunpack.i.h.bf16 %v4513_v35 }
 0x236   :  { %v3490_v24 = vunpack.i.h.bf16 %v3488_v18  ;;  %v3489_v57 = vunpack.i.l.bf16 %v3488_v18  ;;  %v817_v2 = vsel %vm816_vm10, %v3504_v53, %v3494_v21  ;;  %v3525_v21 = vunpack.i.h.bf16 %v4554_v0 }
 0x237   :  { %728 = vrot.lane.b32.xlu0 %v4471_v58, %s3901_s30  ;;  %3159 = vmatprep.subr.bf16.mxu1 %v3158_v34  ;;  %v350_v8 = vadd.f32 %v330_v4, %v288_v49  ;;  %v820_v53 = vsel %vm816_vm10, %v3505_v32, %v3514_v43 }
 0x238   :  { %3712 = vrot.lane.b32.xlu1 %v4420_v29, %s3902_s9  ;;  %3161 = vmatpush1.bf16.msra.mxu1 %v3160_v60  ;;  %v775_v15 = vsel %vm773_vm11, %v3489_v57, %v3490_v24 }
 0x239   :  { %v4622_v17 = vpop.permute.xlu0 %3562  ;;  %v3498_v54 = vpop.permute.xlu1 %3497  ;;  %v3110_v63 = vpack.c.bf16 %v818_v46, %v775_v15 }
 0x23a   :  { %v3499_v18 = vunpack.i.l.bf16 %v3498_v54  ;;  %v3500_v62 = vunpack.i.h.bf16 %v3498_v54 }
 0x23b   :  { %3747 = vrot.lane.b32.xlu0 %v4420_v29, %s3903_s10  ;;  %3111 = vmatprep.subr.bf16.mxu0 %v3110_v63  ;;  %v5641_v63 = vunpack.i.h.bf16 %v4524_v55 }
 0x23c   :  { %1501 = vrot.lane.b32.xlu1 %v4241_v14, %s3920_s0  ;;  %v774_v60 = vsel %vm773_vm11, %v3499_v18, %v3489_v57  ;;  %v776_v35 = vsel %vm773_vm11, %v3490_v24, %v3500_v62  ;;  %v3524_v57 = vunpack.i.l.bf16 %v4554_v0  ;;  %v819_v24 = vsel %vm816_vm10, %v3495_v61, %v3505_v32 }
 0x23d   :  { %v4635_v41 = vpop.permute.xlu0 %3572  ;;  %v4637_v15 = vpop.permute.xlu1 %3507  ;;  %v3112_v46 = vpack.c.bf16 %v817_v2, %v774_v60  ;;  %v4644_v28 = vsel %vm816_vm10, %v3514_v43, %v5641_v63  ;;  %v3164_v63 = vpack.c.bf16 %v819_v24, %v776_v35  ;;  %v3544_v24 = vunpack.i.l.bf16 %v4581_v12 }
 0x23e   :  { %v5588_v54 = vunpack.i.h.bf16 %v4637_v15  ;;  %v3509_v34 = vunpack.i.l.bf16 %v4637_v15 }
 0x23f   :  { %814 = vrot.lane.b32.xlu0 %v4471_v58, %s3903_s10  ;;  %3113 = vmatpush1.bf16.msra.mxu0 %v3112_v46 }
 0x240   :  { %v4655_v49 = vsel %vm773_vm11, %v3509_v34, %v5588_v54  ;;  %513 = vrot.lane.b32.xlu1 %v4471_v58, %s3902_s9  ;;  %v777_v4 = vsel %vm773_vm11, %v3500_v62, %v3509_v34  ;;  %v366_v54 = vmul.f32 %v4204_v37, %v350_v8  ;;  %v3534_v62 = vunpack.i.l.bf16 %v4570_v44 }
 0x241   :  { %v4660_v18 = vpop.permute.xlu0 %3582  ;;  %v3518_v60 = vpop.permute.xlu1 %3517  ;;  %v3162_v43 = vpack.c.bf16 %v820_v53, %v777_v4  ;;  %v904_v34 = vsel %vm5600_vm12, %v3524_v57, %v3525_v21 }
 0x242   :  { %v3520_v2 = vunpack.i.h.bf16 %v3518_v60  ;;  %v3519_v46 = vunpack.i.l.bf16 %v3518_v60  ;;  %v381_v8 = vadd.f32 %v4160_v36, %v366_v54  ;;  %v3535_v60 = vunpack.i.h.bf16 %v4570_v44 }
 0x243   :  { %3757 = vrot.lane.b32.xlu0 %v4420_v29, %s3905_s12  ;;  %3163 = vmatprep.subr.bf16.mxu1 %v3162_v43  ;;  %v5589_v43 = vunpack.i.h.bf16 %v4581_v12 }
 0x244   :  { %3722 = vrot.lane.b32.xlu1 %v4420_v29, %s3904_s11  ;;  %3165 = vmatpush1.bf16.msra.mxu1 %v3164_v63  ;;  %v861_v61 = vsel %vm859_vm13, %v3519_v46, %v3520_v2  ;;  %v391_v0 = vmax.f32 %v381_v8, 0.0  ;;  %v906_v8 = vsel %vm5600_vm12, %v3535_v60, %v3544_v24 }
 0x245   :  { %v4673_v32 = vpop.permute.xlu0 %3592  ;;  %v3528_v53 = vpop.permute.xlu1 %3527  ;;  %v3114_v35 = vpack.c.bf16 %v904_v34, %v861_v61  ;;  %v903_v61 = vsel %vm5600_vm12, %v3534_v62, %v3524_v57  ;;  %v905_v57 = vsel %vm5600_vm12, %v3525_v21, %v3535_v60  ;;  %v4702_v62 = vsel %vm5600_vm12, %v3544_v24, %v5589_v43 }
 0x246   :  { %v3530_v4 = vunpack.i.h.bf16 %v3528_v53  ;;  %v3529_v37 = vunpack.i.l.bf16 %v3528_v53  ;;  %v3554_v21 = vunpack.i.l.bf16 %v4610_v30  ;;  %vm5611_vm12 = vcmask 973824  }
 0x247   :  { %900 = vrot.lane.b32.xlu0 %v4471_v58, %s3905_s12  ;;  %3115 = vmatprep.subr.bf16.mxu0 %v3114_v35 }
 0x248   :  { %599 = vrot.lane.b32.xlu1 %v4471_v58, %s3904_s11  ;;  %v860_v63 = vsel %vm859_vm13, %v3529_v37, %v3519_v46  ;;  %v862_v35 = vsel %vm859_vm13, %v3520_v2, %v3530_v4  ;;  %v4696_v46 = vpack.i.bf16 %v4471_v58, %v4401_v33 }
 0x249   :  { %v4685_v34 = vpop.permute.xlu0 %3602  ;;  %v4687_v36 = vpop.permute.xlu1 %3537  ;;  %v3116_v44 = vpack.c.bf16 %v903_v61, %v860_v63  ;;  %v3168_v43 = vpack.c.bf16 %v905_v57, %v862_v35  ;;  %v3555_v35 = vunpack.i.h.bf16 %v4610_v30  ;;  %v3564_v30 = vunpack.i.l.bf16 %v4622_v17 }
 0x24a   :  { %v5592_v54 = vunpack.i.h.bf16 %v4687_v36  ;;  %v3539_v53 = vunpack.i.l.bf16 %v4687_v36 }
 0x24b   :  { %943 = vrot.lane.b32.xlu0 %v4471_v58, %s3907_s14  ;;  %3117 = vmatpush1.bf16.msra.mxu0 %v3116_v44 }
 0x24c   :  { %v4707_v2 = vsel %vm859_vm13, %v3539_v53, %v5592_v54  ;;  %3732 = vrot.lane.b32.xlu1 %v4420_v29, %s3906_s13  ;;  %v863_v37 = vsel %vm859_vm13, %v3530_v4, %v3539_v53  ;;  %v4734_v53 = vmul.f32 %v391_v0, %v4089_v47  ;;  %v3565_v47 = vunpack.i.h.bf16 %v4622_v17 }
 0x24d   :  { %v4714_v63 = vpop.permute.xlu0 %3612  ;;  %v3548_v61 = vpop.permute.xlu1 %3547  ;;  %v3166_v44 = vpack.c.bf16 %v906_v8, %v863_v37  ;;  %v3574_v17 = vunpack.i.l.bf16 %v4635_v41 }
 0x24e   :  { %5642 = vst [vmem:[#allocation11_spill] sm:$0xff] %v4714_v63  ;;  %v5601_v54 = vunpack.i.h.bf16 %v4714_v63  ;;  %v5604_v16 = vunpack.i.l.bf16 %v4714_v63  ;;  %v3550_v10 = vunpack.i.h.bf16 %v3548_v61  ;;  %v3549_v9 = vunpack.i.l.bf16 %v3548_v61 }
 0x24f   :  { %3772 = vrot.lane.b32.xlu0 %v4696_v46, %s3913_s19  ;;  %3167 = vmatprep.subr.bf16.mxu1 %v3166_v44 }
 0x250   :  { %v4727_v4 = vsel %vm5627_vm15, %v5604_v16, %v5601_v54  ;;  %685 = vrot.lane.b32.xlu1 %v4471_v58, %s3906_s13  ;;  %3169 = vmatpush1.bf16.msra.mxu1 %v3168_v43  ;;  %v947_v60 = vsel %vm5605_vm14, %v3549_v9, %v3550_v10  ;;  %v946_v24 = vsel %vm5605_vm14, %v3554_v21, %v3549_v9  ;;  %v3575_v54 = vunpack.i.h.bf16 %v4635_v41 }
 0x251   :  { %v4737_v57 = vpop.permute.xlu0 %3622  ;;  %v4739_v37 = vpop.permute.xlu1 %3557  ;;  %v3118_v8 = vpack.c.bf16 %v4226_v38, %v947_v60  ;;  %v3120_v61 = vpack.c.bf16 %v4223_v3, %v946_v24  ;;  %v948_v9 = vsel %vm5605_vm14, %v3550_v10, %v3555_v35  ;;  %v999_v24 = vsel %vm5614_vm0, %v3564_v30, %v3565_v47 }
 0x252   :  { %v5602_v44 = vunpack.i.l.bf16 %v4739_v37  ;;  %v3172_v60 = vpack.c.bf16 %v4230_v25, %v948_v9  ;;  %v5603_v25 = vunpack.i.h.bf16 %v4660_v18  ;;  %v3584_v9 = vunpack.i.l.bf16 %v4660_v18 }
 0x253   :  { %1038 = vrot.lane.b32.xlu0 %v4734_v53, %s3913_s19  ;;  %3119 = vmatprep.subr.bf16.mxu0 %v3118_v8  ;;  %v1000_v16 = vsel %vm5614_vm0, %v3565_v47, %v3575_v54 }
 0x254   :  { %3742 = vrot.lane.b32.xlu1 %v4420_v29, %s3908_s15  ;;  %3121 = vmatpush1.bf16.msra.mxu0 %v3120_v61  ;;  %v949_v3 = vsel %vm5605_vm14, %v3555_v35, %v5602_v44  ;;  %v1001_v41 = vsel %vm5614_vm0, %v3575_v54, %v3584_v9  ;;  %vm5618_vm14 = vcmask 957440  }
 0x255   :  { %v4754_v38 = vpop.permute.xlu0 %3632  ;;  %v3568_v0 = vpop.permute.xlu1 %3567  ;;  %v3170_v43 = vpack.c.bf16 %v4241_v14, %v949_v3 }
 0x256   :  { %v3570_v10 = vunpack.i.h.bf16 %v3568_v0  ;;  %v3569_v21 = vunpack.i.l.bf16 %v3568_v0 }
 0x257   :  { %3782 = vrot.lane.b32.xlu0 %v4696_v46, %s3915_s21  ;;  %3171 = vmatprep.subr.bf16.mxu1 %v3170_v43  ;;  %v998_v43 = vsel %vm5614_vm0, %v3574_v17, %v3564_v30  ;;  %v4789_v30 = vsel %vm5614_vm0, %v3584_v9, %v5603_v25  ;;  %v3595_v17 = vunpack.i.h.bf16 %v4673_v32  ;;  %vm5619_vm0 = vcmask 310272  }
 0x258   :  { %771 = vrot.lane.b32.xlu1 %v4471_v58, %s3908_s15  ;;  %3173 = vmatpush1.bf16.msra.mxu1 %v3172_v60  ;;  %v1042_v35 = vsel %vm5611_vm12, %v3569_v21, %v3570_v10 }
 0x259   :  { %v4765_v14 = vpop.permute.xlu0 %1159  ;;  %v3578_v8 = vpop.permute.xlu1 %3577  ;;  %v3122_v61 = vpack.c.bf16 %v1042_v35, %v999_v24 }
 0x25a   :  { %5643 = vst [vmem:[#allocation12_spill] sm:$0xff] %v4765_v14  ;;  %v3579_v3 = vunpack.i.l.bf16 %v3578_v8  ;;  %v3580_v0 = vunpack.i.h.bf16 %v3578_v8 }
 0x25b   :  { %1124 = vrot.lane.b32.xlu0 %v4734_v53, %s3915_s21  ;;  %3123 = vmatprep.subr.bf16.mxu0 %v3122_v61  ;;  %v4784_v61 = vpack.i.bf16 %v4734_v53, %v4471_v58 }
 0x25c   :  { %3752 = vrot.lane.b32.xlu1 %v4420_v29, %s3910_s16  ;;  %v1041_v60 = vsel %vm5611_vm12, %v3579_v3, %v3569_v21  ;;  %v1043_v21 = vsel %vm5611_vm12, %v3570_v10, %v3580_v0  ;;  %v3594_v3 = vunpack.i.l.bf16 %v4673_v32 }
 0x25d   :  { %v4776_v24 = vpop.permute.xlu0 %3642  ;;  %v4778_v35 = vpop.permute.xlu1 %3587  ;;  %v3124_v44 = vpack.c.bf16 %v1041_v60, %v998_v43  ;;  %v3176_v6 = vpack.c.bf16 %v1043_v21, %v1000_v16  ;;  %v3605_v21 = vunpack.i.h.bf16 %v4685_v34 }
 0x25e   :  { %v5610_v8 = vunpack.i.h.bf16 %v4778_v35  ;;  %v3589_v23 = vunpack.i.l.bf16 %v4778_v35 }
 0x25f   :  { %3792 = vrot.lane.b32.xlu0 %v4420_v29, %s3917_s24  ;;  %3125 = vmatpush1.bf16.msra.mxu0 %v3124_v44  ;;  %v1086_v5 = vsel %vm5627_vm15, %v3595_v17, %v3605_v21 }
 0x260   :  { %v4800_v43 = vsel %vm5611_vm12, %v3589_v23, %v5610_v8  ;;  %857 = vrot.lane.b32.xlu1 %v4471_v58, %s3910_s16  ;;  %v1044_v60 = vsel %vm5611_vm12, %v3580_v0, %v3589_v23  ;;  %v3604_v8 = vunpack.i.l.bf16 %v4685_v34  ;;  %v1085_v23 = vsel %vm5627_vm15, %v3594_v3, %v3595_v17 }
 0x261   :  { %v4807_v9 = vpop.permute.xlu0 %3652  ;;  %v3598_v10 = vpop.permute.xlu1 %3597  ;;  %v3174_v25 = vpack.c.bf16 %v1044_v60, %v1001_v41  ;;  %vm5621_vm12 = vcmask 318464  }
 0x262   :  { %v3600_v32 = vunpack.i.h.bf16 %v3598_v10  ;;  %v3599_v7 = vunpack.i.l.bf16 %v3598_v10 }
 0x263   :  { %3802 = vrot.lane.b32.xlu0 %v4784_v61, %s3917_s24  ;;  %3175 = vmatprep.subr.bf16.mxu1 %v3174_v25  ;;  %v1084_v25 = vsel %vm5627_vm15, %v3604_v8, %v3594_v3  ;;  %v5646_v8 = vunpack.i.l.bf16 %v4714_v63  ;;  %v3625_v3 = vunpack.i.h.bf16 %v4737_v57 }
 0x264   :  { %3762 = vrot.lane.b32.xlu1 %v4420_v29, %s3907_s14  ;;  %3177 = vmatpush1.bf16.msra.mxu1 %v3176_v6  ;;  %v1128_v0 = vsel %vm5618_vm14, %v3599_v7, %v3600_v32 }
 0x265   :  { %v4817_v41 = vpop.permute.xlu0 %1245  ;;  %v3608_v54 = vpop.permute.xlu1 %3607  ;;  %v3126_v47 = vpack.c.bf16 %v1128_v0, %v1085_v23 }
 0x266   :  { %5644 = vst [vmem:[#allocation13_spill] sm:$0xff] %v4817_v41  ;;  %v3609_v60 = vunpack.i.l.bf16 %v3608_v54  ;;  %v3610_v16 = vunpack.i.h.bf16 %v3608_v54 }
 0x267   :  { %3812 = vrot.lane.b32.xlu0 %v4420_v29, %s3919_s25  ;;  %3127 = vmatprep.subr.bf16.mxu0 %v3126_v47  ;;  %v3624_v47 = vunpack.i.l.bf16 %v4737_v57 }
 0x268   :  { %3767 = vrot.lane.b32.xlu1 %v4696_v46, %s3909_s1  ;;  %v1127_v6 = vsel %vm5618_vm14, %v3609_v60, %v3599_v7  ;;  %v1087_v7 = vsel %vm5627_vm15, %v3605_v21, %v5646_v8  ;;  %v1129_v34 = vsel %vm5618_vm14, %v3600_v32, %v3610_v16  ;;  %vm5628_vm15 = vcmask 146432  }
 0x269   :  { %v4826_v10 = vpop.permute.xlu0 %3662  ;;  %v4828_v44 = vpop.permute.xlu1 %3617  ;;  %v3128_v23 = vpack.c.bf16 %v1127_v6, %v1084_v25  ;;  %v3180_v63 = vpack.c.bf16 %v1129_v34, %v1086_v5  ;;  %v3635_v34 = vunpack.i.h.bf16 %v4754_v38 }
 0x26a   :  { %5645 = vst [vmem:[#allocation14_spill] sm:$0xff] %v4828_v44  ;;  %v5617_v0 = vunpack.i.h.bf16 %v4828_v44  ;;  %v3619_v54 = vunpack.i.l.bf16 %v4828_v44 }
 0x26b   :  { %3822 = vrot.lane.b32.xlu0 %v4784_v61, %s3919_s25  ;;  %3129 = vmatpush1.bf16.msra.mxu0 %v3128_v23 }
 0x26c   :  { %v4843_v60 = vsel %vm5618_vm14, %v3619_v54, %v5617_v0  ;;  %995 = vrot.lane.b32.xlu1 %v4734_v53, %s3909_s1  ;;  %v1130_v25 = vsel %vm5618_vm14, %v3610_v16, %v3619_v54  ;;  %v3634_v0 = vunpack.i.l.bf16 %v4754_v38  ;;  %v1171_v16 = vsel %vm5621_vm12, %v3624_v47, %v3625_v3 }
 0x26d   :  { %v4850_v23 = vpop.permute.xlu0 %3672  ;;  %v3628_v32 = vpop.permute.xlu1 %3627  ;;  %v3178_v8 = vpack.c.bf16 %v1130_v25, %v1087_v7  ;;  %vm5626_vm14 = vcmask 302080  }
 0x26e   :  { %v3630_v57 = vunpack.i.h.bf16 %v3628_v32  ;;  %v3629_v44 = vunpack.i.l.bf16 %v3628_v32 }
 0x26f   :  { %3832 = vrot.lane.b32.xlu0 %v4420_v29, %s3921_s23  ;;  %3179 = vmatprep.subr.bf16.mxu1 %v3178_v8 }
 0x270   :  { %3777 = vrot.lane.b32.xlu1 %v4696_v46, %s3911_s17  ;;  %3181 = vmatpush1.bf16.msra.mxu1 %v3180_v63  ;;  %v1214_v54 = vsel %vm5619_vm0, %v3629_v44, %v3630_v57  ;;  %v1170_v46 = vsel %vm5621_vm12, %v3634_v0, %v3624_v47  ;;  %v3645_v47 = vunpack.i.h.bf16 %v4776_v24 }
 0x271   :  { %v4860_v7 = vpop.permute.xlu0 %1331  ;;  %v3638_v17 = vpop.permute.xlu1 %3637  ;;  %v3130_v21 = vpack.c.bf16 %v1214_v54, %v1171_v16  ;;  %v1173_v54 = vsel %vm5621_vm12, %v3635_v34, %v4765_v14 }
 0x272   :  { %5647 = vst [vmem:[#allocation15_spill] sm:$0xff] %v4860_v7  ;;  %v3640_v25 = vunpack.i.h.bf16 %v3638_v17  ;;  %v3639_v5 = vunpack.i.l.bf16 %v3638_v17 }
 0x273   :  { %3842 = vrot.lane.b32.xlu0 %v4784_v61, %s3921_s23  ;;  %3131 = vmatprep.subr.bf16.mxu0 %v3130_v21 }
 0x274   :  { %1081 = vrot.lane.b32.xlu1 %v4734_v53, %s3911_s17  ;;  %v1213_v63 = vsel %vm5619_vm0, %v3639_v5, %v3629_v44  ;;  %v1215_v16 = vsel %vm5619_vm0, %v3630_v57, %v3640_v25  ;;  %v1172_v44 = vsel %vm5621_vm12, %v3625_v3, %v3635_v34  ;;  %v3644_v57 = vunpack.i.l.bf16 %v4776_v24 }
 0x275   :  { %v4869_v32 = vpop.permute.xlu0 %3682  ;;  %v3132_v8 = vpack.c.bf16 %v1213_v63, %v1170_v46  ;;  %v3184_v21 = vpack.c.bf16 %v1215_v16, %v1172_v44  ;;  %v3654_v3 = vunpack.i.l.bf16 %v4807_v9  ;;  %vm1341_vm12 = vcmask 228352  }
 0x276   :  { %v4871_v6 = vpop.permute.xlu1 %1202  ;;  %v1257_v24 = vsel %vm5626_vm14, %v3644_v57, %v3645_v47 }
 0x277   :  { %5648 = vst [vmem:[#allocation16_spill] sm:$0xff] %v4871_v6  ;;  %v1216_v38 = vsel %vm5619_vm0, %v3640_v25, %v4871_v6  ;;  %3852 = vrot.lane.b32.xlu0 %v4420_v29, %s3922_s22  ;;  %3133 = vmatpush1.bf16.msra.mxu0 %v3132_v8  ;;  %vm5622_vm0 = vcmask 236544  }
 0x278   :  { %v3182_v0 = vpack.c.bf16 %v1216_v38, %v1173_v54  ;;  %3787 = vrot.lane.b32.xlu1 %v4420_v29, %s5649_s26 }
 0x279   :  { %v4885_v17 = vpop.permute.xlu0 %3692 }
 0x27a   :  { %v3648_v5 = vpop.permute.xlu1 %3647  ;;  %3183 = vmatprep.subr.bf16.mxu1 %v3182_v0  ;;  %v3655_v0 = vunpack.i.h.bf16 %v4807_v9 }
 0x27b   :  { %v3650_v25 = vunpack.i.h.bf16 %v3648_v5  ;;  %v3649_v46 = vunpack.i.l.bf16 %v3648_v5  ;;  %3185 = vmatpush1.bf16.msra.mxu1 %v3184_v21  ;;  %3862 = vrot.lane.b32.xlu0 %v4784_v61, %s3922_s22  ;;  %v1256_v21 = vsel %vm5626_vm14, %v3654_v3, %v3644_v57 }
 0x27c   :  { %3797 = vrot.lane.b32.xlu1 %v4784_v61, %s5649_s26  ;;  %v1258_v57 = vsel %vm5626_vm14, %v3645_v47, %v3655_v0 }
 0x27d   :  { %v4892_v34 = vpop.permute.xlu0 %1417  ;;  %v1300_v63 = vsel %vm5622_vm0, %v3649_v46, %v3650_v25 }
 0x27e   :  { %5650 = vst [vmem:[#allocation17_spill] sm:$0xff] %v4892_v34  ;;  %v3658_v8 = vpop.permute.xlu1 %3657  ;;  %v3134_v16 = vpack.c.bf16 %v1300_v63, %v1257_v24 }
 0x27f   :  { %v3660_v54 = vunpack.i.h.bf16 %v3658_v8  ;;  %v3659_v38 = vunpack.i.l.bf16 %v3658_v8  ;;  %1507 = vrot.lane.b32.xlu0 %v4401_v33, %s3920_s0  ;;  %v1259_v8 = vsel %vm5626_vm14, %v3655_v0, %v4817_v41  ;;  %vm1427_vm14 = vcmask 154624  }
 0x280   :  { %3807 = vrot.lane.b32.xlu1 %v4420_v29, %s5651_s27  ;;  %3135 = vmatprep.subr.bf16.mxu0 %v3134_v16 }
 0x281   :  { %v4901_v44 = vpop.permute.xlu0 %3702  ;;  %v1299_v5 = vsel %vm5622_vm0, %v3659_v38, %v3649_v46  ;;  %v1301_v63 = vsel %vm5622_vm0, %v3650_v25, %v3660_v54  ;;  %v3665_v46 = vunpack.i.h.bf16 %v4826_v10  ;;  %v3664_v25 = vunpack.i.l.bf16 %v4826_v10 }
 0x282   :  { %v4905_v14 = vpop.permute.xlu1 %1288  ;;  %v3136_v24 = vpack.c.bf16 %v1299_v5, %v1256_v21  ;;  %v3188_v38 = vpack.c.bf16 %v1301_v63, %v1258_v57  ;;  %v3674_v5 = vunpack.i.l.bf16 %v4850_v23 }
 0x283   :  { %5652 = vst [vmem:[#allocation18_spill] sm:$0xff] %v4905_v14  ;;  %v1302_v9 = vsel %vm5622_vm0, %v3660_v54, %v4905_v14  ;;  %1511 = vrot.lane.b32.xlu0 %v4734_v53, %s3920_s0  ;;  %vm1384_vm0 = vcmask 220160   ;;  %v1343_v0 = vsel %vm1341_vm12, %v3664_v25, %v3665_v46 }
 0x284   :  { %v3186_v16 = vpack.c.bf16 %v1302_v9, %v1259_v8  ;;  %3817 = vrot.lane.b32.xlu1 %v4784_v61, %s5651_s27  ;;  %3137 = vmatpush1.bf16.msra.mxu0 %v3136_v24 }
 0x285   :  { %v4919_v3 = vpop.permute.xlu0 %1497 }
 0x286   :  { %v3668_v21 = vpop.permute.xlu1 %3667  ;;  %3187 = vmatprep.subr.bf16.mxu1 %v3186_v16  ;;  %v3675_v16 = vunpack.i.h.bf16 %v4850_v23 }
 0x287   :  { %v3670_v54 = vunpack.i.h.bf16 %v3668_v21  ;;  %v3669_v53 = vunpack.i.l.bf16 %v3668_v21  ;;  %3189 = vmatpush1.bf16.msra.mxu1 %v3188_v38  ;;  %v1342_v38 = vsel %vm1341_vm12, %v3674_v5, %v3664_v25  ;;  %v3684_v5 = vunpack.i.l.bf16 %v4869_v32 }
 0x288   :  { %3827 = vrot.lane.b32.xlu1 %v4420_v29, %s5653_s28  ;;  %v1344_v25 = vsel %vm1341_vm12, %v3665_v46, %v3675_v16 }
 0x289   :  { %v4924_v47 = vpop.permute.xlu0 %1495  ;;  %v1386_v10 = vsel %vm1384_vm0, %v3669_v53, %v3670_v54 }
 0x28a   :  { %v3678_v24 = vpop.permute.xlu1 %3677  ;;  %v3138_v63 = vpack.c.bf16 %v1386_v10, %v1343_v0  ;;  %v1345_v0 = vsel %vm1341_vm12, %v3675_v16, %v4860_v7 }
 0x28b   :  { %v3680_v8 = vunpack.i.h.bf16 %v3678_v24  ;;  %v3679_v9 = vunpack.i.l.bf16 %v3678_v24 }
 0x28c   :  { %3837 = vrot.lane.b32.xlu1 %v4784_v61, %s5653_s28  ;;  %3139 = vmatprep.subr.bf16.mxu0 %v3138_v63 }
 0x28d   :  { %v4931_v57 = vpop.permute.xlu0 %470  ;;  %v1385_v21 = vsel %vm1384_vm0, %v3679_v9, %v3669_v53  ;;  %v1387_v6 = vsel %vm1384_vm0, %v3670_v54, %v3680_v8  ;;  %v3685_v53 = vunpack.i.h.bf16 %v4869_v32 }
 0x28e   :  { %v4935_v41 = vpop.permute.xlu1 %1374  ;;  %v3140_v14 = vpack.c.bf16 %v1385_v21, %v1342_v38  ;;  %v3192_v54 = vpack.c.bf16 %v1387_v6, %v1344_v25 }
 0x28f   :  { %v1388_v23 = vsel %vm1384_vm0, %v3680_v8, %v4935_v41  ;;  %v1429_v46 = vsel %vm1427_vm14, %v3684_v5, %v3685_v53 }
 0x290   :  { %v3190_v10 = vpack.c.bf16 %v1388_v23, %v1345_v0  ;;  %3847 = vrot.lane.b32.xlu1 %v4420_v29, %s5654_s29  ;;  %3141 = vmatpush1.bf16.msra.mxu0 %v3140_v14  ;;  %v3694_v29 = vunpack.i.l.bf16 %v4885_v17  ;;  %v3923_v0 = vmov 1   ;;  %v3695_v23 = vunpack.i.h.bf16 %v4885_v17 }
 0x291   :  { %v4947_v24 = vpop.permute.xlu0 %3717  ;;  %3866 = vset.pattern.permute.xlu1 %v3923_v0  ;;  %3867 = vset.pattern.permute.xlu0 %v3923_v0 }
 0x292   :  { %v3688_v63 = vpop.permute.xlu1 %3687  ;;  %3191 = vmatprep.subr.bf16.mxu1 %v3190_v10  ;;  %v1428_v10 = vsel %vm1427_vm14, %v3694_v29, %v3684_v5  ;;  %v1430_v5 = vsel %vm1427_vm14, %v3685_v53, %v3695_v23  ;;  %v5657_v53 = vunpack.i.h.bf16 %v4416_v27 }
 0x293   :  { %v3690_v9 = vunpack.i.h.bf16 %v3688_v63  ;;  %v3689_v8 = vunpack.i.l.bf16 %v3688_v63  ;;  %3193 = vmatpush1.bf16.msra.mxu1 %v3192_v54  ;;  %v3884_v54 = vld [vmem:[%s5565_s2 + $0x8] sm:$0xff] }
 0x294   :  { %3857 = vrot.lane.b32.xlu1 %v4784_v61, %s5654_s29  ;;  %1765 = vperm.xlu0 %3867, %v3884_v54  }
 0x295   :  { %v4952_v14 = vpop.permute.xlu0 %1503  ;;  %v1472_v32 = vsel %vm5628_vm15, %v3689_v8, %v3690_v9 }
 0x296   :  { %v3698_v16 = vpop.permute.xlu1 %3697  ;;  %v3142_v6 = vpack.c.bf16 %v1472_v32, %v1429_v46  ;;  %v1431_v32 = vsel %vm1427_vm14, %v3695_v23, %v4892_v34 }
 0x297   :  { %v3700_v38 = vunpack.i.h.bf16 %v3698_v16  ;;  %v3699_v21 = vunpack.i.l.bf16 %v3698_v16 }
 0x298   :  { %1505 = vrot.lane.b32.xlu1 %v4299_v20, %s3920_s0  ;;  %3143 = vmatprep.subr.bf16.mxu0 %v3142_v6 }
 0x299   :  { %v4959_v61 = vpop.permute.xlu0 %556  ;;  %v1471_v25 = vsel %vm5628_vm15, %v3699_v21, %v3689_v8  ;;  %v1473_v17 = vsel %vm5628_vm15, %v3690_v9, %v3700_v38  ;;  %v3704_v9 = vunpack.i.l.bf16 %v4901_v44 }
 0x29a   :  { %v4966_v63 = vpop.permute.xlu1 %1460  ;;  %v3144_v46 = vpack.c.bf16 %v1471_v25, %v1428_v10  ;;  %v3196_v29 = vpack.c.bf16 %v1473_v17, %v1430_v5 }
 0x29b   :  { %5655 = vst [vmem:[#allocation19_spill] sm:$0xff] %v4966_v63  ;;  %v1474_v16 = vsel %vm5628_vm15, %v3700_v38, %v4966_v63  ;;  %v4982_v38 = vld [vmem:[%s5565_s2] sm:$0xff]  ;;  %vm1513_vm15 = vcmask 138240  }
 0x29c   :  { %v3194_v6 = vpack.c.bf16 %v1474_v16, %v1431_v32  ;;  %1509 = vrot.lane.b32.xlu1 %v4471_v58, %s3920_s0  ;;  %3145 = vmatpush1.bf16.msra.mxu0 %v3144_v46  ;;  %5656 = vst [vmem:[#allocation20_spill] sm:$0xff] %v4982_v38  ;;  %v5658_v46 = vunpack.i.h.bf16 %v4405_v19  ;;  %v4998_v32 = vld [vmem:[%s5566_s5] sm:$0xff]  ;;  %v1514_v27 = vsel %vm1513_vm15, %v4924_v47, %v4919_v3  ;;  %v3719_v47 = vunpack.i.l.bf16 %v4947_v24 }
 0x29d   :  { %v4976_v8 = vpop.permute.xlu0 %3727 }
 0x29e   :  { %v3708_v21 = vpop.permute.xlu1 %3707  ;;  %3195 = vmatprep.subr.bf16.mxu1 %v3194_v6  ;;  %v435_v17 = vsel %vm429_vm1, %v5658_v46, %v3704_v9  ;;  %v5006_v6 = vld [vmem:[%s5566_s5 + $0x18] sm:$0xff]  ;;  %v3705_v46 = vunpack.i.h.bf16 %v4901_v44 }
 0x29f   :  { %v3709_v0 = vunpack.i.l.bf16 %v3708_v21  ;;  %3197 = vmatpush1.bf16.msra.mxu1 %v3196_v29  ;;  %v5659_v29 = vpack.c.bf16 %v4438_v1, %v4433_v26 }
 0x2a0   :  { %1760 = vperm.xlu1 %3866, %v4982_v38  }
 0x2a1   :  { %v4985_v10 = vpop.permute.xlu0 %642  ;;  %v478_v23 = vsel %vm472_vm2, %v5657_v53, %v3709_v0 }
 0x2a2   :  { %v1500_v25 = vpop.permute.xlu1 %1499  ;;  %v3198_v16 = vpack.c.bf16 %v478_v23, %v435_v17  ;;  %v3710_v23 = vunpack.i.h.bf16 %v3708_v21 }
 0x2a3   :  { %v1515_v54 = vsel %vm1513_vm15, %v4919_v3, %v1500_v25  ;;  %v5019_v3 = vld [vmem:[%s5566_s5 + $0x10] sm:$0xff] }
 0x2a4   :  { %1827 = vmatprep.subr.mxu0 %v1515_v54  ;;  %v479_v38 = vsel %vm472_vm2, %v3709_v0, %v3710_v23  ;;  %v5662_v0 = vpack.c.bf16 %v4483_v56, %v4494_v50 }
 0x2a5   :  { %1828 = vmatpush1.msra.mxu0 %v1514_v27  ;;  %v5008_v19 = vpop.permute.xlu0 %3737  ;;  %v5660_v27 = vunpack.i.h.bf16 %v4476_v40  ;;  %v436_v40 = vsel %vm429_vm1, %v3704_v9, %v3705_v46 }
 0x2a6   :  { %v428_v5 = vpop.permute.xlu1 %427  ;;  %3199 = vmatprep.subr.bf16.mxu0 %v3198_v16  ;;  %1840 = vmatmul.mubr.f32.vlgmr.msra.gmra.mrb[0].mxu0 %v4998_v32 }
 0x2a7   :  { %3201 = vmatpush1.bf16.msra.mxu0 %v5659_v29  ;;  %3071 = vmatprep.mubr.msk.f32.mxu0 %vm1768_vm7, %v5006_v6  ;;  %v437_v1 = vsel %vm429_vm1, %v3705_v46, %v428_v5  ;;  %v5661_v29 = vunpack.i.h.bf16 %v4384_v48  ;;  %vm5674_vm1 = vcmask 72704  }
 0x2a9   :  { %v5022_v53 = vpop.permute.xlu0 %728  ;;  %v564_v21 = vsel %vm558_vm3, %v5661_v29, %v3719_v47  ;;  %v3252_v29 = vpack.c.bf16 %v479_v38, %v436_v40 }
 0x2aa   :  { %v3713_v54 = vpop.permute.xlu1 %3712  ;;  %1846 = vmatmul.mubr.f32.gmra.mrb[2].mxu0 %v5019_v3 }
 0x2ab   :  { %v3714_v26 = vunpack.i.l.bf16 %v3713_v54  ;;  %3074 = vmatprep.mubr.msk.f32.mxu0 %vm1768_vm7, %v4533_v52  ;;  %v3715_v34 = vunpack.i.h.bf16 %v3713_v54  ;;  %v480_v52 = vsel %vm472_vm2, %v3710_v23, %v4931_v57  ;;  %vm5675_vm2 = vmmov %vm5674_vm1 }
 0x2ac   :  { %v3250_v48 = vpack.c.bf16 %v480_v52, %v437_v1  ;;  %v5663_v1 = vunpack.i.h.bf16 %v4526_v11  ;;  %v3739_v11 = vunpack.i.l.bf16 %v5008_v19 }
 0x2ad   :  { %v5029_v17 = vpop.permute.xlu0 %3747  ;;  %v521_v16 = vsel %vm515_vm4, %v5660_v27, %v3714_v26  ;;  %v3720_v27 = vunpack.i.h.bf16 %v4947_v24  ;;  %v522_v57 = vsel %vm515_vm4, %v3714_v26, %v3715_v34 }
 0x2ae   :  { %v1502_v44 = vpop.permute.xlu1 %1501  ;;  %v3202_v63 = vpack.c.bf16 %v564_v21, %v521_v16  ;;  %v5664_v21 = vunpack.i.h.bf16 %v4414_v22  ;;  %v5665_v22 = vpack.c.bf16 %v4538_v31, %v4549_v59 }
 0x2af   :  { %v1517_v5 = vsel %vm1513_vm15, %v1502_v44, %v4952_v14  ;;  %v1516_v7 = vsel %vm1513_vm15, %v1500_v25, %v1502_v44  ;;  %v566_v24 = vsel %vm558_vm3, %v3720_v27, %v4959_v61  ;;  %v565_v56 = vsel %vm558_vm3, %v3719_v47, %v3720_v27  ;;  %vm5676_vm3 = vmmov %vm5674_vm1 }
 0x2b0   :  { %1904 = vmatprep.subr.mxu1 %v1517_v5  ;;  %3203 = vmatprep.subr.bf16.mxu0 %v3202_v63  ;;  %v3256_v63 = vpack.c.bf16 %v565_v56, %v522_v57  ;;  %v3730_v47 = vunpack.i.h.bf16 %v4976_v8 }
 0x2b1   :  { %1905 = vmatpush1.msra.mxu1 %v1516_v7  ;;  %3205 = vmatpush1.bf16.msra.mxu0 %v5662_v0  ;;  %v5048_v54 = vpop.permute.xlu0 %814  ;;  %v3729_v7 = vunpack.i.l.bf16 %v4976_v8 }
 0x2b2   :  { %v514_v23 = vpop.permute.xlu1 %513  ;;  %3251 = vmatprep.subr.bf16.mxu1 %v3250_v48  ;;  %1917 = vmatmul.mubr.f32.vlgmr.msra.gmra.mrb[0].mxu1 %v4998_v32  ;;  %v652_v27 = vsel %vm644_vm5, %v3730_v47, %v4985_v10  ;;  %v3740_v10 = vunpack.i.h.bf16 %v5008_v19 }
 0x2b3   :  { %v523_v9 = vsel %vm515_vm4, %v3715_v34, %v514_v23  ;;  %3253 = vmatpush1.bf16.msra.mxu1 %v3252_v29  ;;  %3073 = vmatprep.mubr.msk.f32.mxu1 %vm1768_vm7, %v5006_v6  ;;  %v3886_v34 = vld [vmem:[%s5566_s5 + $0x8] sm:$0xff]  ;;  %v650_v44 = vsel %vm644_vm5, %v5664_v21, %v3729_v7  ;;  %v651_v8 = vsel %vm644_vm5, %v3729_v7, %v3730_v47  ;;  %vm5679_vm4 = vcmask 7168  }
 0x2b4   :  { %v3254_v50 = vpack.c.bf16 %v566_v24, %v523_v9  ;;  %v737_v19 = vsel %vm730_vm8, %v3739_v11, %v3740_v10  ;;  %vm5680_vm5 = vmmov %vm5679_vm4 }
 0x2b5   :  { %v5059_v38 = vpop.permute.xlu0 %3757 }
 0x2b6   :  { %v3723_v25 = vpop.permute.xlu1 %3722  ;;  %3255 = vmatprep.subr.bf16.mxu1 %v3254_v50  ;;  %1923 = vmatmul.mubr.f32.gmra.mrb[2].mxu1 %v5019_v3  ;;  %v5666_v50 = vunpack.i.h.bf16 %v4583_v42  ;;  %v3749_v42 = vunpack.i.l.bf16 %v5029_v17 }
 0x2b7   :  { %v3725_v46 = vunpack.i.h.bf16 %v3723_v25  ;;  %v3724_v61 = vunpack.i.l.bf16 %v3723_v25  ;;  %3257 = vmatpush1.bf16.msra.mxu1 %v3256_v63  ;;  %3076 = vmatprep.mubr.msk.f32.mxu1 %vm1768_vm7, %v3886_v34  ;;  %v5667_v63 = vunpack.i.h.bf16 %v4474_v45  ;;  %v5668_v45 = vpack.c.bf16 %v4594_v51, %v4605_v39 }
 0x2b9   :  { %v5067_v26 = vpop.permute.xlu0 %900  ;;  %v607_v16 = vsel %vm601_vm6, %v5663_v1, %v3724_v61  ;;  %v608_v52 = vsel %vm601_vm6, %v3724_v61, %v3725_v46  ;;  %v736_v31 = vsel %vm730_vm8, %v5667_v63, %v3739_v11  ;;  %v738_v61 = vsel %vm730_vm8, %v3740_v10, %v5022_v53  ;;  %vm5682_vm8 = vmmov %vm5679_vm4 }
 0x2ba   :  { %v600_v5 = vpop.permute.xlu1 %599  ;;  %v3206_v40 = vpack.c.bf16 %v650_v44, %v607_v16  ;;  %v3260_v0 = vpack.c.bf16 %v651_v8, %v608_v52  ;;  %v3750_v53 = vunpack.i.h.bf16 %v5029_v17  ;;  %v5673_v63 = vunpack.i.h.bf16 %v4581_v12 }
 0x2bb   :  { %v609_v48 = vsel %vm601_vm6, %v3725_v46, %v600_v5  ;;  %v5669_v5 = vunpack.i.h.bf16 %v4637_v15  ;;  %v5677_v12 = vpack.c.bf16 %v4702_v62, %v4707_v2  ;;  %vm5681_vm6 = vmmov %vm5679_vm4 }
 0x2bc   :  { %v3258_v29 = vpack.c.bf16 %v652_v27, %v609_v48  ;;  %3207 = vmatprep.subr.bf16.mxu0 %v3206_v40  ;;  %v5670_v27 = vunpack.i.h.bf16 %v4524_v55 }
 0x2bd   :  { %3209 = vmatpush1.bf16.msra.mxu0 %v5665_v22  ;;  %v5084_v57 = vpop.permute.xlu0 %943  ;;  %v3759_v22 = vunpack.i.l.bf16 %v5059_v38 }
 0x2be   :  { %v3733_v23 = vpop.permute.xlu1 %3732  ;;  %3259 = vmatprep.subr.bf16.mxu1 %v3258_v29  ;;  %v822_v48 = vsel %vm816_vm10, %v5670_v27, %v3749_v42  ;;  %v824_v29 = vsel %vm816_vm10, %v3750_v53, %v5048_v54  ;;  %v3760_v54 = vunpack.i.h.bf16 %v5059_v38  ;;  %v3560_v38 = vunpack.i.h.bf16 %v4739_v37 }
 0x2bf   :  { %v3735_v24 = vunpack.i.h.bf16 %v3733_v23  ;;  %v3734_v9 = vunpack.i.l.bf16 %v3733_v23  ;;  %3261 = vmatpush1.bf16.msra.mxu1 %v3260_v0  ;;  %v823_v0 = vsel %vm816_vm10, %v3749_v42, %v3750_v53  ;;  %v5671_v23 = vpack.c.bf16 %v4644_v28, %v4655_v49 }
 0x2c0   :  { %vm5686_vm10 = vcmask 973824  }
 0x2c1   :  { %v5087_v56 = vpop.permute.xlu0 %3772  ;;  %v693_v7 = vsel %vm687_vm9, %v5666_v50, %v3734_v9  ;;  %v694_v59 = vsel %vm687_vm9, %v3734_v9, %v3735_v24  ;;  %v5672_v50 = vunpack.i.h.bf16 %v4687_v36  ;;  %v909_v36 = vsel %vm5676_vm3, %v3759_v22, %v3760_v54 }
 0x2c2   :  { %v686_v25 = vpop.permute.xlu1 %685  ;;  %v3210_v46 = vpack.c.bf16 %v736_v31, %v693_v7  ;;  %v3264_v1 = vpack.c.bf16 %v737_v19, %v694_v59  ;;  %v908_v31 = vsel %vm5674_vm1, %v5673_v63, %v3759_v22  ;;  %vm5694_vm3 = vcmask 965632   ;;  %v5695_v63 = vld [vmem:[#allocation14_spill] sm:$0xff] }
 0x2c3   :  { %v695_v34 = vsel %vm687_vm9, %v3735_v24, %v686_v25  ;;  %vm5684_vm9 = vcmask 1039360  }
 0x2c4   :  { %v3262_v47 = vpack.c.bf16 %v738_v61, %v695_v34  ;;  %3211 = vmatprep.subr.bf16.mxu0 %v3210_v46  ;;  %v910_v46 = vsel %vm5675_vm2, %v3760_v54, %v5067_v26  ;;  %v5678_v26 = vunpack.i.l.bf16 %v4739_v37  ;;  %vm5689_vm1 = vmmov %vm5684_vm9  ;;  %v5692_v54 = vld [vmem:[#allocation11_spill] sm:$0xff] }
 0x2c5   :  { %3213 = vmatpush1.bf16.msra.mxu0 %v5668_v45  ;;  %v5104_v16 = vpop.permute.xlu0 %1038  ;;  %vm5690_vm2 = vmmov %vm5686_vm10 }
 0x2c6   :  { %v3743_v21 = vpop.permute.xlu1 %3742  ;;  %3263 = vmatprep.subr.bf16.mxu1 %v3262_v47  ;;  %v950_v45 = vsel %vm5679_vm4, %v5678_v26, %v3560_v38  ;;  %vm5697_vm4 = vcmask 957440  }
 0x2c7   :  { %v3745_v44 = vunpack.i.h.bf16 %v3743_v21  ;;  %v3744_v52 = vunpack.i.l.bf16 %v3743_v21  ;;  %3265 = vmatpush1.bf16.msra.mxu1 %v3264_v1 }
 0x2c9   :  { %v779_v40 = vsel %vm773_vm11, %v5669_v5, %v3744_v52  ;;  %v780_v51 = vsel %vm773_vm11, %v3744_v52, %v3745_v44  ;;  %v5118_v17 = vpop.permute.xlu0 %3782 }
 0x2ca   :  { %v772_v39 = vpop.permute.xlu1 %771  ;;  %v3214_v8 = vpack.c.bf16 %v822_v48, %v779_v40  ;;  %v3268_v55 = vpack.c.bf16 %v823_v0, %v780_v51  ;;  %v3224_v51 = vpack.c.bf16 %v4244_v13, %v950_v45  ;;  %v3784_v22 = vunpack.i.l.bf16 %v5118_v17 }
 0x2cb   :  { %v781_v11 = vsel %vm773_vm11, %v3745_v44, %v772_v39  ;;  %v3774_v44 = vunpack.i.l.bf16 %v5087_v56  ;;  %v3775_v39 = vunpack.i.h.bf16 %v5087_v56  ;;  %vm5687_vm11 = vmmov %vm5684_vm9 }
 0x2cc   :  { %v3266_v15 = vpack.c.bf16 %v824_v29, %v781_v11  ;;  %3215 = vmatprep.subr.bf16.mxu0 %v3214_v8  ;;  %v5683_v8 = vunpack.i.h.bf16 %v4660_v18 }
 0x2cd   :  { %3217 = vmatpush1.bf16.msra.mxu0 %v5671_v23  ;;  %v1125_v59 = vpop.permute.xlu0 %1124 }
 0x2ce   :  { %v3753_v24 = vpop.permute.xlu1 %3752  ;;  %3267 = vmatprep.subr.bf16.mxu1 %v3266_v15  ;;  %v1047_v15 = vsel %vm5690_vm2, %v3774_v44, %v3775_v39 }
 0x2cf   :  { %v3755_v9 = vunpack.i.h.bf16 %v3753_v24  ;;  %v3754_v10 = vunpack.i.l.bf16 %v3753_v24  ;;  %3269 = vmatpush1.bf16.msra.mxu1 %v3268_v55  ;;  %v5691_v55 = vpack.c.bf16 %v4800_v43, %v4789_v30 }
 0x2d1   :  { %v865_v7 = vsel %vm859_vm13, %v5672_v50, %v3754_v10  ;;  %v866_v25 = vsel %vm859_vm13, %v3754_v10, %v3755_v9  ;;  %v5143_v21 = vpop.permute.xlu0 %3792  ;;  %v5693_v50 = vunpack.i.h.bf16 %v5692_v54 }
 0x2d2   :  { %v858_v28 = vpop.permute.xlu1 %857  ;;  %v3218_v49 = vpack.c.bf16 %v908_v31, %v865_v7  ;;  %v3272_v19 = vpack.c.bf16 %v909_v36, %v866_v25  ;;  %v5696_v31 = vunpack.i.h.bf16 %v5695_v63 }
 0x2d3   :  { %v867_v61 = vsel %vm859_vm13, %v3755_v9, %v858_v28  ;;  %vm5688_vm13 = vmmov %vm5686_vm10 }
 0x2d4   :  { %v3270_v34 = vpack.c.bf16 %v910_v46, %v867_v61  ;;  %3219 = vmatprep.subr.bf16.mxu0 %v3218_v49  ;;  %v1048_v13 = vsel %vm5688_vm13, %v3775_v39, %v5104_v16  ;;  %v3785_v16 = vunpack.i.h.bf16 %v5118_v17  ;;  %v1132_v25 = vsel %vm5697_vm4, %v5696_v31, %v3784_v22 }
 0x2d5   :  { %3221 = vmatpush1.bf16.msra.mxu0 %v5677_v12  ;;  %v3795_v61 = vunpack.i.h.bf16 %v5143_v21  ;;  %vm5707_vm13 = vcmask 318464  }
 0x2d6   :  { %v3763_v47 = vpop.permute.xlu1 %3762  ;;  %3271 = vmatprep.subr.bf16.mxu1 %v3270_v34 }
 0x2d7   :  { %v3765_v42 = vunpack.i.h.bf16 %v3763_v47  ;;  %v3764_v1 = vunpack.i.l.bf16 %v3763_v47  ;;  %3273 = vmatpush1.bf16.msra.mxu1 %v3272_v19  ;;  %v5702_v19 = vpack.c.bf16 %v4843_v60, %v4727_v4 }
 0x2d9   :  { %v952_v52 = vsel %vm5680_vm5, %v3764_v1, %v3765_v42  ;;  %v951_v53 = vsel %vm5681_vm6, %v3560_v38, %v3764_v1  ;;  %v953_v62 = vsel %vm5682_vm8, %v3765_v42, %v5084_v57  ;;  %vm5698_vm5 = vmmov %vm5694_vm3  ;;  %v3794_v38 = vunpack.i.l.bf16 %v5143_v21  ;;  %v5703_v1 = vld [vmem:[#allocation16_spill] sm:$0xff] }
 0x2da   :  { %v3276_v2 = vpack.c.bf16 %v4401_v33, %v952_v52  ;;  %v3768_v5 = vpop.permute.xlu1 %3767  ;;  %v3222_v40 = vpack.c.bf16 %v4299_v20, %v951_v53  ;;  %v3274_v48 = vpack.c.bf16 %v4471_v58, %v953_v62  ;;  %v5685_v33 = vunpack.i.h.bf16 %v4778_v35  ;;  %v3803_v20 = vpop.permute.xlu0 %3802  ;;  %vm5699_vm6 = vmmov %vm5697_vm4  ;;  %v5706_v52 = vld [vmem:[#allocation12_spill] sm:$0xff] }
 0x2db   :  { %v3770_v27 = vunpack.i.h.bf16 %v3768_v5  ;;  %v3769_v37 = vunpack.i.l.bf16 %v3768_v5  ;;  %v1134_v49 = vsel %vm5699_vm6, %v3785_v16, %v1125_v59  ;;  %vm5700_vm8 = vmmov %vm5694_vm3  ;;  %v3804_v21 = vunpack.i.l.bf16 %v3803_v20 }
 0x2dc   :  { %3223 = vmatprep.subr.bf16.mxu0 %v3222_v40  ;;  %3275 = vmatprep.subr.bf16.mxu1 %v3274_v48  ;;  %v1046_v29 = vsel %vm5686_vm10, %v5685_v33, %v3774_v44  ;;  %vm5704_vm10 = vcmask 310272   ;;  %v3805_v44 = vunpack.i.h.bf16 %v3803_v20  ;;  %vm5714_vm6 = vcmask 236544  }
 0x2dd   :  { %3225 = vmatpush1.bf16.msra.mxu0 %v3224_v51  ;;  %v1003_v57 = vsel %vm5684_vm9, %v5683_v8, %v3769_v37  ;;  %v1004_v11 = vsel %vm5687_vm11, %v3769_v37, %v3770_v27  ;;  %3277 = vmatpush1.bf16.msra.mxu1 %v3276_v2  ;;  %vm5701_vm9 = vmmov %vm5697_vm4  ;;  %v1217_v26 = vsel %vm5704_vm10, %v5703_v1, %v3794_v38 }
 0x2de   :  { %v996_v58 = vpop.permute.xlu1 %995  ;;  %v3226_v0 = vpack.c.bf16 %v1046_v29, %v1003_v57  ;;  %v3280_v35 = vpack.c.bf16 %v1047_v15, %v1004_v11  ;;  %v5171_v10 = vpop.permute.xlu0 %3812  ;;  %v1133_v17 = vsel %vm5701_vm9, %v3784_v22, %v3785_v16  ;;  %vm5705_vm11 = vmmov %vm5704_vm10  ;;  %v5716_v22 = vld [vmem:[#allocation13_spill] sm:$0xff]  ;;  %vm5717_vm9 = vcmask 302080  }
 0x2df   :  { %v1005_v56 = vsel %vm5689_vm1, %v3770_v27, %v996_v58  ;;  %v1218_v45 = vsel %vm5705_vm11, %v3794_v38, %v3795_v61  ;;  %vm5708_vm1 = vmmov %vm5707_vm13  ;;  %v3815_v27 = vunpack.i.h.bf16 %v5171_v10  ;;  %v3814_v37 = vunpack.i.l.bf16 %v5171_v10 }
 0x2e0   :  { %v3278_v18 = vpack.c.bf16 %v1048_v13, %v1005_v56  ;;  %3227 = vmatprep.subr.bf16.mxu0 %v3226_v0  ;;  %vm5709_vm2 = vmmov %vm5704_vm10  ;;  %v5713_v0 = vld [vmem:[#allocation18_spill] sm:$0xff] }
 0x2e1   :  { %3229 = vmatpush1.bf16.msra.mxu0 %v5691_v55  ;;  %v1219_v51 = vsel %vm5709_vm2, %v3795_v61, %v3804_v21  ;;  %vm5711_vm4 = vmmov %vm5708_vm1  ;;  %v1303_v13 = vsel %vm5714_vm6, %v5713_v0, %v3814_v37 }
 0x2e2   :  { %v3778_v23 = vpop.permute.xlu1 %3777  ;;  %3279 = vmatprep.subr.bf16.mxu1 %v3278_v18  ;;  %v3823_v12 = vpop.permute.xlu0 %3822  ;;  %vm5718_vm10 = vmmov %vm5717_vm9 }
 0x2e3   :  { %v3780_v24 = vunpack.i.h.bf16 %v3778_v23  ;;  %v3779_v9 = vunpack.i.l.bf16 %v3778_v23  ;;  %3281 = vmatpush1.bf16.msra.mxu1 %v3280_v35  ;;  %v3825_v15 = vunpack.i.h.bf16 %v3823_v12  ;;  %v3824_v18 = vunpack.i.l.bf16 %v3823_v12  ;;  %vm5719_vm11 = vmmov %vm5714_vm6  ;;  %v5723_v12 = vld [vmem:[#allocation15_spill] sm:$0xff] }
 0x2e5   :  { %v1089_v7 = vsel %vm5694_vm3, %v5693_v50, %v3779_v9  ;;  %v1090_v30 = vsel %vm5698_vm5, %v3779_v9, %v3780_v24  ;;  %vm5710_vm3 = vmmov %vm5708_vm1  ;;  %v1305_v63 = vsel %vm5719_vm11, %v3815_v27, %v3824_v18 }
 0x2e6   :  { %v1082_v43 = vpop.permute.xlu1 %1081  ;;  %v3230_v28 = vpack.c.bf16 %v1132_v25, %v1089_v7  ;;  %v3284_v34 = vpack.c.bf16 %v1133_v17, %v1090_v30  ;;  %v3833_v48 = vpop.permute.xlu0 %3832  ;;  %vm5712_vm5 = vmmov %vm5709_vm2 }
 0x2e7   :  { %v1091_v46 = vsel %vm5700_vm8, %v3780_v24, %v1082_v43  ;;  %v1220_v57 = vsel %vm5712_vm5, %v3804_v21, %v3805_v44  ;;  %vm5715_vm8 = vmmov %vm5714_vm6  ;;  %v3835_v50 = vunpack.i.h.bf16 %v3833_v48  ;;  %v3834_v7 = vunpack.i.l.bf16 %v3833_v48  ;;  %v5724_v48 = vld [vmem:[#allocation19_spill] sm:$0xff] }
 0x2e8   :  { %v3282_v36 = vpack.c.bf16 %v1134_v49, %v1091_v46  ;;  %3231 = vmatprep.subr.bf16.mxu0 %v3230_v28  ;;  %v1304_v56 = vsel %vm5715_vm8, %v3814_v37, %v3815_v27  ;;  %vm5722_vm2 = vmmov %vm5714_vm6 }
 0x2e9   :  { %3233 = vmatpush1.bf16.msra.mxu0 %v5702_v19  ;;  %v1306_v30 = vsel %vm5722_vm2, %v3824_v18, %v3825_v15  ;;  %v1389_v61 = vsel %vm1384_vm0, %v4935_v41, %v3834_v7 }
 0x2ea   :  { %v3788_v47 = vpop.permute.xlu1 %3787  ;;  %3283 = vmatprep.subr.bf16.mxu1 %v3282_v36  ;;  %v3843_v23 = vpop.permute.xlu0 %3842  ;;  %v1390_v36 = vsel %vm1384_vm0, %v3834_v7, %v3835_v50  ;;  %v3887_v7 = vld [vmem:[%s5562_s4 + $0x10] sm:$0xff] }
 0x2eb   :  { %v3790_v42 = vunpack.i.h.bf16 %v3788_v47  ;;  %v3789_v59 = vunpack.i.l.bf16 %v3788_v47  ;;  %3285 = vmatpush1.bf16.msra.mxu1 %v3284_v34  ;;  %v3845_v34 = vunpack.i.h.bf16 %v3843_v23  ;;  %v3844_v19 = vunpack.i.l.bf16 %v3843_v23 }
 0x2ed   :  { %v1174_v53 = vsel %vm5707_vm13, %v5706_v52, %v3789_v59  ;;  %v1175_v62 = vsel %vm5708_vm1, %v3789_v59, %v3790_v42  ;;  %vm5720_vm13 = vmmov %vm5717_vm9  ;;  %v1391_v41 = vsel %vm1384_vm0, %v3835_v50, %v3844_v19 }
 0x2ee   :  { %v3236_v4 = vpack.c.bf16 %v1217_v26, %v1174_v53  ;;  %v3798_v60 = vpop.permute.xlu1 %3797  ;;  %v3234_v2 = vpack.c.bf16 %v1218_v45, %v1175_v62  ;;  %vm5721_vm1 = vmmov %vm5717_vm9  ;;  %v3853_v38 = vpop.permute.xlu0 %3852 }
 0x2ef   :  { %v3800_v5 = vunpack.i.h.bf16 %v3798_v60  ;;  %v3799_v40 = vunpack.i.l.bf16 %v3798_v60  ;;  %v3855_v21 = vunpack.i.h.bf16 %v3853_v38  ;;  %v3854_v52 = vunpack.i.l.bf16 %v3853_v38 }
 0x2f0   :  { %3235 = vmatprep.subr.bf16.mxu0 %v3234_v2 }
 0x2f1   :  { %v1176_v39 = vsel %vm5710_vm3, %v3790_v42, %v3799_v40  ;;  %3237 = vmatpush1.bf16.msra.mxu0 %v3236_v4  ;;  %v1177_v8 = vsel %vm5711_vm4, %v3799_v40, %v3800_v5  ;;  %v1392_v4 = vsel %vm1384_vm0, %v3844_v19, %v3845_v34  ;;  %vm5725_vm3 = vcmask 146432   ;;  %v3066_v34 = vld [vmem:[%s5561_s3 + $0x8] ss:$8 sm:$0xf] }
 0x2f2   :  { %v3288_v33 = vpack.c.bf16 %v1219_v51, %v1176_v39  ;;  %v3808_v29 = vpop.permute.xlu1 %3807  ;;  %v3286_v20 = vpack.c.bf16 %v1220_v57, %v1177_v8  ;;  %v3863_v60 = vpop.permute.xlu0 %3862  ;;  %v1475_v51 = vsel %vm5725_vm3, %v5724_v48, %v3854_v52  ;;  %vm5726_vm4 = vmmov %vm5725_vm3  ;;  %v3067_v19 = vld [vmem:[%s5561_s3 + $0x8] ss:$8 sm:$0xf0] }
 0x2f3   :  { %v3810_v11 = vunpack.i.h.bf16 %v3808_v29  ;;  %v3809_v58 = vunpack.i.l.bf16 %v3808_v29  ;;  %v1476_v39 = vsel %vm5726_vm4, %v3854_v52, %v3855_v21  ;;  %v3865_v8 = vunpack.i.h.bf16 %v3863_v60  ;;  %vm5728_vm0 = vmmov %vm5725_vm3 }
 0x2f4   :  { %3287 = vmatprep.subr.bf16.mxu1 %v3286_v20  ;;  %v3864_v57 = vunpack.i.l.bf16 %v3863_v60 }
 0x2f5   :  { %v1260_v35 = vsel %vm5717_vm9, %v5716_v22, %v3809_v58  ;;  %3289 = vmatpush1.bf16.msra.mxu1 %v3288_v33  ;;  %v1261_v55 = vsel %vm5718_vm10, %v3809_v58, %v3810_v11  ;;  %v5727_v33 = vld [vmem:[#allocation17_spill] sm:$0xff] }
 0x2f6   :  { %v3240_v24 = vpack.c.bf16 %v1303_v13, %v1260_v35  ;;  %v3818_v9 = vpop.permute.xlu1 %3817  ;;  %v3238_v16 = vpack.c.bf16 %v1304_v56, %v1261_v55  ;;  %v1508_v15 = vpop.permute.xlu0 %1507  ;;  %v1477_v18 = vsel %vm5728_vm0, %v3855_v21, %v3864_v57 }
 0x2f7   :  { %v3820_v10 = vunpack.i.h.bf16 %v3818_v9  ;;  %v3819_v54 = vunpack.i.l.bf16 %v3818_v9 }
 0x2f8   :  { %3239 = vmatprep.subr.bf16.mxu0 %v3238_v16 }
 0x2f9   :  { %v1262_v31 = vsel %vm5720_vm13, %v3810_v11, %v3819_v54  ;;  %3241 = vmatpush1.bf16.msra.mxu0 %v3240_v24  ;;  %v1263_v25 = vsel %vm5721_vm1, %v3819_v54, %v3820_v10 }
 0x2fa   :  { %v3292_v43 = vpack.c.bf16 %v1305_v63, %v1262_v31  ;;  %v3828_v28 = vpop.permute.xlu1 %3827  ;;  %v3290_v49 = vpack.c.bf16 %v1306_v30, %v1263_v25  ;;  %v1512_v54 = vpop.permute.xlu0 %1511  ;;  %v3889_v25 = vld [vmem:[%s5562_s4 + $0x30] sm:$0xff]  ;;  %v3890_v30 = vld [vmem:[%s5562_s4 + $0x20] sm:$0xff] }
 0x2fb   :  { %v3830_v46 = vunpack.i.h.bf16 %v3828_v28  ;;  %v3829_v17 = vunpack.i.l.bf16 %v3828_v28  ;;  %v3892_v28 = vld [vmem:[%s5562_s4 + $0x40] sm:$0xff] }
 0x2fc   :  { %3291 = vmatprep.subr.bf16.mxu1 %v3290_v49 }
 0x2fd   :  { %v1346_v47 = vsel %vm1341_vm12, %v5723_v12, %v3829_v17  ;;  %3293 = vmatpush1.bf16.msra.mxu1 %v3292_v43  ;;  %v1347_v42 = vsel %vm1341_vm12, %v3829_v17, %v3830_v46  ;;  %v3891_v43 = vld [vmem:[%s5562_s4 + $0x18] sm:$0xff]  ;;  %v57_v12 = vor.u32 %v3067_v19, %v3066_v34 }
 0x2fe   :  { %v3244_v59 = vpack.c.bf16 %v1389_v61, %v1346_v47  ;;  %v3838_v1 = vpop.permute.xlu1 %3837  ;;  %v3242_v26 = vpack.c.bf16 %v1390_v36, %v1347_v42 }
 0x2ff   :  { %v3840_v45 = vunpack.i.h.bf16 %v3838_v1  ;;  %v3839_v44 = vunpack.i.l.bf16 %v3838_v1 }
 0x300   :  { %3243 = vmatprep.subr.bf16.mxu0 %v3242_v26  ;;  %v5731_v26 = vld [vmem:[#allocation4_spill] sm:$0xff] }
 0x301   :  { %v1348_v53 = vsel %vm1341_vm12, %v3830_v46, %v3839_v44  ;;  %3245 = vmatpush1.bf16.msra.mxu0 %v3244_v59  ;;  %v1349_v62 = vsel %vm1341_vm12, %v3839_v44, %v3840_v45  ;;  %vm5729_vm12 = vmmov %vm5728_vm0  ;;  %v5730_v59 = vld [vmem:[#allocation3_spill] sm:$0xff]  ;;  %v5275_v45 = vrot.slane %v57_v12, %v5731_v26 }
 0x302   :  { %v3296_v2 = vpack.c.bf16 %v1391_v41, %v1348_v53  ;;  %v3848_v5 = vpop.permute.xlu1 %3847  ;;  %v3294_v40 = vpack.c.bf16 %v1392_v4, %v1349_v62  ;;  %v1478_v55 = vsel %vm5729_vm12, %v3864_v57, %v3865_v8  ;;  %v5272_v1 = vrot.slane %v57_v12, %v5730_v59  ;;  %v5732_v4 = vld [vmem:[#allocation5_spill] sm:$0xff]  ;;  %v5734_v57 = vld [vmem:[#allocation7_spill] sm:$0xff] }
 0x303   :  { %v3850_v27 = vunpack.i.h.bf16 %v3848_v5  ;;  %v3849_v37 = vunpack.i.l.bf16 %v3848_v5  ;;  %v5286_v60 = vrot.slane %v57_v12, %v5732_v4 }
 0x304   :  { %3295 = vmatprep.subr.bf16.mxu1 %v3294_v40 }
 0x305   :  { %v1432_v29 = vsel %vm1427_vm14, %v5727_v33, %v3849_v37  ;;  %3297 = vmatpush1.bf16.msra.mxu1 %v3296_v2  ;;  %v1433_v20 = vsel %vm1427_vm14, %v3849_v37, %v3850_v27  ;;  %v5733_v2 = vld [vmem:[#allocation6_spill] sm:$0xff]  ;;  %v5299_v33 = vrot.slane %v57_v12, %v5734_v57 }
 0x306   :  { %v3248_v11 = vpack.c.bf16 %v1475_v51, %v1432_v29  ;;  %v3858_v58 = vpop.permute.xlu1 %3857  ;;  %v3246_v0 = vpack.c.bf16 %v1476_v39, %v1433_v20  ;;  %v5289_v5 = vrot.slane %v57_v12, %v5733_v2 }
 0x307   :  { %v3860_v13 = vunpack.i.h.bf16 %v3858_v58  ;;  %v3859_v56 = vunpack.i.l.bf16 %v3858_v58 }
 0x308   :  { %3247 = vmatprep.subr.bf16.mxu0 %v3246_v0 }
 0x309   :  { %v1434_v22 = vsel %vm1427_vm14, %v3850_v27, %v3859_v56  ;;  %3249 = vmatpush1.bf16.msra.mxu0 %v3248_v11  ;;  %v1435_v35 = vsel %vm1427_vm14, %v3859_v56, %v3860_v13  ;;  %v5735_v13 = vld [vmem:[#allocation8_spill] sm:$0xff]  ;;  %vm5739_vm14 = vcmask 130048  }
 0x30a   :  { %v3300_v23 = vpack.c.bf16 %v1477_v18, %v1434_v22  ;;  %v1506_v24 = vpop.permute.xlu1 %1505  ;;  %v3298_v9 = vpack.c.bf16 %v1478_v55, %v1435_v35  ;;  %v5307_v56 = vrot.slane %v57_v12, %v5735_v13  ;;  %v5736_v35 = vld [vmem:[#allocation9_spill] sm:$0xff]  ;;  %vm5741_vm5 = vmmov %vm5739_vm14 }
 0x30b   :  { %v1518_v16 = vsel %vm1513_vm15, %v4952_v14, %v1506_v24  ;;  %v1519_v10 = vsel %vm1513_vm15, %v1506_v24, %v1508_v15  ;;  %v3888_v14 = vld [vmem:[%s5562_s4 + $0x8] sm:$0xff]  ;;  %v5310_v55 = vrot.slane %v57_v12, %v5736_v35  ;;  %vm5742_vm6 = vmmov %vm5741_vm5 }
 0x30c   :  { %1981 = vmatprep.subr.mxu0 %v1519_v10  ;;  %3299 = vmatprep.subr.bf16.mxu1 %v3298_v9  ;;  %vm5743_vm8 = vmmov %vm5741_vm5 }
 0x30d   :  { %1982 = vmatpush1.msra.mxu0 %v1518_v16  ;;  %3301 = vmatpush1.bf16.msra.mxu1 %v3300_v23  ;;  %vm5744_vm9 = vmmov %vm5741_vm5 }
 0x30e   :  { %v1510_v50 = vpop.permute.xlu1 %1509  ;;  %1994 = vmatmul.mubr.f32.vlgmr.msra.gmra.mrb[4].mxu0 %v4998_v32  ;;  %2389 = vmatprep.subr.mxu0 %v3887_v7  ;;  %v5737_v7 = vld [vmem:[#allocation10_spill] sm:$0xff]  ;;  %vm5745_vm10 = vmmov %vm5741_vm5 }
 0x30f   :  { %v1520_v63 = vsel %vm1513_vm15, %v1508_v15, %v1510_v50  ;;  %v1521_v31 = vsel %vm1513_vm15, %v1510_v50, %v1512_v54  ;;  %3075 = vmatprep.mubr.msk.f32.mxu0 %vm1768_vm7, %v5006_v6  ;;  %2390 = vmatpush1.msra.mxu0 %v3888_v14  ;;  %vm5740_vm15 = vmmov %vm5739_vm14 }
 0x310   :  { %2058 = vmatprep.subr.mxu1 %v1521_v31  ;;  %2543 = vmatprep.subr.mxu0 %v3889_v25  ;;  %vm5746_vm11 = vmmov %vm5741_vm5 }
 0x311   :  { %2059 = vmatpush1.msra.mxu1 %v1520_v63  ;;  %v5317_v63 = vrot.slane %v57_v12, %v5737_v7 }
 0x312   :  { %2000 = vmatmul.mubr.f32.gmra.mrb[6].mxu0 %v5019_v3  ;;  %2071 = vmatmul.mubr.f32.vlgmr.msra.gmra.mrb[4].mxu1 %v4998_v32 }
 0x313   :  { %3077 = vmatprep.mubr.msk.f32.mxu1 %vm1768_vm7, %v5006_v6  ;;  %2466 = vmatprep.subr.mxu1 %v3890_v30  ;;  %v1766_v44 = vpop.permute.xlu0 %1765  ;;  %vm2382_vm7 = vcmask 64512  }
 0x314   :  { %2467 = vmatpush1.msra.mxu1 %v3891_v43 }
 0x315   :  { %2620 = vmatprep.subr.mxu1 %v3892_v28 }
 0x316   :  { %2077 = vmatmul.mubr.f32.gmra.mrb[6].mxu1 %v5019_v3 }
 0x31f   :  { %v1761_v47 = vpop.permute.xlu1 %1760 }
 0x379   :  { %v1841_v32 = vpop.f32.mrb[0].mxu0 }
 0x37a   :  { %v1843_v49 = vpop.f32.mrb[1].mxu0  ;;  %v5267_v42 = vadd.f32 %v1841_v32, %v1761_v47 }
 0x37b   :  { %v5269_v3 = vadd.f32 %v1843_v49, %v1761_v47 }
 0x37c   :  { %v2124_v41 = vmul.f32 %v5272_v1, %v5267_v42 }
 0x37d   :  { %v1847_v6 = vpop.f32.mrb[2].mxu0  ;;  %v2125_v53 = vmul.f32 %v5275_v45, %v5269_v3 }
 0x37e   :  { %v1849_v46 = vpop.f32.mrb[3].mxu0  ;;  %v5277_v21 = vadd.f32 %v1847_v6, %v1766_v44 }
 0x37f   :  { %v5279_v52 = vadd.f32 %v1849_v46, %v1766_v44  ;;  %v2140_v37 = vadd.f32 %v2125_v53, %v2124_v41 }
 0x380   :  { %v2132_v40 = vmul.f32 %v5272_v1, %v5277_v21 }
 0x381   :  { %v2133_v27 = vmul.f32 %v5275_v45, %v5279_v52 }
 0x383   :  { %v2149_v8 = vadd.f32 %v2133_v27, %v2132_v40 }
 0x385   :  { %v1918_v17 = vpop.f32.mrb[0].mxu1 }
 0x386   :  { %v1920_v61 = vpop.f32.mrb[1].mxu1  ;;  %v1919_v62 = vadd.f32 %v1918_v17, %v1761_v47 }
 0x387   :  { %v1921_v51 = vadd.f32 %v1920_v61, %v1761_v47 }
 0x388   :  { %v2126_v48 = vmul.f32 %v5286_v60, %v1919_v62 }
 0x389   :  { %v1924_v38 = vpop.f32.mrb[2].mxu1  ;;  %v2127_v20 = vmul.f32 %v5289_v5, %v1921_v51 }
 0x38a   :  { %v1926_v36 = vpop.f32.mrb[3].mxu1  ;;  %v5296_v39 = vadd.f32 %v1924_v38, %v1766_v44  ;;  %v2141_v29 = vadd.f32 %v2140_v37, %v2126_v48 }
 0x38b   :  { %v5304_v58 = vadd.f32 %v1926_v36, %v1766_v44 }
 0x38c   :  { %v2134_v11 = vmul.f32 %v5286_v60, %v5296_v39  ;;  %v2142_v23 = vadd.f32 %v2141_v29, %v2127_v20 }
 0x38d   :  { %v2135_v9 = vmul.f32 %v5289_v5, %v5304_v58 }
 0x38e   :  { %v2150_v24 = vadd.f32 %v2149_v8, %v2134_v11 }
 0x390   :  { %v2151_v49 = vadd.f32 %v2150_v24, %v2135_v9 }
 0x3e1   :  { %v1995_v0 = vpop.f32.mrb[4].mxu0 }
 0x3e2   :  { %v1996_v15 = vadd.f32 %v1995_v0, %v1761_v47  ;;  %v1997_v18 = vpop.f32.mrb[5].mxu0 }
 0x3e3   :  { %v1998_v22 = vadd.f32 %v1997_v18, %v1761_v47 }
 0x3e4   :  { %v2128_v16 = vmul.f32 %v5299_v33, %v1996_v15 }
 0x3e5   :  { %v2129_v10 = vmul.f32 %v5307_v56, %v1998_v22  ;;  %v2001_v54 = vpop.f32.mrb[6].mxu0  ;;  %v2072_v50 = vpop.f32.mrb[4].mxu1 }
 0x3e6   :  { %v2143_v31 = vadd.f32 %v2142_v23, %v2128_v16  ;;  %v2002_v14 = vadd.f32 %v2001_v54, %v1766_v44  ;;  %v2073_v25 = vadd.f32 %v2072_v50, %v1761_v47  ;;  %v2003_v30 = vpop.f32.mrb[7].mxu0  ;;  %v2074_v43 = vpop.f32.mrb[5].mxu1 }
 0x3e7   :  { %v2004_v28 = vadd.f32 %v2003_v30, %v1766_v44  ;;  %v2075_v32 = vadd.f32 %v2074_v43, %v1761_v47 }
 0x3e8   :  { %v2144_v6 = vadd.f32 %v2143_v31, %v2129_v10  ;;  %v2136_v46 = vmul.f32 %v5299_v33, %v2002_v14  ;;  %v2130_v17 = vmul.f32 %v5310_v55, %v2073_v25 }
 0x3e9   :  { %v2137_v61 = vmul.f32 %v5307_v56, %v2004_v28  ;;  %v2131_v38 = vmul.f32 %v5317_v63, %v2075_v32  ;;  %v2078_v36 = vpop.f32.mrb[6].mxu1 }
 0x3ea   :  { %v2152_v34 = vadd.f32 %v2151_v49, %v2136_v46  ;;  %v2145_v19 = vadd.f32 %v2144_v6, %v2130_v17  ;;  %v2079_v12 = vadd.f32 %v2078_v36, %v1766_v44  ;;  %v2080_v41 = vpop.f32.mrb[7].mxu1 }
 0x3eb   :  { %v2081_v53 = vadd.f32 %v2080_v41, %v1766_v44 }
 0x3ec   :  { %v2153_v40 = vadd.f32 %v2152_v34, %v2137_v61  ;;  %v2138_v27 = vmul.f32 %v5310_v55, %v2079_v12  ;;  %v2146_v47 = vadd.f32 %v2145_v19, %v2131_v38 }
 0x3ed   :  { %v2139_v37 = vmul.f32 %v5317_v63, %v2081_v53 }
 0x3ee   :  { %v2154_v48 = vadd.f32 %v2153_v40, %v2138_v27  ;;  %2147 = vadd.xlane.f32.xlu1 %v2146_v47 }
 0x3f0   :  { %v2155_v8 = vadd.f32 %v2154_v48, %v2139_v37 }
 0x3f2   :  { %2156 = vadd.xlane.f32.xlu0 %v2155_v8 }
 0x47b   :  { %v2148_v29 = vpop.xlane.xlu1 %2147 }
 0x47c   :  { %v2158_v20 = vmul.f32 0.001953125, %v2148_v29 }
 0x47e   :  { %v5326_v11 = vsub.f32 %v5267_v42, %v2158_v20  ;;  %v5329_v0 = vsub.f32 %v5269_v3, %v2158_v20  ;;  %v5331_v18 = vsub.f32 %v1919_v62, %v2158_v20  ;;  %v5333_v44 = vsub.f32 %v1921_v51, %v2158_v20 }
 0x47f   :  { %v2157_v23 = vpop.xlane.xlu0 %2156  ;;  %v5335_v24 = vsub.f32 %v1996_v15, %v2158_v20  ;;  %v5343_v54 = vsub.f32 %v1998_v22, %v2158_v20  ;;  %v5349_v15 = vsub.f32 %v2073_v25, %v2158_v20  ;;  %v5360_v49 = vsub.f32 %v2075_v32, %v2158_v20 }
 0x480   :  { %v2159_v9 = vmul.f32 0.001953125, %v2157_v23  ;;  %v2176_v16 = vmul.f32 %v5326_v11, %v5326_v11  ;;  %v2177_v10 = vmul.f32 %v5329_v0, %v5329_v0  ;;  %v2178_v42 = vmul.f32 %v5331_v18, %v5331_v18 }
 0x481   :  { %v2179_v3 = vmul.f32 %v5333_v44, %v5333_v44  ;;  %v2180_v50 = vmul.f32 %v5335_v24, %v5335_v24  ;;  %v2181_v46 = vmul.f32 %v5343_v54, %v5343_v54  ;;  %v2183_v40 = vmul.f32 %v5360_v49, %v5360_v49 }
 0x482   :  { %v2192_v62 = vmul.f32 %v2176_v16, %v5272_v1  ;;  %v2193_v51 = vmul.f32 %v2177_v10, %v5275_v45  ;;  %v2194_v31 = vmul.f32 %v2178_v42, %v5286_v60  ;;  %v5355_v43 = vsub.f32 %v5277_v21, %v2159_v9 }
 0x483   :  { %v5358_v22 = vsub.f32 %v5279_v52, %v2159_v9  ;;  %v5363_v6 = vsub.f32 %v5296_v39, %v2159_v9  ;;  %v5366_v25 = vsub.f32 %v5304_v58, %v2159_v9  ;;  %v2195_v17 = vmul.f32 %v2179_v3, %v5289_v5 }
 0x484   :  { %v2208_v30 = vadd.f32 %v2193_v51, %v2192_v62  ;;  %v2184_v21 = vmul.f32 %v5355_v43, %v5355_v43  ;;  %v5373_v38 = vsub.f32 %v2002_v14, %v2159_v9  ;;  %v2182_v58 = vmul.f32 %v5349_v15, %v5349_v15 }
 0x485   :  { %v2185_v52 = vmul.f32 %v5358_v22, %v5358_v22  ;;  %v2186_v39 = vmul.f32 %v5363_v6, %v5363_v6  ;;  %v2196_v32 = vmul.f32 %v2180_v50, %v5299_v33  ;;  %v5382_v34 = vsub.f32 %v2004_v28, %v2159_v9 }
 0x486   :  { %v2209_v61 = vadd.f32 %v2208_v30, %v2194_v31  ;;  %v2187_v19 = vmul.f32 %v5366_v25, %v5366_v25  ;;  %v2200_v14 = vmul.f32 %v2184_v21, %v5272_v1  ;;  %v2197_v27 = vmul.f32 %v2181_v46, %v5307_v56  ;;  %v5738_v21 = vld [vmem:[#allocation20_spill] sm:$0xff] }
 0x487   :  { %v2201_v41 = vmul.f32 %v2185_v52, %v5275_v45  ;;  %v5391_v37 = vsub.f32 %v2079_v12, %v2159_v9  ;;  %v2188_v48 = vmul.f32 %v5373_v38, %v5373_v38  ;;  %v2202_v28 = vmul.f32 %v2186_v39, %v5286_v60  ;;  %v3895_v52 = vld [vmem:[%s5565_s2 + $0x8] sm:$0xff] }
 0x488   :  { %v2210_v36 = vadd.f32 %v2209_v61, %v2195_v17  ;;  %v2198_v29 = vmul.f32 %v2182_v58, %v5310_v55  ;;  %v5397_v1 = vsub.f32 %v2081_v53, %v2159_v9  ;;  %v2189_v45 = vmul.f32 %v5382_v34, %v5382_v34 }
 0x489   :  { %v2217_v8 = vadd.f32 %v2201_v41, %v2200_v14  ;;  %v2203_v23 = vmul.f32 %v2187_v19, %v5289_v5  ;;  %v2199_v12 = vmul.f32 %v2183_v40, %v5317_v63  ;;  %v2190_v42 = vmul.f32 %v5391_v37, %v5391_v37  ;;  %v3063_v19 = vld [vmem:[%s5561_s3 + $0xb] ss:$8 sm:$0xf0]  ;;  %v3064_v14 = vld [vmem:[%s5561_s3 + $0xc] ss:$8 sm:$0xf] }
 0x48a   :  { %v2211_v47 = vadd.f32 %v2210_v36, %v2196_v32  ;;  %v2204_v60 = vmul.f32 %v2188_v48, %v5299_v33  ;;  %v2191_v53 = vmul.f32 %v5397_v1, %v5397_v1  ;;  %v2205_v9 = vmul.f32 %v2189_v45, %v5307_v56  ;;  %v2380_v33 = vld [vmem:[%s5567_s7] sm:$0xff]  ;;  %v2381_v56 = vld [vmem:[%s5567_s7 + $0x8] sm:$0xff] }
 0x48b   :  { %v2218_v16 = vadd.f32 %v2217_v8, %v2202_v28  ;;  %v2206_v5 = vmul.f32 %v2190_v42, %v5310_v55  ;;  %v3924_v17 = vmov 0.0   ;;  %v3893_v55 = vld [vmem:[%s5562_s4 + $0x28] sm:$0xff]  ;;  %v3925_v61 = vmov 2  }
 0x48c   :  { %v2212_v20 = vadd.f32 %v2211_v47, %v2197_v27  ;;  %v2207_v31 = vmul.f32 %v2191_v53, %v5317_v63  ;;  %2453 = vmatprep.mubr.f32.mxu0 %v3924_v17  ;;  %2530 = vmatprep.mubr.f32.mxu1 %v3924_v17  ;;  %v3894_v63 = vld [vmem:[%s5562_s4 + $0x38] sm:$0xff] }
 0x48d   :  { %v2219_v3 = vadd.f32 %v2218_v16, %v2203_v23  ;;  %3078 = vmatmul.mubr.msk.f32.vlgmr.msra.gmra.mrb[8].mxu0 %vm2382_vm7, %v2380_v33  ;;  %3080 = vmatmul.mubr.msk.f32.vlgmr.msra.gmra.mrb[8].mxu1 %vm2382_vm7, %v2380_v33  ;;  %v3062_v36 = vld [vmem:[%s5561_s3 + $0xb] ss:$8 sm:$0xf]  ;;  %v3065_v41 = vld [vmem:[%s5561_s3 + $0xc] ss:$8 sm:$0xf0] }
 0x48e   :  { %v2213_v10 = vadd.f32 %v2212_v20, %v2198_v29  ;;  %2459 = vmatprep.mubr.f32.mxu0 %v3924_v17  ;;  %2536 = vmatprep.mubr.f32.mxu1 %v3924_v17  ;;  %v49_v27 = vor.u32 %v3063_v19, %v3062_v36  ;;  %v53_v48 = vor.u32 %v3065_v41, %v3064_v14 }
 0x48f   :  { %v2220_v51 = vadd.f32 %v2219_v3, %v2204_v60  ;;  %2544 = vmatpush1.msra.mxu0 %v3893_v55  ;;  %2621 = vmatpush1.msra.mxu1 %v3894_v63 }
 0x490   :  { %v2214_v62 = vadd.f32 %v2213_v10, %v2199_v12  ;;  %3868 = vset.pattern.permute.xlu1 %v3925_v61  ;;  %3869 = vset.pattern.permute.xlu0 %v3925_v61  ;;  %v2256_v8 = vrot.slane %v49_v27, %v5731_v26  ;;  %v2313_v29 = vrot.slane %v53_v48, %v5731_v26 }
 0x491   :  { %v2221_v50 = vadd.f32 %v2220_v51, %v2205_v9  ;;  %3079 = vmatmul.mubr.msk.f32.gmra.mrb[10].mxu0 %vm2382_vm7, %v2381_v56  ;;  %3081 = vmatmul.mubr.msk.f32.gmra.mrb[10].mxu1 %vm2382_vm7, %v2381_v56  ;;  %v2264_v20 = vrot.slane %v49_v27, %v5733_v2  ;;  %v2321_v45 = vrot.slane %v53_v48, %v5733_v2 }
 0x492   :  { %2215 = vadd.xlane.f32.xlu1 %v2214_v62  ;;  %2607 = vmatprep.mubr.f32.mxu0 %v3924_v17  ;;  %v2252_v23 = vrot.slane %v49_v27, %v5730_v59  ;;  %v2309_v16 = vrot.slane %v53_v48, %v5730_v59  ;;  %v2260_v12 = vrot.slane %v49_v27, %v5732_v4 }
 0x493   :  { %v2222_v30 = vadd.f32 %v2221_v50, %v2206_v5  ;;  %2684 = vmatprep.mubr.f32.mxu1 %v3924_v17  ;;  %v2317_v10 = vrot.slane %v53_v48, %v5732_v4  ;;  %v2272_v42 = vrot.slane %v49_v27, %v5735_v13  ;;  %v2329_v60 = vrot.slane %v53_v48, %v5735_v13 }
 0x494   :  { %v2280_v3 = vrot.slane %v49_v27, %v5737_v7  ;;  %v2337_v26 = vrot.slane %v53_v48, %v5737_v7  ;;  %v2268_v53 = vrot.slane %v49_v27, %v5734_v57  ;;  %v2325_v2 = vrot.slane %v53_v48, %v5734_v57 }
 0x495   :  { %v2223_v46 = vadd.f32 %v2222_v30, %v2207_v31  ;;  %3082 = vmatmul.mubr.msk.f32.vlgmr.msra.gmra.mrb[12].mxu0 %vm2382_vm7, %v2380_v33  ;;  %3084 = vmatmul.mubr.msk.f32.vlgmr.msra.gmra.mrb[12].mxu1 %vm2382_vm7, %v2380_v33  ;;  %v2276_v9 = vrot.slane %v49_v27, %v5736_v35  ;;  %v5473_v59 = vrot.slane %v53_v48, %v5736_v35 }
 0x496   :  { %2613 = vmatprep.mubr.f32.mxu0 %v3924_v17  ;;  %2690 = vmatprep.mubr.f32.mxu1 %v3924_v17 }
 0x497   :  { %2224 = vadd.xlane.f32.xlu0 %v2223_v46 }
 0x499   :  { %3083 = vmatmul.mubr.msk.f32.gmra.mrb[14].mxu0 %vm2382_vm7, %v2381_v56  ;;  %3085 = vmatmul.mubr.msk.f32.gmra.mrb[14].mxu1 %vm2382_vm7, %v2381_v56 }
 0x49a   :  { %2767 = vmatprep.mubr.f32.mxu0 %v3924_v17  ;;  %2844 = vmatprep.mubr.f32.mxu1 %v3924_v17 }
 0x4a3   :  { %3012 = vperm.xlu1 %3868, %v5738_v21  }
 0x4ad   :  { %3016 = vperm.xlu0 %3869, %v3895_v52  }
 0x51f   :  { %v2216_v39 = vpop.xlane.xlu1 %2215 }
 0x520   :  { %v2226_v58 = vmul.f32 0.001953125, %v2216_v39 }
 0x522   :  { %v2228_v32 = vadd.f32 1e-05, %v2226_v58 }
 0x524   :  { %3880 = vrsqrt.f32 %v2228_v32  ;;  %v2225_v40 = vpop.xlane.xlu0 %2224 }
 0x525   :  { %v2227_v47 = vmul.f32 0.001953125, %v2225_v40 }
 0x527   :  { %v2229_v28 = vadd.f32 1e-05, %v2227_v47 }
 0x529   :  { %3882 = vrsqrt.f32 %v2229_v28 }
 0x52e   :  { %v3881_v62 = vpop.eup %3880 }
 0x52f   :  { %v2233_v4 = vmul.f32 %v3881_v62, %v5329_v0  ;;  %v2235_v51 = vmul.f32 %v3881_v62, %v5333_v44  ;;  %v2232_v13 = vmul.f32 %v3881_v62, %v5326_v11  ;;  %v2234_v5 = vmul.f32 %v3881_v62, %v5331_v18 }
 0x530   :  { %v2237_v7 = vmul.f32 %v3881_v62, %v5343_v54  ;;  %v2239_v50 = vmul.f32 %v3881_v62, %v5360_v49  ;;  %v2236_v31 = vmul.f32 %v3881_v62, %v5335_v24  ;;  %v2238_v57 = vmul.f32 %v3881_v62, %v5349_v15 }
 0x531   :  { %v2290_v30 = vmul.f32 %v2256_v8, %v2233_v4  ;;  %v2292_v46 = vmul.f32 %v2264_v20, %v2235_v51  ;;  %v2289_v35 = vmul.f32 %v2252_v23, %v2232_v13  ;;  %v2291_v33 = vmul.f32 %v2260_v12, %v2234_v5 }
 0x532   :  { %v2294_v56 = vmul.f32 %v2272_v42, %v2237_v7  ;;  %v2296_v0 = vmul.f32 %v2280_v3, %v2239_v50  ;;  %v2293_v55 = vmul.f32 %v2268_v53, %v2236_v31  ;;  %v2295_v44 = vmul.f32 %v2276_v9, %v2238_v57 }
 0x533   :  { %v2347_v63 = vadd.f32 %v2313_v29, %v2290_v30  ;;  %v2349_v11 = vadd.f32 %v2321_v45, %v2292_v46  ;;  %v2346_v61 = vadd.f32 %v2309_v16, %v2289_v35  ;;  %v2348_v18 = vadd.f32 %v2317_v10, %v2291_v33  ;;  %v3883_v49 = vpop.eup %3882 }
 0x534   :  { %v2351_v21 = vadd.f32 %v2329_v60, %v2294_v56  ;;  %v2353_v54 = vadd.f32 %v2337_v26, %v2296_v0  ;;  %v2350_v52 = vadd.f32 %v2325_v2, %v2293_v55  ;;  %v2352_v15 = vadd.f32 %v5473_v59, %v2295_v44  ;;  %v3013_v56 = vpop.permute.xlu1 %3012 }
 0x535   :  { %v2363_v39 = vmax.f32 %v2347_v63, 0.0  ;;  %v2365_v24 = vmax.f32 %v2349_v11, 0.0  ;;  %v2362_v58 = vmax.f32 %v2346_v61, 0.0  ;;  %v2241_v32 = vmul.f32 %v3883_v49, %v5358_v22 }
 0x536   :  { %v2243_v36 = vmul.f32 %v3883_v49, %v5366_v25  ;;  %v2240_v19 = vmul.f32 %v3883_v49, %v5355_v43  ;;  %v2242_v14 = vmul.f32 %v3883_v49, %v5363_v6  ;;  %v2364_v41 = vmax.f32 %v2348_v18, 0.0 }
 0x537   :  { %v2245_v40 = vmul.f32 %v3883_v49, %v5382_v34  ;;  %v2367_v27 = vmax.f32 %v2351_v21, 0.0  ;;  %v2247_v47 = vmul.f32 %v3883_v49, %v5397_v1  ;;  %v2298_v48 = vmul.f32 %v2256_v8, %v2241_v32 }
 0x538   :  { %v2300_v28 = vmul.f32 %v2264_v20, %v2243_v36  ;;  %v2297_v62 = vmul.f32 %v2252_v23, %v2240_v19  ;;  %v2299_v4 = vmul.f32 %v2260_v12, %v2242_v14  ;;  %v2369_v5 = vmax.f32 %v2353_v54, 0.0  ;;  %v3017_v54 = vpop.permute.xlu0 %3016 }
 0x539   :  { %v2302_v51 = vmul.f32 %v2272_v42, %v2245_v40  ;;  %v2304_v13 = vmul.f32 %v2280_v3, %v2247_v47  ;;  %v2244_v22 = vmul.f32 %v3883_v49, %v5373_v38  ;;  %v2355_v25 = vadd.f32 %v2313_v29, %v2298_v48 }
 0x53a   :  { %v2357_v7 = vadd.f32 %v2321_v45, %v2300_v28  ;;  %v2354_v43 = vadd.f32 %v2309_v16, %v2297_v62  ;;  %v2356_v50 = vadd.f32 %v2317_v10, %v2299_v4  ;;  %v2246_v34 = vmul.f32 %v3883_v49, %v5391_v37  ;;  %v2378_v37 = vld [vmem:[%s5568_s6] sm:$0xff] }
 0x53b   :  { %v2359_v6 = vadd.f32 %v2329_v60, %v2302_v51  ;;  %v2361_v31 = vadd.f32 %v2337_v26, %v2304_v13  ;;  %v2301_v57 = vmul.f32 %v2268_v53, %v2244_v22  ;;  %v2371_v30 = vmax.f32 %v2355_v25, 0.0 }
 0x53c   :  { %v2373_v1 = vmax.f32 %v2357_v7, 0.0  ;;  %v2370_v8 = vmax.f32 %v2354_v43, 0.0  ;;  %v2372_v20 = vmax.f32 %v2356_v50, 0.0  ;;  %v2303_v3 = vmul.f32 %v2276_v9, %v2246_v34 }
 0x53d   :  { %v2375_v23 = vmax.f32 %v2359_v6, 0.0  ;;  %v2377_v12 = vmax.f32 %v2361_v31, 0.0  ;;  %v2358_v42 = vadd.f32 %v2325_v2, %v2301_v57  ;;  %v3302_v46 = vpack.c.bf16 %v2371_v30, %v2363_v39 }
 0x53e   :  { %v3306_v35 = vpack.c.bf16 %v2373_v1, %v2365_v24  ;;  %v3304_v38 = vpack.c.bf16 %v2370_v8, %v2362_v58  ;;  %v3308_v29 = vpack.c.bf16 %v2372_v20, %v2364_v41  ;;  %v2360_v16 = vadd.f32 %v5473_v59, %v2303_v3  ;;  %v2379_v59 = vld [vmem:[%s5568_s6 + $0x8] sm:$0xff] }
 0x53f   :  { %v2374_v45 = vmax.f32 %v2358_v42, 0.0  ;;  %3303 = vmatprep.subr.bf16.mxu0 %v3302_v46  ;;  %v3310_v10 = vpack.c.bf16 %v2375_v23, %v2367_v27  ;;  %v3314_v60 = vpack.c.bf16 %v2377_v12, %v2369_v5  ;;  %v2366_v26 = vmax.f32 %v2350_v52, 0.0 }
 0x540   :  { %3307 = vmatprep.subr.bf16.mxu1 %v3306_v35  ;;  %3305 = vmatpush1.bf16.msra.mxu0 %v3304_v38  ;;  %v2368_v53 = vmax.f32 %v2352_v15, 0.0  ;;  %v2376_v2 = vmax.f32 %v2360_v16, 0.0 }
 0x541   :  { %3309 = vmatpush1.bf16.msra.mxu1 %v3308_v29  ;;  %3311 = vmatprep.subr.bf16.mxu0 %v3310_v10  ;;  %v3312_v9 = vpack.c.bf16 %v2374_v45, %v2366_v26 }
 0x542   :  { %3315 = vmatprep.subr.bf16.mxu1 %v3314_v60  ;;  %v3316_v33 = vpack.c.bf16 %v2376_v2, %v2368_v53 }
 0x543   :  { %3086 = vmatmul.mubr.msk.f32.vlgmr.msra.gmra.mrb[8].mxu0 %vm5739_vm14, %v2378_v37 }
 0x544   :  { %3088 = vmatmul.mubr.msk.f32.vlgmr.msra.gmra.mrb[8].mxu1 %vm5740_vm15, %v2378_v37  ;;  %3313 = vmatpush1.bf16.msra.mxu0 %v3312_v9 }
 0x545   :  { %3317 = vmatpush1.bf16.msra.mxu1 %v3316_v33  ;;  %2773 = vmatprep.mubr.f32.mxu0 %v3924_v17 }
 0x546   :  { %2850 = vmatprep.mubr.f32.mxu1 %v3924_v17 }
 0x547   :  { %3087 = vmatmul.mubr.msk.f32.gmra.mrb[10].mxu0 %vm5741_vm5, %v2379_v59 }
 0x548   :  { %3089 = vmatmul.mubr.msk.f32.gmra.mrb[10].mxu1 %vm5742_vm6, %v2379_v59  ;;  %2921 = vmatprep.mubr.f32.mxu0 %v3924_v17 }
 0x549   :  { %2998 = vmatprep.mubr.f32.mxu1 %v3924_v17 }
 0x54b   :  { %3090 = vmatmul.mubr.msk.f32.vlgmr.msra.gmra.mrb[12].mxu0 %vm5743_vm8, %v2378_v37 }
 0x54c   :  { %3092 = vmatmul.mubr.msk.f32.vlgmr.msra.gmra.mrb[12].mxu1 %vm5744_vm9, %v2378_v37  ;;  %2927 = vmatprep.mubr.f32.mxu0 %v3924_v17 }
 0x54d   :  { %3004 = vmatprep.mubr.f32.mxu1 %v3924_v17 }
 0x54f   :  { %3091 = vmatmul.mubr.msk.f32.gmra.mrb[14].mxu0 %vm5745_vm10, %v2379_v59 }
 0x550   :  { %3093 = vmatmul.mubr.msk.f32.gmra.mrb[14].mxu1 %vm5746_vm11, %v2379_v59 }
 0x616   :  { %v2769_v0 = vpop.f32.mrb[8].mxu0 }
 0x617   :  { %v2846_v55 = vpop.f32.mrb[8].mxu1  ;;  %v3019_v44 = vadd.f32 %v3013_v56, %v2769_v0  ;;  %v2771_v11 = vpop.f32.mrb[9].mxu0 }
 0x618   :  { %v3021_v63 = vadd.f32 %v3013_v56, %v2846_v55  ;;  %v2848_v61 = vpop.f32.mrb[9].mxu1  ;;  %v3020_v18 = vadd.f32 %v3013_v56, %v2771_v11 }
 0x619   :  { %v3022_v21 = vadd.f32 %v3013_v56, %v2848_v61  ;;  %3035 = vst [vmem:[%s5569_s8] sm:$0xff] %v3019_v44 }
 0x61a   :  { %3037 = vst [vmem:[%s5569_s8 + $0x10] sm:$0xff] %v3021_v63  ;;  %3036 = vst [vmem:[%s5569_s8 + $0x8] sm:$0xff] %v3020_v18  ;;  %v2775_v17 = vpop.f32.mrb[10].mxu0 }
 0x61b   :  { %3038 = vst [vmem:[%s5569_s8 + $0x18] sm:$0xff] %v3022_v21  ;;  %v2852_v52 = vpop.f32.mrb[10].mxu1  ;;  %v3027_v49 = vadd.f32 %v3017_v54, %v2775_v17  ;;  %v2777_v24 = vpop.f32.mrb[11].mxu0 }
 0x61c   :  { %v3029_v39 = vadd.f32 %v3017_v54, %v2852_v52  ;;  %v2854_v58 = vpop.f32.mrb[11].mxu1  ;;  %v3028_v15 = vadd.f32 %v3017_v54, %v2777_v24 }
 0x61d   :  { %v3030_v32 = vadd.f32 %v3017_v54, %v2854_v58  ;;  %3043 = vst [vmem:[%s5569_s8 + $0x40] sm:$0xff] %v3027_v49 }
 0x61e   :  { %3045 = vst [vmem:[%s5569_s8 + $0x50] sm:$0xff] %v3029_v39  ;;  %3044 = vst [vmem:[%s5569_s8 + $0x48] sm:$0xff] %v3028_v15  ;;  %v2923_v36 = vpop.f32.mrb[12].mxu0 }
 0x61f   :  { %3046 = vst [vmem:[%s5569_s8 + $0x58] sm:$0xff] %v3030_v32  ;;  %v3000_v19 = vpop.f32.mrb[12].mxu1  ;;  %v3023_v14 = vadd.f32 %v3013_v56, %v2923_v36  ;;  %v2925_v40 = vpop.f32.mrb[13].mxu0 }
 0x620   :  { %v3025_v41 = vadd.f32 %v3013_v56, %v3000_v19  ;;  %v3002_v27 = vpop.f32.mrb[13].mxu1  ;;  %v3024_v47 = vadd.f32 %v3013_v56, %v2925_v40 }
 0x621   :  { %v3026_v48 = vadd.f32 %v3013_v56, %v3002_v27  ;;  %3039 = vst [vmem:[%s5569_s8 + $0x20] sm:$0xff] %v3023_v14 }
 0x622   :  { %3041 = vst [vmem:[%s5569_s8 + $0x30] sm:$0xff] %v3025_v41  ;;  %3040 = vst [vmem:[%s5569_s8 + $0x28] sm:$0xff] %v3024_v47  ;;  %v2929_v28 = vpop.f32.mrb[14].mxu0 }
 0x623   :  { %3042 = vst [vmem:[%s5569_s8 + $0x38] sm:$0xff] %v3026_v48  ;;  %v3006_v62 = vpop.f32.mrb[14].mxu1  ;;  %v3031_v4 = vadd.f32 %v3017_v54, %v2929_v28  ;;  %v2931_v13 = vpop.f32.mrb[15].mxu0 }
 0x624   :  { %v3033_v51 = vadd.f32 %v3017_v54, %v3006_v62  ;;  %v3008_v5 = vpop.f32.mrb[15].mxu1  ;;  %v3032_v22 = vadd.f32 %v3017_v54, %v2931_v13 }
 0x625   :  { %v3034_v25 = vadd.f32 %v3017_v54, %v3008_v5  ;;  %3047 = vst [vmem:[%s5569_s8 + $0x60] sm:$0xff] %v3031_v4 }
 0x626   :  { %3049 = vst [vmem:[%s5569_s8 + $0x70] sm:$0xff] %v3033_v51  ;;  %3048 = vst [vmem:[%s5569_s8 + $0x68] sm:$0xff] %v3032_v22 }
 0x627   :  { %3050 = vst [vmem:[%s5569_s8 + $0x78] sm:$0xff] %v3034_v25 }

</bundles_post_ra>
